<compile_context>
chip_gen: v6e
topology: v6e:2x2x1
jax: 0.10.0
libtpu: 0.0.40
codegen_flags: <defaults>
</compile_context>

<pallas_src>
import functools

import jax
import jax.numpy as jnp
from jax import lax
from jax.experimental import pallas as pl
from jax.experimental.pallas import tpu as pltpu


MASK_VALUE = -1e30                      # large finite negative: no inf-inf NaNs
_VMEM_LIMIT = 48 * 1024 * 1024          # < v7x 64 MiB physical; > default scoped


# ---------------------------------------------------------------------------
# Kernel 1: fused QKV projection, emitted directly in per-head layout.
#   out[b, j*H + h, n, :] = (x[b, n, :] @ Wqkv.T)[j*C + h*hd : (j*C + (h+1)*hd)]
# ---------------------------------------------------------------------------
def _qkv_proj_kernel(x_ref, w_ref, o_ref, *, head_dim, n_slots):
    x = x_ref[0].astype(w_ref.dtype)                     # (tn, C), cast in VMEM
    qkv = lax.dot_general(                               # (tn, 3C), f32 accum
        x, w_ref[...], (((1,), (1,)), ((), ())),
        preferred_element_type=jnp.float32)
    # Scatter the 3C columns into the (3H, tn, hd) per-head layout so the
    # attention kernel can consume q/k/v with no XLA transpose through HBM.
    for jh in range(n_slots):                            # static unroll (3*H)
        o_ref[0, jh] = qkv[:, jh * head_dim:(jh + 1) * head_dim].astype(o_ref.dtype)


def _qkv_proj(x, w_qkv, *, num_heads, block_n, out_dtype):
    B, Np, C = x.shape
    C3 = w_qkv.shape[0]
    hd = C // num_heads
    n_slots = 3 * num_heads
    grid = (B, Np // block_n)
    kernel = functools.partial(_qkv_proj_kernel, head_dim=hd, n_slots=n_slots)
    return pl.pallas_call(
        kernel,
        out_shape=jax.ShapeDtypeStruct((B, n_slots, Np, hd), out_dtype),
        grid_spec=pltpu.PrefetchScalarGridSpec(
            num_scalar_prefetch=0,
            grid=grid,
            in_specs=[
                pl.BlockSpec((1, block_n, C), lambda b, i: (b, i, 0)),
                # Constant index map -> weight DMA'd once, resident in VMEM.
                # TODO(synk): pipeline_mode=pl.Buffered(1) for very large C.
                pl.BlockSpec((C3, C), lambda b, i: (0, 0)),
            ],
            out_specs=pl.BlockSpec((1, n_slots, block_n, hd),
                                   lambda b, i: (b, 0, i, 0)),
        ),
        compiler_params=pltpu.CompilerParams(
            dimension_semantics=("parallel", "parallel"),
            vmem_limit_bytes=_VMEM_LIMIT),
        cost_estimate=pl.CostEstimate(
            flops=2 * B * Np * C * C3,
            transcendentals=0,
            bytes_accessed=int(x.size * x.dtype.itemsize
                               + w_qkv.size * w_qkv.dtype.itemsize
                               + B * Np * C3 * jnp.dtype(out_dtype).itemsize)),
    )(x, w_qkv)


# ---------------------------------------------------------------------------
# Kernel 2: attention (single-pass softmax, full kv in one tile) with the
# output projection + bias fused into the epilogue.  Head axis is the
# innermost "arbitrary" reduction into a resident (tq, C) f32 accumulator.
# ---------------------------------------------------------------------------
def _attn_proj_kernel(q_ref, k_ref, v_ref, wp_ref, b_ref, o_ref, acc_ref,
                      *, n_valid, mask_kv):
    h = pl.program_id(2)

    @pl.when(h == 0)
    def _init():                                          # start from proj bias
        acc_ref[...] = jnp.broadcast_to(
            b_ref[...].astype(jnp.float32), acc_ref.shape)

    q = q_ref[0, 0]                                       # (tq, hd), scale folded
    k = k_ref[0, 0]                                       # (nk, hd)
    v = v_ref[0, 0]                                       # (nk, hd)

    # scores = q @ k.T via dot_general contracting last dims (no k.T copy).
    s = lax.dot_general(q, k, (((1,), (1,)), ((), ())),
                        preferred_element_type=jnp.float32)        # (tq, nk) f32

    if mask_kv:                       # static Python bool: only when N is padded
        col = lax.broadcasted_iota(jnp.int32, s.shape, 1)
        s = jnp.where(col < n_valid, s, MASK_VALUE)

    # Single-pass softmax: the whole kv range is in this tile (no online carry).
    m = jnp.max(s, axis=-1, keepdims=True)
    p = jnp.exp(s - m)                                    # EUP
    l = jnp.sum(p, axis=-1, keepdims=True)
    o_h = lax.dot_general(p.astype(v.dtype), v, (((1,), (0,)), ((), ())),
                          preferred_element_type=jnp.float32)      # (tq, hd) f32
    o_h = o_h * pl.reciprocal(l, approx=True)             # EUP slot: ~free

    # Fused output projection: this head's slice of Wproj.T, accumulated.
    acc_ref[...] += lax.dot_general(
        o_h.astype(wp_ref.dtype), wp_ref[...], (((1,), (0,)), ((), ())),
        preferred_element_type=jnp.float32)               # (tq, C)

    @pl.when(h == pl.num_programs(2) - 1)
    def _finalize():
        o_ref[0] = acc_ref[...].astype(o_ref.dtype)


def _attention(qkv, wp_t, bias2d, *, num_heads, n_valid, block_q, out_dtype):
    B, n_slots, n_pad, hd = qkv.shape
    C = wp_t.shape[1]
    H = num_heads
    q_tiles = n_pad // block_q
    grid = (B, q_tiles, H)
    mask_kv = (n_valid != n_pad)

    def q_map(b, qi, h):    return (b, h, qi, 0)
    def k_map(b, qi, h):    return (b, H + h, 0, 0)
    def v_map(b, qi, h):    return (b, 2 * H + h, 0, 0)
    def wp_map(b, qi, h):   return (h, 0)
    def bias_map(b, qi, h): return (0, 0)
    def out_map(b, qi, h):  return (b, qi, 0)

    kernel = functools.partial(_attn_proj_kernel, n_valid=n_valid, mask_kv=mask_kv)
    flops = 4 * B * H * n_pad * n_pad * hd + 2 * B * n_pad * C * C
    bytes_accessed = int(qkv.size * qkv.dtype.itemsize * q_tiles
                         + B * q_tiles * wp_t.size * wp_t.dtype.itemsize
                         + B * n_pad * C * jnp.dtype(out_dtype).itemsize)

    return pl.pallas_call(
        kernel,
        out_shape=jax.ShapeDtypeStruct((B, n_pad, C), out_dtype),
        grid_spec=pltpu.PrefetchScalarGridSpec(
            num_scalar_prefetch=0,
            grid=grid,
            in_specs=[
                pl.BlockSpec((1, 1, block_q, hd), q_map),   # q, head h
                pl.BlockSpec((1, 1, n_pad, hd), k_map),     # k, head h (full seq)
                pl.BlockSpec((1, 1, n_pad, hd), v_map),     # v, head h (full seq)
                pl.BlockSpec((hd, C), wp_map),              # Wproj.T rows of head h
                pl.BlockSpec((1, C), bias_map),             # resident bias
            ],
            out_specs=pl.BlockSpec((1, block_q, C), out_map),
            scratch_shapes=[pltpu.VMEM((block_q, C), jnp.float32)],
        ),
        compiler_params=pltpu.CompilerParams(
            dimension_semantics=("parallel", "parallel", "arbitrary"),
            vmem_limit_bytes=_VMEM_LIMIT),
        cost_estimate=pl.CostEstimate(
            flops=flops,
            transcendentals=B * H * n_pad * n_pad,
            bytes_accessed=bytes_accessed),
    )(qkv, qkv, qkv, wp_t, bias2d)


# ---------------------------------------------------------------------------
# Wrapper: full Attention forward
# ---------------------------------------------------------------------------
def attention_forward(x, w_qkv, w_proj, b_proj, *, num_heads,
                      use_bf16_matmul=True, block_q=None):
    """timm ViT Attention forward (eval mode; qkv_bias=False, qk_norm=False)."""
    B, N, C = x.shape
    assert C % num_heads == 0, "dim must be divisible by num_heads"
    hd = C // num_heads
    assert hd % 8 == 0, "head_dim must be a multiple of 8"
    scale = hd ** -0.5

    out_dtype = x.dtype
    cdtype = jnp.bfloat16 if use_bf16_matmul else x.dtype

    # Pad sequence length to a lane/sublane friendly multiple of 128.
    n_pad = -(-N // 128) * 128
    if block_q is None:
        if n_pad <= 512:
            block_q = n_pad            # whole sequence per program (ViT sizes)
        elif n_pad % 256 == 0:
            block_q = 256
        else:
            block_q = 128
    assert n_pad % block_q == 0
    if n_pad != N:
        x = jnp.pad(x, ((0, 0), (0, n_pad - N), (0, 0)))

    # One-time weight prep (tiny (3C,C)/(C,C) ops): fold the softmax scale into
    # the q rows of Wqkv, pre-transpose Wproj, cast MXU operands to bf16.
    w_qkv_f = w_qkv.astype(jnp.float32)
    w_qkv_eff = jnp.concatenate([w_qkv_f[:C] * scale, w_qkv_f[C:]],
                                axis=0).astype(cdtype)
    wp_t = jnp.transpose(w_proj).astype(cdtype)          # (C_in, C_out)
    bias2d = b_proj.astype(jnp.float32).reshape(1, C)

    # 1) fused QKV projection, already in per-head (B, 3H, n_pad, hd) layout.
    qkv = _qkv_proj(x, w_qkv_eff, num_heads=num_heads, block_n=block_q,
                    out_dtype=cdtype)

    # 2) attention + fused output projection / bias -> (B, n_pad, C).
    y = _attention(qkv, wp_t, bias2d, num_heads=num_heads, n_valid=N,
                   block_q=block_q, out_dtype=out_dtype)
    return y[:, :N, :]


# ---------------------------------------------------------------------------
# Self-test
# ---------------------------------------------------------------------------
if __name__ == "__main__":
    key = jax.random.PRNGKey(0)
    kx, kw1, kw2, kb = jax.random.split(key, 4)

    # Small ViT-like config: C=256, 4 heads -> head_dim=64, N=197 (cls + 14x14).
    B, N, C, H = 2, 197, 256, 4
    dtype = jnp.float32

    x = jax.random.normal(kx, (B, N, C), dtype=dtype)
    w_qkv = jax.random.normal(kw1, (3 * C, C), dtype=dtype) * 0.02  # torch layout
    w_proj = jax.random.normal(kw2, (C, C), dtype=dtype) * 0.02
    b_proj = jax.random.normal(kb, (C,), dtype=dtype) * 0.02

    fwd = jax.jit(functools.partial(attention_forward, num_heads=H))
    y = jax.block_until_ready(fwd(x, w_qkv, w_proj, b_proj))

    # Pure-JAX reference (mirrors the PyTorch module, eval mode).
    def reference(x, w_qkv, w_proj, b_proj, num_heads):
        B, N, C = x.shape
        hd = C // num_heads
        qkv = (x @ w_qkv.T).reshape(B, N, 3, num_heads, hd)
        qkv = jnp.transpose(qkv, (2, 0, 3, 1, 4))
        q, k, v = qkv[0], qkv[1], qkv[2]
        attn = jax.nn.softmax((q * hd ** -0.5) @ jnp.swapaxes(k, -1, -2), axis=-1)
        out = jnp.transpose(attn @ v, (0, 2, 1, 3)).reshape(B, N, C)
        return out @ w_proj.T + b_proj

    y_ref = reference(x, w_qkv, w_proj, b_proj, H)
    max_err = float(jnp.max(jnp.abs(y - y_ref)))
    if not (max_err < 5e-2):
        raise AssertionError(f"Pallas attention mismatch: max abs err = {max_err}")

    print("KERNEL_OK")
</pallas_src>

<mosaic_0001>
module attributes {stable_mosaic.version = 11 : i64} {
  func.func @_attn_proj_kernel(%arg0: i32, %arg1: i32, %arg2: i32, %arg3: memref<1x1x256x64xbf16, #tpu.memory_space<vmem>>, %arg4: memref<1x1x256x64xbf16, #tpu.memory_space<vmem>>, %arg5: memref<1x1x256x64xbf16, #tpu.memory_space<vmem>>, %arg6: memref<64x256xbf16, #tpu.memory_space<vmem>>, %arg7: memref<1x256xf32, #tpu.memory_space<vmem>>, %arg8: memref<1x256x256xf32, #tpu.memory_space<vmem>>, %arg9: memref<256x256xf32, #tpu.memory_space<vmem>>) attributes {dimension_semantics = [#tpu.dimension_semantics<parallel>, #tpu.dimension_semantics<parallel>, #tpu.dimension_semantics<arbitrary>], iteration_bounds = array<i64: 2, 1, 4>, scalar_prefetch = 0 : i64, scratch_operands = 1 : i64, tpu.core_type = #tpu.core_type<tc>, window_params = [{transform_indices = @transform_0, window_bounds = array<i64: 1, 1, 256, 64>}, {transform_indices = @transform_1, window_bounds = array<i64: 1, 1, 256, 64>}, {transform_indices = @transform_2, window_bounds = array<i64: 1, 1, 256, 64>}, {transform_indices = @transform_3, window_bounds = array<i64: 64, 256>}, {pipeline_mode = #tpu.pipeline_mode<synchronous>, transform_indices = @transform_4, window_bounds = array<i64: 1, 256>}, {transform_indices = @transform_5, window_bounds = array<i64: 1, 256, 256>}]} {
    %c0_i32 = arith.constant 0 : i32
    %0 = arith.cmpi eq, %arg2, %c0_i32 : i32
    %1 = arith.extui %0 : i1 to i32
    %c0_i32_0 = arith.constant 0 : i32
    %2 = arith.cmpi ne, %1, %c0_i32_0 : i32
    scf.if %2 {
      %c0_24 = arith.constant 0 : index
      %c0_25 = arith.constant 0 : index
      %36 = vector.load %arg7[%c0_24, %c0_25] : memref<1x256xf32, #tpu.memory_space<vmem>>, vector<1x256xf32>
      %37 = vector.shape_cast %36 : vector<1x256xf32> to vector<1x256xf32>
      %38 = vector.broadcast %37 : vector<1x256xf32> to vector<256x256xf32>
      %c0_26 = arith.constant 0 : index
      %c0_27 = arith.constant 0 : index
      %39 = vector.load %arg9[%c0_26, %c0_27] : memref<256x256xf32, #tpu.memory_space<vmem>>, vector<256x256xf32>
      tpu.vector_store %arg9[%c0_26, %c0_27], %38 {strides = array<i32>} : memref<256x256xf32, #tpu.memory_space<vmem>>, vector<256x256xf32>,
    } else {
    }
    %c0 = arith.constant 0 : index
    %c0_1 = arith.constant 0 : index
    %c0_2 = arith.constant 0 : index
    %c0_3 = arith.constant 0 : index
    %3 = vector.load %arg3[%c0, %c0_1, %c0_2, %c0_3] : memref<1x1x256x64xbf16, #tpu.memory_space<vmem>>, vector<1x1x256x64xbf16>
    %4 = vector.shape_cast %3 : vector<1x1x256x64xbf16> to vector<256x64xbf16>
    %c0_4 = arith.constant 0 : index
    %c0_5 = arith.constant 0 : index
    %c0_6 = arith.constant 0 : index
    %c0_7 = arith.constant 0 : index
    %5 = vector.load %arg4[%c0_4, %c0_5, %c0_6, %c0_7] : memref<1x1x256x64xbf16, #tpu.memory_space<vmem>>, vector<1x1x256x64xbf16>
    %6 = vector.shape_cast %5 : vector<1x1x256x64xbf16> to vector<256x64xbf16>
    %c0_8 = arith.constant 0 : index
    %c0_9 = arith.constant 0 : index
    %c0_10 = arith.constant 0 : index
    %c0_11 = arith.constant 0 : index
    %7 = vector.load %arg5[%c0_8, %c0_9, %c0_10, %c0_11] : memref<1x1x256x64xbf16, #tpu.memory_space<vmem>>, vector<1x1x256x64xbf16>
    %8 = vector.shape_cast %7 : vector<1x1x256x64xbf16> to vector<256x64xbf16>
    %cst = arith.constant dense<0.000000e+00> : vector<256x256xf32>
    %9 = tpu.matmul %4, %6, %cst {dimension_numbers = #tpu.dot_dimension_numbers<[1], [1], [0], [0], [0, 0, 1, 0], [], []>} : vector<256x64xbf16>, vector<256x64xbf16>, vector<256x256xf32> -> vector<256x256xf32>
    %10 = tpu.iota {dimensions = array<i32: 1>} : vector<256x256xi32>
    %c197_i32 = arith.constant 197 : i32
    %11 = vector.broadcast %c197_i32 : i32 to vector<256x256xi32>
    %12 = arith.cmpi slt, %10, %11 : vector<256x256xi32>
    %cst_12 = arith.constant -1.000000e+30 : f32
    %13 = vector.broadcast %cst_12 : f32 to vector<256x256xf32>
    %14 = arith.select %12, %9, %13 : vector<256x256xi1>, vector<256x256xf32>
    %cst_13 = arith.constant dense<0xFF800000> : vector<256xf32>
    %15 = vector.multi_reduction <maximumf>, %14, %cst_13 [1] : vector<256x256xf32> to vector<256xf32>
    %16 = vector.shape_cast %15 : vector<256xf32> to vector<256x1xf32>
    %17 = vector.broadcast %16 : vector<256x1xf32> to vector<256x256xf32>
    %18 = arith.subf %14, %17 : vector<256x256xf32>
    %19 = math.exp %18 : vector<256x256xf32>
    %cst_14 = arith.constant dense<0.000000e+00> : vector<256xf32>
    %20 = vector.multi_reduction <add>, %19, %cst_14 [1] : vector<256x256xf32> to vector<256xf32>
    %21 = vector.shape_cast %20 : vector<256xf32> to vector<256x1xf32>
    %22 = arith.truncf %19 : vector<256x256xf32> to vector<256x256xbf16>
    %cst_15 = arith.constant dense<0.000000e+00> : vector<256x64xf32>
    %23 = tpu.matmul %22, %8, %cst_15 {dimension_numbers = #tpu.dot_dimension_numbers<[1], [0], [0], [1], [0, 0, 1, 1], [], []>} : vector<256x256xbf16>, vector<256x64xbf16>, vector<256x64xf32> -> vector<256x64xf32>
    %24 = tpu.reciprocal %21 {approx = true} : vector<256x1xf32> -> vector<256x1xf32>
    %25 = vector.broadcast %24 : vector<256x1xf32> to vector<256x64xf32>
    %26 = arith.mulf %23, %25 : vector<256x64xf32>
    %c0_16 = arith.constant 0 : index
    %c0_17 = arith.constant 0 : index
    %27 = vector.load %arg9[%c0_16, %c0_17] : memref<256x256xf32, #tpu.memory_space<vmem>>, vector<256x256xf32>
    %28 = arith.truncf %26 : vector<256x64xf32> to vector<256x64xbf16>
    %c0_18 = arith.constant 0 : index
    %c0_19 = arith.constant 0 : index
    %29 = vector.load %arg6[%c0_18, %c0_19] : memref<64x256xbf16, #tpu.memory_space<vmem>>, vector<64x256xbf16>
    %cst_20 = arith.constant dense<0.000000e+00> : vector<256x256xf32>
    %30 = tpu.matmul %28, %29, %cst_20 {dimension_numbers = #tpu.dot_dimension_numbers<[1], [0], [0], [1], [0, 0, 1, 1], [], []>} : vector<256x64xbf16>, vector<64x256xbf16>, vector<256x256xf32> -> vector<256x256xf32>
    %31 = arith.addf %27, %30 : vector<256x256xf32>
    %c0_21 = arith.constant 0 : index
    %c0_22 = arith.constant 0 : index
    %32 = vector.load %arg9[%c0_21, %c0_22] : memref<256x256xf32, #tpu.memory_space<vmem>>, vector<256x256xf32>
    tpu.vector_store %arg9[%c0_21, %c0_22], %31 {strides = array<i32>} : memref<256x256xf32, #tpu.memory_space<vmem>>, vector<256x256xf32>,
    %c3_i32 = arith.constant 3 : i32
    %33 = arith.cmpi eq, %arg2, %c3_i32 : i32
    %34 = arith.extui %33 : i1 to i32
    %c0_i32_23 = arith.constant 0 : i32
    %35 = arith.cmpi ne, %34, %c0_i32_23 : i32
    scf.if %35 {
      %c0_24 = arith.constant 0 : index
      %c0_25 = arith.constant 0 : index
      %36 = vector.load %arg9[%c0_24, %c0_25] : memref<256x256xf32, #tpu.memory_space<vmem>>, vector<256x256xf32>
      %c0_26 = arith.constant 0 : index
      %c0_27 = arith.constant 0 : index
      %c0_28 = arith.constant 0 : index
      %37 = vector.load %arg8[%c0_26, %c0_27, %c0_28] : memref<1x256x256xf32, #tpu.memory_space<vmem>>, vector<1x256x256xf32>
      %38 = vector.shape_cast %37 : vector<1x256x256xf32> to vector<256x256xf32>
      %39 = vector.shape_cast %36 : vector<256x256xf32> to vector<1x256x256xf32>
      tpu.vector_store %arg8[%c0_26, %c0_27, %c0_28], %39 {strides = array<i32>} : memref<1x256x256xf32, #tpu.memory_space<vmem>>, vector<1x256x256xf32>,
    } else {
    }
    return
  }
  func.func @transform_0(%arg0: i32, %arg1: i32, %arg2: i32) -> (i32, i32, i32, i32) {
    %c0_i32 = arith.constant 0 : i32
    %c0_i32_0 = arith.constant 0 : i32
    return %arg0, %arg2, %arg1, %c0_i32 : i32, i32, i32, i32
  }
  func.func @transform_1(%arg0: i32, %arg1: i32, %arg2: i32) -> (i32, i32, i32, i32) {
    %c4_i32 = arith.constant 4 : i32
    %0 = arith.addi %c4_i32, %arg2 : i32
    %c0_i32 = arith.constant 0 : i32
    %c0_i32_0 = arith.constant 0 : i32
    %c0_i32_1 = arith.constant 0 : i32
    return %arg0, %0, %c0_i32, %c0_i32_0 : i32, i32, i32, i32
  }
  func.func @transform_2(%arg0: i32, %arg1: i32, %arg2: i32) -> (i32, i32, i32, i32) {
    %c8_i32 = arith.constant 8 : i32
    %0 = arith.addi %c8_i32, %arg2 : i32
    %c0_i32 = arith.constant 0 : i32
    %c0_i32_0 = arith.constant 0 : i32
    %c0_i32_1 = arith.constant 0 : i32
    return %arg0, %0, %c0_i32, %c0_i32_0 : i32, i32, i32, i32
  }
  func.func @transform_3(%arg0: i32, %arg1: i32, %arg2: i32) -> (i32, i32) {
    %c0_i32 = arith.constant 0 : i32
    %c0_i32_0 = arith.constant 0 : i32
    return %arg2, %c0_i32 : i32, i32
  }
  func.func @transform_4(%arg0: i32, %arg1: i32, %arg2: i32) -> (i32, i32) {
    %c0_i32 = arith.constant 0 : i32
    %c0_i32_0 = arith.constant 0 : i32
    %c0_i32_1 = arith.constant 0 : i32
    return %c0_i32, %c0_i32_0 : i32, i32
  }
  func.func @transform_5(%arg0: i32, %arg1: i32, %arg2: i32) -> (i32, i32, i32) {
    %c0_i32 = arith.constant 0 : i32
    %c0_i32_0 = arith.constant 0 : i32
    return %arg0, %arg1, %c0_i32 : i32, i32, i32
  }
}

module attributes {stable_mosaic.version = 11 : i64} {
  func.func @_qkv_proj_kernel(%arg0: i32, %arg1: i32, %arg2: memref<1x256x256xf32, #tpu.memory_space<vmem>>, %arg3: memref<768x256xbf16, #tpu.memory_space<vmem>>, %arg4: memref<1x12x256x64xbf16, #tpu.memory_space<vmem>>) attributes {dimension_semantics = [#tpu.dimension_semantics<parallel>, #tpu.dimension_semantics<parallel>], iteration_bounds = array<i64: 2, 1>, scalar_prefetch = 0 : i64, scratch_operands = 0 : i64, tpu.core_type = #tpu.core_type<tc>, window_params = [{transform_indices = @transform_0, window_bounds = array<i64: 1, 256, 256>}, {pipeline_mode = #tpu.pipeline_mode<synchronous>, transform_indices = @transform_1, window_bounds = array<i64: 768, 256>}, {transform_indices = @transform_2, window_bounds = array<i64: 1, 12, 256, 64>}]} {
    %c0 = arith.constant 0 : index
    %c0_0 = arith.constant 0 : index
    %c0_1 = arith.constant 0 : index
    %0 = vector.load %arg2[%c0, %c0_0, %c0_1] : memref<1x256x256xf32, #tpu.memory_space<vmem>>, vector<1x256x256xf32>
    %1 = vector.shape_cast %0 : vector<1x256x256xf32> to vector<256x256xf32>
    %2 = arith.truncf %1 : vector<256x256xf32> to vector<256x256xbf16>
    %c0_2 = arith.constant 0 : index
    %c0_3 = arith.constant 0 : index
    %3 = vector.load %arg3[%c0_2, %c0_3] : memref<768x256xbf16, #tpu.memory_space<vmem>>, vector<768x256xbf16>
    %cst = arith.constant dense<0.000000e+00> : vector<256x768xf32>
    %4 = tpu.matmul %2, %3, %cst {dimension_numbers = #tpu.dot_dimension_numbers<[1], [1], [0], [0], [0, 0, 1, 0], [], []>} : vector<256x256xbf16>, vector<768x256xbf16>, vector<256x768xf32> -> vector<256x768xf32>
    %5 = vector.extract_strided_slice %4 {offsets = [0, 0], sizes = [256, 64], strides = [1, 1]} : vector<256x768xf32> to vector<256x64xf32>
    %6 = arith.truncf %5 : vector<256x64xf32> to vector<256x64xbf16>
    %c0_4 = arith.constant 0 : index
    %c0_5 = arith.constant 0 : index
    %c0_6 = arith.constant 0 : index
    %c0_7 = arith.constant 0 : index
    %7 = vector.load %arg4[%c0_4, %c0_5, %c0_6, %c0_7] : memref<1x12x256x64xbf16, #tpu.memory_space<vmem>>, vector<1x1x256x64xbf16>
    %8 = vector.shape_cast %7 : vector<1x1x256x64xbf16> to vector<256x64xbf16>
    %9 = vector.shape_cast %6 : vector<256x64xbf16> to vector<1x1x256x64xbf16>
    tpu.vector_store %arg4[%c0_4, %c0_5, %c0_6, %c0_7], %9 {strides = array<i32>} : memref<1x12x256x64xbf16, #tpu.memory_space<vmem>>, vector<1x1x256x64xbf16>,
    %10 = vector.extract_strided_slice %4 {offsets = [0, 64], sizes = [256, 64], strides = [1, 1]} : vector<256x768xf32> to vector<256x64xf32>
    %11 = arith.truncf %10 : vector<256x64xf32> to vector<256x64xbf16>
    %c0_8 = arith.constant 0 : index
    %c1 = arith.constant 1 : index
    %c0_9 = arith.constant 0 : index
    %c0_10 = arith.constant 0 : index
    %12 = vector.load %arg4[%c0_8, %c1, %c0_9, %c0_10] : memref<1x12x256x64xbf16, #tpu.memory_space<vmem>>, vector<1x1x256x64xbf16>
    %13 = vector.shape_cast %12 : vector<1x1x256x64xbf16> to vector<256x64xbf16>
    %14 = vector.shape_cast %11 : vector<256x64xbf16> to vector<1x1x256x64xbf16>
    tpu.vector_store %arg4[%c0_8, %c1, %c0_9, %c0_10], %14 {strides = array<i32>} : memref<1x12x256x64xbf16, #tpu.memory_space<vmem>>, vector<1x1x256x64xbf16>,
    %15 = vector.extract_strided_slice %4 {offsets = [0, 128], sizes = [256, 64], strides = [1, 1]} : vector<256x768xf32> to vector<256x64xf32>
    %16 = arith.truncf %15 : vector<256x64xf32> to vector<256x64xbf16>
    %c0_11 = arith.constant 0 : index
    %c2 = arith.constant 2 : index
    %c0_12 = arith.constant 0 : index
    %c0_13 = arith.constant 0 : index
    %17 = vector.load %arg4[%c0_11, %c2, %c0_12, %c0_13] : memref<1x12x256x64xbf16, #tpu.memory_space<vmem>>, vector<1x1x256x64xbf16>
    %18 = vector.shape_cast %17 : vector<1x1x256x64xbf16> to vector<256x64xbf16>
    %19 = vector.shape_cast %16 : vector<256x64xbf16> to vector<1x1x256x64xbf16>
    tpu.vector_store %arg4[%c0_11, %c2, %c0_12, %c0_13], %19 {strides = array<i32>} : memref<1x12x256x64xbf16, #tpu.memory_space<vmem>>, vector<1x1x256x64xbf16>,
    %20 = vector.extract_strided_slice %4 {offsets = [0, 192], sizes = [256, 64], strides = [1, 1]} : vector<256x768xf32> to vector<256x64xf32>
    %21 = arith.truncf %20 : vector<256x64xf32> to vector<256x64xbf16>
    %c0_14 = arith.constant 0 : index
    %c3 = arith.constant 3 : index
    %c0_15 = arith.constant 0 : index
    %c0_16 = arith.constant 0 : index
    %22 = vector.load %arg4[%c0_14, %c3, %c0_15, %c0_16] : memref<1x12x256x64xbf16, #tpu.memory_space<vmem>>, vector<1x1x256x64xbf16>
    %23 = vector.shape_cast %22 : vector<1x1x256x64xbf16> to vector<256x64xbf16>
    %24 = vector.shape_cast %21 : vector<256x64xbf16> to vector<1x1x256x64xbf16>
    tpu.vector_store %arg4[%c0_14, %c3, %c0_15, %c0_16], %24 {strides = array<i32>} : memref<1x12x256x64xbf16, #tpu.memory_space<vmem>>, vector<1x1x256x64xbf16>,
    %25 = vector.extract_strided_slice %4 {offsets = [0, 256], sizes = [256, 64], strides = [1, 1]} : vector<256x768xf32> to vector<256x64xf32>
    %26 = arith.truncf %25 : vector<256x64xf32> to vector<256x64xbf16>
    %c0_17 = arith.constant 0 : index
    %c4 = arith.constant 4 : index
    %c0_18 = arith.constant 0 : index
    %c0_19 = arith.constant 0 : index
    %27 = vector.load %arg4[%c0_17, %c4, %c0_18, %c0_19] : memref<1x12x256x64xbf16, #tpu.memory_space<vmem>>, vector<1x1x256x64xbf16>
    %28 = vector.shape_cast %27 : vector<1x1x256x64xbf16> to vector<256x64xbf16>
    %29 = vector.shape_cast %26 : vector<256x64xbf16> to vector<1x1x256x64xbf16>
    tpu.vector_store %arg4[%c0_17, %c4, %c0_18, %c0_19], %29 {strides = array<i32>} : memref<1x12x256x64xbf16, #tpu.memory_space<vmem>>, vector<1x1x256x64xbf16>,
    %30 = vector.extract_strided_slice %4 {offsets = [0, 320], sizes = [256, 64], strides = [1, 1]} : vector<256x768xf32> to vector<256x64xf32>
    %31 = arith.truncf %30 : vector<256x64xf32> to vector<256x64xbf16>
    %c0_20 = arith.constant 0 : index
    %c5 = arith.constant 5 : index
    %c0_21 = arith.constant 0 : index
    %c0_22 = arith.constant 0 : index
    %32 = vector.load %arg4[%c0_20, %c5, %c0_21, %c0_22] : memref<1x12x256x64xbf16, #tpu.memory_space<vmem>>, vector<1x1x256x64xbf16>
    %33 = vector.shape_cast %32 : vector<1x1x256x64xbf16> to vector<256x64xbf16>
    %34 = vector.shape_cast %31 : vector<256x64xbf16> to vector<1x1x256x64xbf16>
    tpu.vector_store %arg4[%c0_20, %c5, %c0_21, %c0_22], %34 {strides = array<i32>} : memref<1x12x256x64xbf16, #tpu.memory_space<vmem>>, vector<1x1x256x64xbf16>,
    %35 = vector.extract_strided_slice %4 {offsets = [0, 384], sizes = [256, 64], strides = [1, 1]} : vector<256x768xf32> to vector<256x64xf32>
    %36 = arith.truncf %35 : vector<256x64xf32> to vector<256x64xbf16>
    %c0_23 = arith.constant 0 : index
    %c6 = arith.constant 6 : index
    %c0_24 = arith.constant 0 : index
    %c0_25 = arith.constant 0 : index
    %37 = vector.load %arg4[%c0_23, %c6, %c0_24, %c0_25] : memref<1x12x256x64xbf16, #tpu.memory_space<vmem>>, vector<1x1x256x64xbf16>
    %38 = vector.shape_cast %37 : vector<1x1x256x64xbf16> to vector<256x64xbf16>
    %39 = vector.shape_cast %36 : vector<256x64xbf16> to vector<1x1x256x64xbf16>
    tpu.vector_store %arg4[%c0_23, %c6, %c0_24, %c0_25], %39 {strides = array<i32>} : memref<1x12x256x64xbf16, #tpu.memory_space<vmem>>, vector<1x1x256x64xbf16>,
    %40 = vector.extract_strided_slice %4 {offsets = [0, 448], sizes = [256, 64], strides = [1, 1]} : vector<256x768xf32> to vector<256x64xf32>
    %41 = arith.truncf %40 : vector<256x64xf32> to vector<256x64xbf16>
    %c0_26 = arith.constant 0 : index
    %c7 = arith.constant 7 : index
    %c0_27 = arith.constant 0 : index
    %c0_28 = arith.constant 0 : index
    %42 = vector.load %arg4[%c0_26, %c7, %c0_27, %c0_28] : memref<1x12x256x64xbf16, #tpu.memory_space<vmem>>, vector<1x1x256x64xbf16>
    %43 = vector.shape_cast %42 : vector<1x1x256x64xbf16> to vector<256x64xbf16>
    %44 = vector.shape_cast %41 : vector<256x64xbf16> to vector<1x1x256x64xbf16>
    tpu.vector_store %arg4[%c0_26, %c7, %c0_27, %c0_28], %44 {strides = array<i32>} : memref<1x12x256x64xbf16, #tpu.memory_space<vmem>>, vector<1x1x256x64xbf16>,
    %45 = vector.extract_strided_slice %4 {offsets = [0, 512], sizes = [256, 64], strides = [1, 1]} : vector<256x768xf32> to vector<256x64xf32>
    %46 = arith.truncf %45 : vector<256x64xf32> to vector<256x64xbf16>
    %c0_29 = arith.constant 0 : index
    %c8 = arith.constant 8 : index
    %c0_30 = arith.constant 0 : index
    %c0_31 = arith.constant 0 : index
    %47 = vector.load %arg4[%c0_29, %c8, %c0_30, %c0_31] : memref<1x12x256x64xbf16, #tpu.memory_space<vmem>>, vector<1x1x256x64xbf16>
    %48 = vector.shape_cast %47 : vector<1x1x256x64xbf16> to vector<256x64xbf16>
    %49 = vector.shape_cast %46 : vector<256x64xbf16> to vector<1x1x256x64xbf16>
    tpu.vector_store %arg4[%c0_29, %c8, %c0_30, %c0_31], %49 {strides = array<i32>} : memref<1x12x256x64xbf16, #tpu.memory_space<vmem>>, vector<1x1x256x64xbf16>,
    %50 = vector.extract_strided_slice %4 {offsets = [0, 576], sizes = [256, 64], strides = [1, 1]} : vector<256x768xf32> to vector<256x64xf32>
    %51 = arith.truncf %50 : vector<256x64xf32> to vector<256x64xbf16>
    %c0_32 = arith.constant 0 : index
    %c9 = arith.constant 9 : index
    %c0_33 = arith.constant 0 : index
    %c0_34 = arith.constant 0 : index
    %52 = vector.load %arg4[%c0_32, %c9, %c0_33, %c0_34] : memref<1x12x256x64xbf16, #tpu.memory_space<vmem>>, vector<1x1x256x64xbf16>
    %53 = vector.shape_cast %52 : vector<1x1x256x64xbf16> to vector<256x64xbf16>
    %54 = vector.shape_cast %51 : vector<256x64xbf16> to vector<1x1x256x64xbf16>
    tpu.vector_store %arg4[%c0_32, %c9, %c0_33, %c0_34], %54 {strides = array<i32>} : memref<1x12x256x64xbf16, #tpu.memory_space<vmem>>, vector<1x1x256x64xbf16>,
    %55 = vector.extract_strided_slice %4 {offsets = [0, 640], sizes = [256, 64], strides = [1, 1]} : vector<256x768xf32> to vector<256x64xf32>
    %56 = arith.truncf %55 : vector<256x64xf32> to vector<256x64xbf16>
    %c0_35 = arith.constant 0 : index
    %c10 = arith.constant 10 : index
    %c0_36 = arith.constant 0 : index
    %c0_37 = arith.constant 0 : index
    %57 = vector.load %arg4[%c0_35, %c10, %c0_36, %c0_37] : memref<1x12x256x64xbf16, #tpu.memory_space<vmem>>, vector<1x1x256x64xbf16>
    %58 = vector.shape_cast %57 : vector<1x1x256x64xbf16> to vector<256x64xbf16>
    %59 = vector.shape_cast %56 : vector<256x64xbf16> to vector<1x1x256x64xbf16>
    tpu.vector_store %arg4[%c0_35, %c10, %c0_36, %c0_37], %59 {strides = array<i32>} : memref<1x12x256x64xbf16, #tpu.memory_space<vmem>>, vector<1x1x256x64xbf16>,
    %60 = vector.extract_strided_slice %4 {offsets = [0, 704], sizes = [256, 64], strides = [1, 1]} : vector<256x768xf32> to vector<256x64xf32>
    %61 = arith.truncf %60 : vector<256x64xf32> to vector<256x64xbf16>
    %c0_38 = arith.constant 0 : index
    %c11 = arith.constant 11 : index
    %c0_39 = arith.constant 0 : index
    %c0_40 = arith.constant 0 : index
    %62 = vector.load %arg4[%c0_38, %c11, %c0_39, %c0_40] : memref<1x12x256x64xbf16, #tpu.memory_space<vmem>>, vector<1x1x256x64xbf16>
    %63 = vector.shape_cast %62 : vector<1x1x256x64xbf16> to vector<256x64xbf16>
    %64 = vector.shape_cast %61 : vector<256x64xbf16> to vector<1x1x256x64xbf16>
    tpu.vector_store %arg4[%c0_38, %c11, %c0_39, %c0_40], %64 {strides = array<i32>} : memref<1x12x256x64xbf16, #tpu.memory_space<vmem>>, vector<1x1x256x64xbf16>,
    return
  }
  func.func @transform_0(%arg0: i32, %arg1: i32) -> (i32, i32, i32) {
    %c0_i32 = arith.constant 0 : i32
    %c0_i32_0 = arith.constant 0 : i32
    return %arg0, %arg1, %c0_i32 : i32, i32, i32
  }
  func.func @transform_1(%arg0: i32, %arg1: i32) -> (i32, i32) {
    %c0_i32 = arith.constant 0 : i32
    %c0_i32_0 = arith.constant 0 : i32
    %c0_i32_1 = arith.constant 0 : i32
    return %c0_i32, %c0_i32_0 : i32, i32
  }
  func.func @transform_2(%arg0: i32, %arg1: i32) -> (i32, i32, i32, i32) {
    %c0_i32 = arith.constant 0 : i32
    %c0_i32_0 = arith.constant 0 : i32
    %c0_i32_1 = arith.constant 0 : i32
    return %arg0, %c0_i32, %arg1, %c0_i32_0 : i32, i32, i32, i32
  }
}

</mosaic_0001>

<bundles_post_ra>
// kernel: attention_forward.3
= control target key start
LH: loop header
LB: loop body
LE: loop exit
PB: predicated region body
PF: predicated region fallthrough
CT: control target
= control target key end

     0   :  { %s3274_s18 = smov 0   ;;  %s3276_s19 = smov 0   ;;  %s3919_s0 = inlined_call_operand.vmem [shape: bf16[2,12,256,64], index: 0, kind: input, shape index: {}, may-alias: {0,1,2}]   ;;  %s3920_s1 = inlined_call_operand.vmem [shape: bf16[2,12,256,64], index: 1, kind: input, shape index: {}, may-alias: {0,1,2}]   ;;  %s3921_s2 = inlined_call_operand.vmem [shape: bf16[2,12,256,64], index: 2, kind: input, shape index: {}, may-alias: {0,1,2}]   ;;  %s3922_s3 = inlined_call_operand.vmem [shape: bf16[256,256], index: 3, kind: input, shape index: {}]   ;;  %s3923_s4 = inlined_call_operand.vmem [shape: f32[1,256], index: 4, kind: input, shape index: {}]   ;;  %s3924_s5 = inlined_call_operand.vmem [shape: f32[2,256,256], index: 5, kind: output, shape index: {}]  }
   0x1   :  { %3938 = sst [smem:[#allocation18_spill]] %s3919_s0  ;;  %s3278_s20 = smov 0  }
   0x2   :  { %s3280_s21 = smov 0   ;;  %s3282_s22 = smov 0  }
   0x3 LB: > { %s27_s23 = sadd.s32 1, %s3233_s20  ;;  %s34_s24 = sadd.s32 1, %s3237_s21  ;;  %s3241_s22 = sphi %s3282_s22, %s15_s22   ;;  %s3237_s21 = sphi %s3280_s21, %s3974_s21   ;;  %s3233_s20 = sphi %s3278_s20, %s3973_s20   ;;  %s3229_s19 = sphi %s3276_s19, %s3972_s19   ;;  %s3225_s18 = sphi %s3274_s18, %s3971_s18  }
   0x4   : > { %p28_p0 = scmp.ge.s32.totalorder %s27_s23, 4  ;;  %p2619_p1 = scmp.ge.s32.totalorder %s3241_s22, 1 }
   0x5   : > { %p273_p2 = scmp.lt.s32.totalorder %s3241_s22, 9 }
   0x6   : > { %s3976_s23 = smov (%p28_p0, %s27_s23), 0  ;;  %s3978_s24 = smov (!%p28_p0, %s34_s24), %s3237_s21 }
   0x7   : > { %3939 = sst [smem:[#allocation3_spill]] %s3976_s23  ;;  %p274_p3 = pnand %p2619_p1, %p273_p2 }
   0x8   : > { %p36_p4 = scmp.ge.s32.totalorder %s3978_s24, 2 }
   0x9   : > { %277 = sbr.rel (%p274_p3) target bundleno = 1064 (0x428), region = 40 }
   0xa   : > { %s3980_s24 = smov (%p36_p4, %s3978_s24), 0 }
   0xb   : > { %3940 = sst [smem:[#allocation4_spill]] %s3980_s24 }
   0xe   : > { %p341_p5 = scmp.lt.s32.totalorder %s3229_s19, 1  ;;  %p343_p6 = scmp.lt.s32.totalorder %s3225_s18, 11 }
   0xf   : > { %s354_s25 = sadd.s32 4, %s3225_s18  ;;  %s365_s26 = sadd.s32 8, %s3225_s18 }
  0x10   : > { %s3982_s19 = smov (!%p341_p5, %s3229_s19), 1  ;;  %p357_p7 = scmp.lt.s32.totalorder %s354_s25, 11 }
  0x11   : > { %s344_s27 = scalar_select %p343_p6, %s3225_s18, 11 }
  0x12   : > { %s2909_s28 = smul.u32 384, %s3982_s19  ;;  %p368_p8 = scmp.lt.s32.totalorder %s365_s26, 11 }
  0x13   : > { %s2620_s29 = sshll.u32 %s344_s27, 5  ;;  %s2626_s6 = sshll.u32 %s3225_s18, 3 }
  0x14   : > { %s350_s30 = sadd.s32 %s2909_s28, %s2620_s29  ;;  %p3311_p9 = scmp.lt.s32.totalorder %s2626_s6, 31 }
  0x15   : > { %s2621_s7 = sshll.u32 %s350_s30, 2  ;;  %s3942_s0 = sld [smem:[#allocation18_spill]] }
  0x16   : > { %s2724_s12 = sshll.u32 %s3982_s19, 9  ;;  %s3984_s25 = smov (!%p357_p7, %s354_s25), 11 }
  0x17   : > { %s3986_s26 = smov (!%p368_p8, %s365_s26), 11  ;;  %s2622_s13 = sshll.u32 %s3984_s25, 5 }
  0x18   : > { %s3323_s16 = scalar_lea.vmem %s3924_s5, %s2724_s12  ;;  %s361_s17 = sadd.s32 %s2909_s28, %s2622_s13 }
  0x19   : > { %s2624_s27 = sshll.u32 %s3986_s26, 5  ;;  %s2623_s29 = sshll.u32 %s361_s17, 2 }
  0x1a   : > { %s372_s30 = sadd.s32 %s2909_s28, %s2624_s27  ;;  %s3328_s9 = scalar_lea.vmem %s3920_s1, %s2623_s29 }
  0x1b   : > { %s3318_s11 = scalar_lea.vmem %s3942_s0, %s2621_s7  ;;  %s2625_s7 = sshll.u32 %s372_s30, 2 }
  0x1c   : > { %s3333_s0 = scalar_lea.vmem %s3921_s2, %s2625_s7  ;;  %s3988_s6 = smov (!%p3311_p9, %s2626_s6), 31 }
  0x1d   : > { %s2723_s25 = sshll.u32 %s3988_s6, 3  ;;  %p2631_p10 = scmp.ne.s32.totalorder %s3225_s18, 0 }
  0x1e   : > { %s3340_s26 = scalar_lea.vmem %s3922_s3, %s2723_s25 }
  0x1f   : > { %398 = sbr.rel (%p2631_p10) target bundleno = 76 (0x4c), region = 44 }
  0x24   : > { %v401_v0 = vlaneseq  ;;  %v399_v2 = vld [vmem:[%s3923_s4] sm:$0x3] }
  0x26   : > { %v402_v1 = vshrl.u32 %v401_v0, 7 }
  0x28   : > { %v403_v3 = vsub.s32 0, %v402_v1  ;;  %v407_v4 = vsub.s32 1, %v402_v1 }
  0x2a   : > { %v404_v5 = vrot.slane %v399_v2, %v403_v3  ;;  %v3346_v6 = vrot.slane %v399_v2, %v407_v4 }
  0x2c   : > { %411 = vst [vmem:[#allocation2 + $0xb0] sm:$0xff] %v404_v5  ;;  %413 = vst [vmem:[#allocation2 + $0xd8] sm:$0xff] %v404_v5 }
  0x2d   : > { %415 = vst [vmem:[#allocation2 + $0x50] sm:$0xff] %v404_v5  ;;  %417 = vst [vmem:[#allocation2 + $0x130] sm:$0xff] %v404_v5 }
  0x2e   : > { %419 = vst [vmem:[#allocation2 + $0x180] sm:$0xff] %v404_v5  ;;  %421 = vst [vmem:[#allocation2 + $0x118] sm:$0xff] %v404_v5 }
  0x2f   : > { %423 = vst [vmem:[#allocation2 + $0x120] sm:$0xff] %v404_v5  ;;  %425 = vst [vmem:[#allocation2 + $0x108] sm:$0xff] %v404_v5 }
  0x30   : > { %427 = vst [vmem:[#allocation2 + $0xe0] sm:$0xff] %v404_v5  ;;  %429 = vst [vmem:[#allocation2 + $0x138] sm:$0xff] %v404_v5 }
  0x31   : > { %431 = vst [vmem:[#allocation2 + $0x80] sm:$0xff] %v404_v5  ;;  %433 = vst [vmem:[#allocation2 + $0x1b8] sm:$0xff] %v404_v5 }
  0x32   : > { %435 = vst [vmem:[#allocation2 + $0x1e8] sm:$0xff] %v404_v5  ;;  %437 = vst [vmem:[#allocation2 + $0x160] sm:$0xff] %v404_v5 }
  0x33   : > { %439 = vst [vmem:[#allocation2 + $0x1e0] sm:$0xff] %v404_v5  ;;  %441 = vst [vmem:[#allocation2 + $0xf0] sm:$0xff] %v404_v5 }
  0x34   : > { %443 = vst [vmem:[#allocation2 + $0x148] sm:$0xff] %v404_v5  ;;  %445 = vst [vmem:[#allocation2 + $0x100] sm:$0xff] %v404_v5 }
  0x35   : > { %447 = vst [vmem:[#allocation2 + $0x40] sm:$0xff] %v404_v5  ;;  %449 = vst [vmem:[#allocation2 + $0x20] sm:$0xff] %v404_v5 }
  0x36   : > { %451 = vst [vmem:[#allocation2 + $0x1a0] sm:$0xff] %v404_v5  ;;  %453 = vst [vmem:[#allocation2 + $0xe8] sm:$0xff] %v404_v5 }
  0x37   : > { %455 = vst [vmem:[#allocation2 + $0x70] sm:$0xff] %v404_v5  ;;  %457 = vst [vmem:[#allocation2 + $0x1d8] sm:$0xff] %v404_v5 }
  0x38   : > { %459 = vst [vmem:[#allocation2 + $0xb8] sm:$0xff] %v404_v5  ;;  %461 = vst [vmem:[#allocation2 + $0xa8] sm:$0xff] %v404_v5 }
  0x39   : > { %463 = vst [vmem:[#allocation2 + $0x170] sm:$0xff] %v404_v5  ;;  %465 = vst [vmem:[#allocation2 + $0x68] sm:$0xff] %v404_v5 }
  0x3a   : > { %467 = vst [vmem:[#allocation2 + $0x198] sm:$0xff] %v404_v5  ;;  %469 = vst [vmem:[#allocation2 + $0xc0] sm:$0xff] %v404_v5 }
  0x3b   : > { %471 = vst [vmem:[#allocation2 + $0x158] sm:$0xff] %v404_v5  ;;  %473 = vst [vmem:[#allocation2 + $0x58] sm:$0xff] %v404_v5 }
  0x3c   : > { %412 = vst [vmem:[#allocation2 + $0x1b0] sm:$0xff] %v3346_v6  ;;  %414 = vst [vmem:[#allocation2 + $0x18] sm:$0xff] %v3346_v6 }
  0x3d   : > { %416 = vst [vmem:[#allocation2 + $0x168] sm:$0xff] %v3346_v6  ;;  %418 = vst [vmem:[#allocation2 + $0x48] sm:$0xff] %v3346_v6 }
  0x3e   : > { %420 = vst [vmem:[#allocation2 + $0x110] sm:$0xff] %v3346_v6  ;;  %422 = vst [vmem:[#allocation2 + $0x98] sm:$0xff] %v3346_v6 }
  0x3f   : > { %424 = vst [vmem:[#allocation2 + $0x150] sm:$0xff] %v3346_v6  ;;  %426 = vst [vmem:[#allocation2 + $0x60] sm:$0xff] %v3346_v6 }
  0x40   : > { %428 = vst [vmem:[#allocation2 + $0x188] sm:$0xff] %v3346_v6  ;;  %430 = vst [vmem:[#allocation2 + $0x140] sm:$0xff] %v3346_v6 }
  0x41   : > { %432 = vst [vmem:[#allocation2 + $0x1a8] sm:$0xff] %v3346_v6  ;;  %434 = vst [vmem:[#allocation2 + $0x28] sm:$0xff] %v3346_v6 }
  0x42   : > { %436 = vst [vmem:[#allocation2 + $0xf8] sm:$0xff] %v3346_v6  ;;  %438 = vst [vmem:[#allocation2 + $0x30] sm:$0xff] %v3346_v6 }
  0x43   : > { %440 = vst [vmem:[#allocation2] sm:$0xff] %v3346_v6  ;;  %442 = vst [vmem:[#allocation2 + $0x8] sm:$0xff] %v3346_v6 }
  0x44   : > { %444 = vst [vmem:[#allocation2 + $0x1d0] sm:$0xff] %v3346_v6  ;;  %446 = vst [vmem:[#allocation2 + $0xc8] sm:$0xff] %v3346_v6 }
  0x45   : > { %448 = vst [vmem:[#allocation2 + $0x1f8] sm:$0xff] %v3346_v6  ;;  %450 = vst [vmem:[#allocation2 + $0x128] sm:$0xff] %v3346_v6 }
  0x46   : > { %452 = vst [vmem:[#allocation2 + $0x1f0] sm:$0xff] %v3346_v6  ;;  %454 = vst [vmem:[#allocation2 + $0x78] sm:$0xff] %v3346_v6 }
  0x47   : > { %456 = vst [vmem:[#allocation2 + $0x90] sm:$0xff] %v3346_v6  ;;  %458 = vst [vmem:[#allocation2 + $0xd0] sm:$0xff] %v3346_v6 }
  0x48   : > { %460 = vst [vmem:[#allocation2 + $0x88] sm:$0xff] %v3346_v6  ;;  %462 = vst [vmem:[#allocation2 + $0x1c8] sm:$0xff] %v3346_v6 }
  0x49   : > { %464 = vst [vmem:[#allocation2 + $0x178] sm:$0xff] %v3346_v6  ;;  %466 = vst [vmem:[#allocation2 + $0x190] sm:$0xff] %v3346_v6 }
  0x4a   : > { %468 = vst [vmem:[#allocation2 + $0x38] sm:$0xff] %v3346_v6  ;;  %470 = vst [vmem:[#allocation2 + $0x1c0] sm:$0xff] %v3346_v6 }
  0x4b   : > { %472 = vst [vmem:[#allocation2 + $0x10] sm:$0xff] %v3346_v6  ;;  %474 = vst [vmem:[#allocation2 + $0xa0] sm:$0xff] %v3346_v6 }
  0x4c PF: > { %v2951_v7 = vld [vmem:[%s3328_s9 + $0x78] sm:$0xff]   ;;  %vm731_vm0 = vcmask 523264   ;;  %v2953_v9 = vld [vmem:[%s3328_s9 + $0x70] sm:$0xff]   ;;  %v2955_v13 = vld [vmem:[%s3328_s9 + $0x68] sm:$0xff]   ;;  %v1021_v57 = vlaneseq  ;;  %p2720_p11 = scmp.ne.s32.totalorder %s3225_s18, 3 }
  0x4d   : > { %v2952_v8 = vld [vmem:[%s3328_s9 + $0x38] sm:$0xff]   ;;  %2901 = vmatprep.subr.msk.bf16.mxu0 %vm731_vm0, %v2951_v7  ;;  %v2954_v11 = vld [vmem:[%s3328_s9 + $0x30] sm:$0xff]   ;;  %v2956_v14 = vld [vmem:[%s3328_s9 + $0x28] sm:$0xff]  }
  0x4e   : > { %v802_v10 = vsel %vm731_vm0, %v2952_v8, 0  ;;  %v799_v12 = vsel %vm731_vm0, %v2954_v11, 0  ;;  %v2967_v15 = vld [vmem:[%s3318_s11] sm:$0xff]   ;;  %v796_v16 = vsel %vm731_vm0, %v2956_v14, 0  ;;  %v2960_v19 = vld [vmem:[%s3328_s9 + $0x18] sm:$0xff]   ;;  %v2962_v23 = vld [vmem:[%s3328_s9 + $0x10] sm:$0xff]  }
  0x4f   : > { %2726 = vmatpush3.bf16.xpose.msra.mxu0 %v802_v10  ;;  %v2957_v17 = vld [vmem:[%s3328_s9 + $0x60] sm:$0xff]   ;;  %2741 = vmatprep.mubr.msk.bf16.mxu0 %vm731_vm0, %v2967_v15  ;;  %v2959_v21 = vld [vmem:[%s3328_s9 + $0x58] sm:$0xff]   ;;  %v790_v22 = vsel %vm731_vm0, %v2960_v19, 0  ;;  %v2961_v24 = vld [vmem:[%s3328_s9 + $0x50] sm:$0xff]   ;;  %v787_v25 = vsel %vm731_vm0, %v2962_v23, 0  ;;  %v1022_v58 = vand.u32 127, %v1021_v57 }
  0x50   : > { %2902 = vmatprep.subr.msk.bf16.mxu0 %vm731_vm0, %v2953_v9  ;;  %v2958_v18 = vld [vmem:[%s3328_s9 + $0x20] sm:$0xff]   ;;  %v2963_v26 = vld [vmem:[%s3328_s9 + $0x48] sm:$0xff]   ;;  %v2969_v33 = vld [vmem:[%s3318_s11 + $0x10] sm:$0xff]  }
  0x51   : > { %v793_v20 = vsel %vm731_vm0, %v2958_v18, 0  ;;  %v2964_v27 = vld [vmem:[%s3328_s9 + $0x8] sm:$0xff]   ;;  %v2965_v29 = vld [vmem:[%s3328_s9 + $0x40] sm:$0xff]   ;;  %v2970_v34 = vld [vmem:[%s3318_s11 + $0x18] sm:$0xff]   ;;  %v3472_v61 = vadd.s32 128, %v1022_v58 }
  0x52   : > { %v784_v28 = vsel %vm731_vm0, %v2964_v27, 0  ;;  %v2966_v30 = vld [vmem:[%s3328_s9] sm:$0xff]   ;;  %v2968_v32 = vld [vmem:[%s3318_s11 + $0x8] sm:$0xff]   ;;  %v2973_v37 = vld [vmem:[%s3318_s11 + $0x30] sm:$0xff]  }
  0x53   : > { %v781_v31 = vsel %vm731_vm0, %v2966_v30, 0  ;;  %v2971_v35 = vld [vmem:[%s3318_s11 + $0x20] sm:$0xff]   ;;  %v2972_v36 = vld [vmem:[%s3318_s11 + $0x28] sm:$0xff]   ;;  %v2974_v38 = vld [vmem:[%s3318_s11 + $0x38] sm:$0xff]   ;;  %vm1025_vm1 = vcmp.lt.s32.totalorder %v3472_v61, 197 }
  0x54   : > { %v2975_v39 = vld [vmem:[%s3318_s11 + $0x40] sm:$0xff]   ;;  %v2976_v40 = vld [vmem:[%s3318_s11 + $0x48] sm:$0xff]   ;;  %v2977_v41 = vld [vmem:[%s3318_s11 + $0x50] sm:$0xff]  }
  0x55   : > { %v2978_v42 = vld [vmem:[%s3318_s11 + $0x58] sm:$0xff]   ;;  %v2979_v43 = vld [vmem:[%s3318_s11 + $0x60] sm:$0xff]   ;;  %v2980_v44 = vld [vmem:[%s3318_s11 + $0x68] sm:$0xff]  }
  0x56   : > { %v2981_v45 = vld [vmem:[%s3318_s11 + $0x70] sm:$0xff]   ;;  %v2983_v46 = vld [vmem:[%s3333_s0 + $0x78] sm:$0xff]   ;;  %v2987_v51 = vld [vmem:[%s3333_s0 + $0x68] sm:$0xff]  }
  0x57   : > { %2728 = vmatpush3.bf16.xpose.msra.mxu0 %v799_v12  ;;  %v2984_v47 = vld [vmem:[%s3333_s0 + $0x38] sm:$0xff]   ;;  %2885 = vmatprep.subr.bf16.mxu1 %v2983_v46  ;;  %v2985_v49 = vld [vmem:[%s3333_s0 + $0x70] sm:$0xff]   ;;  %v2988_v52 = vld [vmem:[%s3333_s0 + $0x28] sm:$0xff]  }
  0x58   : > { %2903 = vmatprep.subr.msk.bf16.mxu0 %vm731_vm0, %v2955_v13  ;;  %2893 = vmatpush3.bf16.msra.mxu1 %v2984_v47  ;;  %v2982_v48 = vld [vmem:[%s3318_s11 + $0x78] sm:$0xff]   ;;  %v2986_v50 = vld [vmem:[%s3333_s0 + $0x30] sm:$0xff]   ;;  %v2989_v53 = vld [vmem:[%s3333_s0 + $0x60] sm:$0xff]  }
  0x59   : > { %2886 = vmatprep.subr.bf16.mxu1 %v2985_v49  ;;  %v2990_v54 = vld [vmem:[%s3333_s0 + $0x20] sm:$0xff]   ;;  %v2991_v55 = vld [vmem:[%s3333_s0 + $0x58] sm:$0xff]   ;;  %v2993_v59 = vld [vmem:[%s3333_s0 + $0x50] sm:$0xff]  }
  0x5a   : > { %v2992_v56 = vld [vmem:[%s3333_s0 + $0x18] sm:$0xff]   ;;  %v2994_v60 = vld [vmem:[%s3333_s0 + $0x10] sm:$0xff]   ;;  %v2995_v0 = vld [vmem:[%s3333_s0 + $0x48] sm:$0xff]  }
  0x5b   : > { %v2996_v1 = vld [vmem:[%s3333_s0 + $0x8] sm:$0xff]   ;;  %v2998_v30 = vld [vmem:[%s3333_s0] sm:$0xff]  }
  0x5c   : > { %2894 = vmatpush3.bf16.msra.mxu1 %v2986_v50 }
  0x5d   : > { %2887 = vmatprep.subr.bf16.mxu1 %v2987_v51 }
  0x5f   : > { %2730 = vmatpush3.bf16.xpose.msra.mxu0 %v796_v16 }
  0x60   : > { %2904 = vmatprep.subr.msk.bf16.mxu0 %vm731_vm0, %v2957_v17  ;;  %2895 = vmatpush3.bf16.msra.mxu1 %v2988_v52 }
  0x61   : > { %2888 = vmatprep.subr.bf16.mxu1 %v2989_v53 }
  0x64   : > { %2896 = vmatpush3.bf16.msra.mxu1 %v2990_v54 }
  0x65   : > { %2889 = vmatprep.subr.bf16.mxu1 %v2991_v55 }
  0x67   : > { %2732 = vmatpush3.bf16.xpose.msra.mxu0 %v793_v20 }
  0x68   : > { %2905 = vmatprep.subr.msk.bf16.mxu0 %vm731_vm0, %v2959_v21  ;;  %2897 = vmatpush3.bf16.msra.mxu1 %v2992_v56 }
  0x69   : > { %2890 = vmatprep.subr.bf16.mxu1 %v2993_v59 }
  0x6c   : > { %2898 = vmatpush3.bf16.msra.mxu1 %v2994_v60 }
  0x6d   : > { %2891 = vmatprep.subr.bf16.mxu1 %v2995_v0 }
  0x6f   : > { %2734 = vmatpush3.bf16.xpose.msra.mxu0 %v790_v22 }
  0x70   : > { %2906 = vmatprep.subr.msk.bf16.mxu0 %vm731_vm0, %v2961_v24  ;;  %2899 = vmatpush3.bf16.msra.mxu1 %v2996_v1 }
  0x77   : > { %2736 = vmatpush3.bf16.xpose.msra.mxu0 %v787_v25 }
  0x78   : > { %2907 = vmatprep.subr.msk.bf16.mxu0 %vm731_vm0, %v2963_v26 }
  0x7f   : > { %2738 = vmatpush3.bf16.xpose.msra.mxu0 %v784_v28 }
  0x80   : > { %2908 = vmatprep.subr.msk.bf16.mxu0 %vm731_vm0, %v2965_v29  ;;  %v2997_v29 = vld [vmem:[%s3333_s0 + $0x40] sm:$0xff]  }
  0x81   : > { %2892 = vmatprep.subr.bf16.mxu1 %v2997_v29 }
  0x82   : > { %2900 = vmatpush3.bf16.msra.mxu1 %v2998_v30 }
  0x87   : > { %2740 = vmatpush3.bf16.xpose.msra.mxu0 %v781_v31 }
  0x88   : > { %2773 = vmatprep.subr.bf16.mxu0 %v2983_v46 }
  0x8e   : > { %2742 = vmatmul.mubr.msk.bf16.vlgmr.msra.gmra.mxu0 %vm731_vm0, %v2967_v15 }
  0x8f   : > { %2743 = vmatprep.mubr.msk.bf16.mxu0 %vm731_vm0, %v2968_v32  ;;  %2774 = vmatpush3.bf16.msra.mxu0 %v2984_v47 }
  0x90   : > { %2775 = vmatprep.subr.bf16.mxu0 %v2985_v49 }
  0x93   : > { %2776 = vmatpush3.bf16.msra.mxu0 %v2986_v50 }
  0x94   : > { %2777 = vmatprep.subr.bf16.mxu0 %v2987_v51 }
  0x96   : > { %2744 = vmatmul.mubr.msk.bf16.gmra.mxu0 %vm731_vm0, %v2968_v32 }
  0x97   : > { %2745 = vmatprep.mubr.msk.bf16.mxu0 %vm731_vm0, %v2969_v33  ;;  %2778 = vmatpush3.bf16.msra.mxu0 %v2988_v52 }
  0x98   : > { %2779 = vmatprep.subr.bf16.mxu0 %v2989_v53 }
  0x9b   : > { %2780 = vmatpush3.bf16.msra.mxu0 %v2990_v54 }
  0x9c   : > { %2781 = vmatprep.subr.bf16.mxu0 %v2991_v55 }
  0x9e   : > { %2746 = vmatmul.mubr.msk.bf16.gmra.mxu0 %vm731_vm0, %v2969_v33 }
  0x9f   : > { %2747 = vmatprep.mubr.msk.bf16.mxu0 %vm731_vm0, %v2970_v34  ;;  %2782 = vmatpush3.bf16.msra.mxu0 %v2992_v56 }
  0xa0   : > { %2783 = vmatprep.subr.bf16.mxu0 %v2993_v59 }
  0xa3   : > { %2784 = vmatpush3.bf16.msra.mxu0 %v2994_v60 }
  0xa4   : > { %2785 = vmatprep.subr.bf16.mxu0 %v2995_v0 }
  0xa6   : > { %2748 = vmatmul.mubr.msk.bf16.gmra.mxu0 %vm731_vm0, %v2970_v34 }
  0xa7   : > { %2749 = vmatprep.mubr.msk.bf16.mxu0 %vm731_vm0, %v2971_v35  ;;  %2786 = vmatpush3.bf16.msra.mxu0 %v2996_v1 }
  0xa8   : > { %2787 = vmatprep.subr.bf16.mxu0 %v2997_v29 }
  0xab   : > { %2788 = vmatpush3.bf16.msra.mxu0 %v2998_v30 }
  0xae   : > { %2750 = vmatmul.mubr.msk.bf16.gmra.mxu0 %vm731_vm0, %v2971_v35 }
  0xaf   : > { %2751 = vmatprep.mubr.msk.bf16.mxu0 %vm731_vm0, %v2972_v36 }
  0xb6   : > { %2752 = vmatmul.mubr.msk.bf16.gmra.mxu0 %vm731_vm0, %v2972_v36 }
  0xb7   : > { %2753 = vmatprep.mubr.msk.bf16.mxu0 %vm731_vm0, %v2973_v37 }
  0xbe   : > { %2754 = vmatmul.mubr.msk.bf16.gmra.mxu0 %vm731_vm0, %v2973_v37 }
  0xbf   : > { %2755 = vmatprep.mubr.msk.bf16.mxu0 %vm731_vm0, %v2974_v38 }
  0xc6   : > { %2756 = vmatmul.mubr.msk.bf16.gmra.mxu0 %vm731_vm0, %v2974_v38 }
  0xc7   : > { %2757 = vmatprep.mubr.msk.bf16.mxu0 %vm731_vm0, %v2975_v39 }
  0xce   : > { %2758 = vmatmul.mubr.msk.bf16.gmra.mxu0 %vm731_vm0, %v2975_v39 }
  0xcf   : > { %2759 = vmatprep.mubr.msk.bf16.mxu0 %vm731_vm0, %v2976_v40 }
  0xd6   : > { %2760 = vmatmul.mubr.msk.bf16.gmra.mxu0 %vm731_vm0, %v2976_v40 }
  0xd7   : > { %2761 = vmatprep.mubr.msk.bf16.mxu0 %vm731_vm0, %v2977_v41 }
  0xde   : > { %2762 = vmatmul.mubr.msk.bf16.gmra.mxu0 %vm731_vm0, %v2977_v41 }
  0xdf   : > { %2763 = vmatprep.mubr.msk.bf16.mxu0 %vm731_vm0, %v2978_v42 }
  0xe6   : > { %2764 = vmatmul.mubr.msk.bf16.gmra.mxu0 %vm731_vm0, %v2978_v42 }
  0xe7   : > { %2765 = vmatprep.mubr.msk.bf16.mxu0 %vm731_vm0, %v2979_v43 }
  0xee   : > { %2766 = vmatmul.mubr.msk.bf16.gmra.mxu0 %vm731_vm0, %v2979_v43 }
  0xef   : > { %2767 = vmatprep.mubr.msk.bf16.mxu0 %vm731_vm0, %v2980_v44 }
  0xf6   : > { %2768 = vmatmul.mubr.msk.bf16.gmra.mxu0 %vm731_vm0, %v2980_v44 }
  0xf7   : > { %2769 = vmatprep.mubr.msk.bf16.mxu0 %vm731_vm0, %v2981_v45 }
  0xfe   : > { %2770 = vmatmul.mubr.msk.bf16.gmra.mxu0 %vm731_vm0, %v2981_v45 }
  0xff   : > { %2771 = vmatprep.mubr.msk.bf16.mxu0 %vm731_vm0, %v2982_v48 }
 0x106   : > { %2772 = vmatmul.mubr.msk.bf16.gmra.mxu0 %vm731_vm0, %v2982_v48 }
 0x14e   : > { %v3474_v62 = vpop.f32.mrf.mxu0 }
 0x150   : > { %v864_v63 = vpop.f32.mrf.mxu0 }
 0x151   : > { %v3481_v2 = vsel %vm1025_vm1, %v864_v63, -1e+30 }
 0x152   : > { %v3483_v3 = vpop.f32.mrf.mxu0  ;;  %v1090_v4 = vmax.f32 %v3474_v62, %v3481_v2 }
 0x154   : > { %1091 = vmax.xlane.f32.xlu0 %v1090_v4  ;;  %v868_v5 = vpop.f32.mrf.mxu0 }
 0x155   : > { %v3489_v6 = vsel %vm1025_vm1, %v868_v5, -1e+30 }
 0x156   : > { %v3491_v7 = vpop.f32.mrf.mxu0  ;;  %v1093_v8 = vmax.f32 %v3483_v3, %v3489_v6 }
 0x158   : > { %1094 = vmax.xlane.f32.xlu0 %v1093_v8  ;;  %v874_v9 = vpop.f32.mrf.mxu0 }
 0x159   : > { %v3497_v10 = vsel %vm1025_vm1, %v874_v9, -1e+30 }
 0x15a   : > { %v3499_v11 = vpop.f32.mrf.mxu0  ;;  %v1096_v12 = vmax.f32 %v3491_v7, %v3497_v10 }
 0x15c   : > { %1097 = vmax.xlane.f32.xlu1 %v1096_v12  ;;  %v878_v13 = vpop.f32.mrf.mxu0 }
 0x15d   : > { %v3505_v14 = vsel %vm1025_vm1, %v878_v13, -1e+30 }
 0x15e   : > { %v3507_v15 = vpop.f32.mrf.mxu0  ;;  %v1099_v16 = vmax.f32 %v3499_v11, %v3505_v14 }
 0x160   : > { %1100 = vmax.xlane.f32.xlu1 %v1099_v16  ;;  %v884_v17 = vpop.f32.mrf.mxu0 }
 0x161   : > { %v3513_v18 = vsel %vm1025_vm1, %v884_v17, -1e+30 }
 0x162   : > { %v3515_v19 = vpop.f32.mrf.mxu0  ;;  %v1102_v20 = vmax.f32 %v3507_v15, %v3513_v18 }
 0x164   : > { %1103 = vmax.xlane.f32.xlu0 %v1102_v20  ;;  %v888_v21 = vpop.f32.mrf.mxu0 }
 0x165   : > { %v3521_v22 = vsel %vm1025_vm1, %v888_v21, -1e+30 }
 0x166   : > { %v3523_v23 = vpop.f32.mrf.mxu0  ;;  %v1105_v24 = vmax.f32 %v3515_v19, %v3521_v22 }
 0x168   : > { %1106 = vmax.xlane.f32.xlu1 %v1105_v24  ;;  %v894_v25 = vpop.f32.mrf.mxu0 }
 0x169   : > { %v3529_v26 = vsel %vm1025_vm1, %v894_v25, -1e+30 }
 0x16a   : > { %v3531_v27 = vpop.f32.mrf.mxu0  ;;  %v1108_v28 = vmax.f32 %v3523_v23, %v3529_v26 }
 0x16c   : > { %1109 = vmax.xlane.f32.xlu0 %v1108_v28  ;;  %v898_v31 = vpop.f32.mrf.mxu0 }
 0x16d   : > { %v3539_v32 = vsel %vm1025_vm1, %v898_v31, -1e+30 }
 0x16e   : > { %v3541_v33 = vpop.f32.mrf.mxu0  ;;  %v1111_v34 = vmax.f32 %v3531_v27, %v3539_v32 }
 0x170   : > { %1112 = vmax.xlane.f32.xlu1 %v1111_v34  ;;  %v904_v35 = vpop.f32.mrf.mxu0 }
 0x171   : > { %v3547_v36 = vsel %vm1025_vm1, %v904_v35, -1e+30 }
 0x172   : > { %v3549_v37 = vpop.f32.mrf.mxu0  ;;  %v1114_v38 = vmax.f32 %v3541_v33, %v3547_v36 }
 0x174   : > { %1115 = vmax.xlane.f32.xlu0 %v1114_v38  ;;  %v908_v39 = vpop.f32.mrf.mxu0 }
 0x175   : > { %v3555_v40 = vsel %vm1025_vm1, %v908_v39, -1e+30 }
 0x176   : > { %v3557_v41 = vpop.f32.mrf.mxu0  ;;  %v1117_v42 = vmax.f32 %v3549_v37, %v3555_v40 }
 0x178   : > { %1118 = vmax.xlane.f32.xlu1 %v1117_v42  ;;  %v914_v43 = vpop.f32.mrf.mxu0 }
 0x179   : > { %v3563_v44 = vsel %vm1025_vm1, %v914_v43, -1e+30 }
 0x17a   : > { %v3565_v45 = vpop.f32.mrf.mxu0  ;;  %v1120_v46 = vmax.f32 %v3557_v41, %v3563_v44 }
 0x17c   : > { %1121 = vmax.xlane.f32.xlu0 %v1120_v46  ;;  %v918_v47 = vpop.f32.mrf.mxu0 }
 0x17d   : > { %v3571_v48 = vsel %vm1025_vm1, %v918_v47, -1e+30 }
 0x17e   : > { %v3573_v49 = vpop.f32.mrf.mxu0  ;;  %v1123_v50 = vmax.f32 %v3565_v45, %v3571_v48 }
 0x180   : > { %1124 = vmax.xlane.f32.xlu1 %v1123_v50  ;;  %v924_v51 = vpop.f32.mrf.mxu0 }
 0x181   : > { %v3579_v52 = vsel %vm1025_vm1, %v924_v51, -1e+30 }
 0x182   : > { %v3581_v53 = vpop.f32.mrf.mxu0  ;;  %v1126_v54 = vmax.f32 %v3573_v49, %v3579_v52 }
 0x184   : > { %1127 = vmax.xlane.f32.xlu0 %v1126_v54  ;;  %v928_v55 = vpop.f32.mrf.mxu0 }
 0x185   : > { %v3587_v56 = vsel %vm1025_vm1, %v928_v55, -1e+30 }
 0x186   : > { %v3589_v57 = vpop.f32.mrf.mxu0  ;;  %v1129_v58 = vmax.f32 %v3581_v53, %v3587_v56 }
 0x188   : > { %1130 = vmax.xlane.f32.xlu1 %v1129_v58  ;;  %v934_v59 = vpop.f32.mrf.mxu0 }
 0x189   : > { %v3595_v60 = vsel %vm1025_vm1, %v934_v59, -1e+30 }
 0x18a   : > { %v3597_v63 = vpop.f32.mrf.mxu0  ;;  %v1132_v0 = vmax.f32 %v3589_v57, %v3595_v60 }
 0x18c   : > { %1133 = vmax.xlane.f32.xlu0 %v1132_v0  ;;  %v938_v1 = vpop.f32.mrf.mxu0 }
 0x18d   : > { %v3603_v4 = vsel %vm1025_vm1, %v938_v1, -1e+30 }
 0x18e   : > { %v3605_v5 = vpop.f32.mrf.mxu0  ;;  %v1135_v8 = vmax.f32 %v3597_v63, %v3603_v4 }
 0x190   : > { %1136 = vmax.xlane.f32.xlu1 %v1135_v8  ;;  %v944_v9 = vpop.f32.mrf.mxu0 }
 0x191   : > { %v3611_v12 = vsel %vm1025_vm1, %v944_v9, -1e+30 }
 0x192   : > { %v3613_v13 = vpop.f32.mrf.mxu0  ;;  %v1138_v16 = vmax.f32 %v3605_v5, %v3611_v12 }
 0x194   : > { %1139 = vmax.xlane.f32.xlu0 %v1138_v16  ;;  %v948_v17 = vpop.f32.mrf.mxu0 }
 0x195   : > { %v3619_v20 = vsel %vm1025_vm1, %v948_v17, -1e+30 }
 0x196   : > { %v3621_v21 = vpop.f32.mrf.mxu0  ;;  %v1141_v24 = vmax.f32 %v3613_v13, %v3619_v20 }
 0x198   : > { %1142 = vmax.xlane.f32.xlu1 %v1141_v24  ;;  %v954_v25 = vpop.f32.mrf.mxu0 }
 0x199   : > { %v3627_v28 = vsel %vm1025_vm1, %v954_v25, -1e+30 }
 0x19a   : > { %v3629_v29 = vpop.f32.mrf.mxu0  ;;  %v1144_v30 = vmax.f32 %v3621_v21, %v3627_v28 }
 0x19c   : > { %1145 = vmax.xlane.f32.xlu0 %v1144_v30  ;;  %v958_v31 = vpop.f32.mrf.mxu0 }
 0x19d   : > { %v3635_v34 = vsel %vm1025_vm1, %v958_v31, -1e+30 }
 0x19e   : > { %v3637_v35 = vpop.f32.mrf.mxu0  ;;  %v1147_v38 = vmax.f32 %v3629_v29, %v3635_v34 }
 0x1a0   : > { %1148 = vmax.xlane.f32.xlu1 %v1147_v38  ;;  %v964_v39 = vpop.f32.mrf.mxu0 }
 0x1a1   : > { %v3643_v42 = vsel %vm1025_vm1, %v964_v39, -1e+30 }
 0x1a2   : > { %v3645_v43 = vpop.f32.mrf.mxu0  ;;  %v1150_v46 = vmax.f32 %v3637_v35, %v3643_v42 }
 0x1a4   : > { %1151 = vmax.xlane.f32.xlu0 %v1150_v46  ;;  %v968_v47 = vpop.f32.mrf.mxu0 }
 0x1a5   : > { %v3651_v50 = vsel %vm1025_vm1, %v968_v47, -1e+30 }
 0x1a6   : > { %v3653_v51 = vpop.f32.mrf.mxu0  ;;  %v1153_v54 = vmax.f32 %v3645_v43, %v3651_v50 }
 0x1a8   : > { %1154 = vmax.xlane.f32.xlu1 %v1153_v54  ;;  %v974_v55 = vpop.f32.mrf.mxu0 }
 0x1a9   : > { %v3659_v58 = vsel %vm1025_vm1, %v974_v55, -1e+30 }
 0x1aa   : > { %v3661_v59 = vpop.f32.mrf.mxu0  ;;  %v1156_v0 = vmax.f32 %v3653_v51, %v3659_v58 }
 0x1ac   : > { %1157 = vmax.xlane.f32.xlu0 %v1156_v0  ;;  %v978_v1 = vpop.f32.mrf.mxu0 }
 0x1ad   : > { %v3667_v8 = vsel %vm1025_vm1, %v978_v1, -1e+30 }
 0x1ae   : > { %v3669_v9 = vpop.f32.mrf.mxu0  ;;  %v1159_v16 = vmax.f32 %v3661_v59, %v3667_v8 }
 0x1b0   : > { %1160 = vmax.xlane.f32.xlu1 %v1159_v16  ;;  %v984_v17 = vpop.f32.mrf.mxu0 }
 0x1b1   : > { %v3675_v24 = vsel %vm1025_vm1, %v984_v17, -1e+30 }
 0x1b2   : > { %v3677_v25 = vpop.f32.mrf.mxu0  ;;  %v1162_v30 = vmax.f32 %v3669_v9, %v3675_v24 }
 0x1b3   : > { %3943 = vst [vmem:[#allocation5_spill] sm:$0xff] %v3677_v25 }
 0x1b4   : > { %1163 = vmax.xlane.f32.xlu0 %v1162_v30  ;;  %v988_v31 = vpop.f32.mrf.mxu0 }
 0x1b5   : > { %v3683_v38 = vsel %vm1025_vm1, %v988_v31, -1e+30 }
 0x1b6   : > { %3944 = vst [vmem:[#allocation6_spill] sm:$0xff] %v3683_v38  ;;  %v3685_v39 = vpop.f32.mrf.mxu0  ;;  %v1165_v46 = vmax.f32 %v3677_v25, %v3683_v38 }
 0x1b7   : > { %3945 = vst [vmem:[#allocation7_spill] sm:$0xff] %v3685_v39 }
 0x1b8   : > { %1166 = vmax.xlane.f32.xlu1 %v1165_v46  ;;  %v994_v47 = vpop.f32.mrf.mxu0 }
 0x1b9   : > { %v3691_v54 = vsel %vm1025_vm1, %v994_v47, -1e+30 }
 0x1ba   : > { %3946 = vst [vmem:[#allocation8_spill] sm:$0xff] %v3691_v54  ;;  %v3693_v55 = vpop.f32.mrf.mxu0  ;;  %v1168_v0 = vmax.f32 %v3685_v39, %v3691_v54 }
 0x1bb   : > { %3947 = vst [vmem:[#allocation9_spill] sm:$0xff] %v3693_v55 }
 0x1bc   : > { %1169 = vmax.xlane.f32.xlu0 %v1168_v0  ;;  %v998_v1 = vpop.f32.mrf.mxu0 }
 0x1bd   : > { %v3699_v16 = vsel %vm1025_vm1, %v998_v1, -1e+30 }
 0x1be   : > { %3948 = vst [vmem:[#allocation10_spill] sm:$0xff] %v3699_v16  ;;  %v3701_v17 = vpop.f32.mrf.mxu0  ;;  %v1171_v30 = vmax.f32 %v3693_v55, %v3699_v16 }
 0x1bf   : > { %3949 = vst [vmem:[#allocation11_spill] sm:$0xff] %v3701_v17 }
 0x1c0   : > { %1172 = vmax.xlane.f32.xlu1 %v1171_v30  ;;  %v1004_v31 = vpop.f32.mrf.mxu0 }
 0x1c1   : > { %v3707_v46 = vsel %vm1025_vm1, %v1004_v31, -1e+30 }
 0x1c2   : > { %3950 = vst [vmem:[#allocation12_spill] sm:$0xff] %v3707_v46  ;;  %v3709_v47 = vpop.f32.mrf.mxu0  ;;  %v1174_v0 = vmax.f32 %v3701_v17, %v3707_v46 }
 0x1c3   : > { %3951 = vst [vmem:[#allocation13_spill] sm:$0xff] %v3709_v47 }
 0x1c4   : > { %1175 = vmax.xlane.f32.xlu0 %v1174_v0  ;;  %v1008_v54 = vpop.f32.mrf.mxu0 }
 0x1c5   : > { %v3715_v1 = vsel %vm1025_vm1, %v1008_v54, -1e+30 }
 0x1c6   : > { %3952 = vst [vmem:[#allocation14_spill] sm:$0xff] %v3715_v1  ;;  %v3717_v39 = vpop.f32.mrf.mxu0  ;;  %v1177_v30 = vmax.f32 %v3709_v47, %v3715_v1 }
 0x1c7   : > { %3953 = vst [vmem:[#allocation15_spill] sm:$0xff] %v3717_v39 }
 0x1c8   : > { %1178 = vmax.xlane.f32.xlu1 %v1177_v30  ;;  %v1014_v16 = vpop.f32.mrf.mxu0 }
 0x1c9   : > { %v3723_v31 = vsel %vm1025_vm1, %v1014_v16, -1e+30 }
 0x1ca   : > { %3954 = vst [vmem:[#allocation16_spill] sm:$0xff] %v3723_v31  ;;  %v3725_v55 = vpop.f32.mrf.mxu0  ;;  %v1180_v0 = vmax.f32 %v3717_v39, %v3723_v31 }
 0x1cc   : > { %1181 = vmax.xlane.f32.xlu0 %v1180_v0  ;;  %v1018_v46 = vpop.f32.mrf.mxu0 }
 0x1cd   : > { %v3731_v54 = vsel %vm1025_vm1, %v1018_v46, -1e+30 }
 0x1ce   : > { %3955 = vst [vmem:[#allocation17_spill] sm:$0xff] %v3731_v54  ;;  %v1183_v1 = vmax.f32 %v3725_v55, %v3731_v54 }
 0x1d0   : > { %1184 = vmax.xlane.f32.xlu1 %v1183_v1 }
 0x1dd   : > { %v1092_v30 = vpop.xlane.xlu0 %1091 }
 0x1de   : > { %v1186_v47 = vsub.f32 %v3474_v62, %v1092_v30  ;;  %v1187_v16 = vsub.f32 %v3481_v2, %v1092_v30 }
 0x1e0   : > { %v1250_v17 = vmul.f32 1.442695, %v1186_v47  ;;  %v1252_v38 = vmul.f32 1.442695, %v1187_v16 }
 0x1e1   : > { %v1095_v25 = vpop.xlane.xlu0 %1094 }
 0x1e2   : > { %3011 = vpow2.f32 %v1250_v17  ;;  %v1188_v0 = vsub.f32 %v3483_v3, %v1095_v25  ;;  %v1189_v31 = vsub.f32 %v3489_v6, %v1095_v25 }
 0x1e3   : > { %3013 = vpow2.f32 %v1252_v38 }
 0x1e4   : > { %v1254_v61 = vmul.f32 1.442695, %v1188_v0  ;;  %v1256_v46 = vmul.f32 1.442695, %v1189_v31 }
 0x1e5   : > { %v1098_v39 = vpop.xlane.xlu1 %1097 }
 0x1e6   : > { %3015 = vpow2.f32 %v1254_v61  ;;  %v1190_v1 = vsub.f32 %v3491_v7, %v1098_v39  ;;  %v1191_v54 = vsub.f32 %v3497_v10, %v1098_v39 }
 0x1e7   : > { %3017 = vpow2.f32 %v1256_v46 }
 0x1e8   : > { %v1258_v62 = vmul.f32 1.442695, %v1190_v1  ;;  %v1260_v2 = vmul.f32 1.442695, %v1191_v54 }
 0x1e9   : > { %v1101_v47 = vpop.xlane.xlu1 %1100 }
 0x1ea   : > { %3019 = vpow2.f32 %v1258_v62  ;;  %v1192_v17 = vsub.f32 %v3499_v11, %v1101_v47  ;;  %v1193_v3 = vsub.f32 %v3505_v14, %v1101_v47  ;;  %v3001_v11 = vld [vmem:[%s3340_s26 + $0x34] ss:$8 sps:$4 sm:$0xff]  }
 0x1eb   : > { %3021 = vpow2.f32 %v1260_v2  ;;  %2011 = vmatprep.subr.bf16.mxu1 %v3001_v11 }
 0x1ec   : > { %v1262_v6 = vmul.f32 1.442695, %v1192_v17  ;;  %v1264_v25 = vmul.f32 1.442695, %v1193_v3 }
 0x1ed   : > { %v1104_v38 = vpop.xlane.xlu0 %1103 }
 0x1ee   : > { %3023 = vpow2.f32 %v1262_v6  ;;  %v1194_v31 = vsub.f32 %v3507_v15, %v1104_v38  ;;  %v1195_v7 = vsub.f32 %v3513_v18, %v1104_v38 }
 0x1ef   : > { %v3012_v10 = vpop.eup %3011  ;;  %3025 = vpow2.f32 %v1264_v25 }
 0x1f0   : > { %v3014_v39 = vpop.eup %3013  ;;  %v1266_v54 = vmul.f32 1.442695, %v1194_v31  ;;  %v1268_v30 = vmul.f32 1.442695, %v1195_v7 }
 0x1f1   : > { %v1107_v16 = vpop.xlane.xlu1 %1106  ;;  %v1378_v0 = vadd.f32 %v3014_v39, %v3012_v10 }
 0x1f2   : > { %3027 = vpow2.f32 %v1266_v54  ;;  %v1196_v14 = vsub.f32 %v3515_v19, %v1107_v16  ;;  %v1197_v61 = vsub.f32 %v3521_v22, %v1107_v16 }
 0x1f3   : > { %v3016_v46 = vpop.eup %3015  ;;  %3029 = vpow2.f32 %v1268_v30  ;;  %1379 = vadd.xlane.f32.xlu0 %v1378_v0 }
 0x1f4   : > { %v3018_v15 = vpop.eup %3017  ;;  %v1270_v1 = vmul.f32 1.442695, %v1196_v14  ;;  %v1272_v18 = vmul.f32 1.442695, %v1197_v61  ;;  %v1474_v62 = vpack.c.bf16 %v3016_v46, %v3012_v10 }
 0x1f5   : > { %v1110_v2 = vpop.xlane.xlu0 %1109  ;;  %v1475_v47 = vpack.c.bf16 %v3018_v15, %v3014_v39  ;;  %v1381_v17 = vadd.f32 %v3018_v15, %v3016_v46 }
 0x1f6   : > { %3031 = vpow2.f32 %v1270_v1  ;;  %v1198_v3 = vsub.f32 %v3523_v23, %v1110_v2  ;;  %v1199_v6 = vsub.f32 %v3529_v26, %v1110_v2 }
 0x1f7   : > { %v3020_v25 = vpop.eup %3019  ;;  %3033 = vpow2.f32 %v1272_v18  ;;  %1634 = vmatprep.mubr.bf16.mxu0 %v1475_v47  ;;  %1382 = vadd.xlane.f32.xlu1 %v1381_v17 }
 0x1f8   : > { %v3022_v19 = vpop.eup %3021  ;;  %v1274_v22 = vmul.f32 1.442695, %v1198_v3  ;;  %v1276_v38 = vmul.f32 1.442695, %v1199_v6  ;;  %1635 = vmatmul.mubr.bf16.vlgmr.msra.gmra.mxu0 %v1474_v62 }
 0x1f9   : > { %v1113_v31 = vpop.xlane.xlu1 %1112  ;;  %v1384_v7 = vadd.f32 %v3022_v19, %v3020_v25 }
 0x1fa   : > { %3035 = vpow2.f32 %v1274_v22  ;;  %v1200_v10 = vsub.f32 %v3531_v27, %v1113_v31  ;;  %v1201_v39 = vsub.f32 %v3539_v32, %v1113_v31 }
 0x1fb   : > { %v3024_v54 = vpop.eup %3023  ;;  %3037 = vpow2.f32 %v1276_v38  ;;  %1385 = vadd.xlane.f32.xlu0 %v1384_v7 }
 0x1fc   : > { %v3026_v23 = vpop.eup %3025  ;;  %v1278_v26 = vmul.f32 1.442695, %v1200_v10  ;;  %v1280_v30 = vmul.f32 1.442695, %v1201_v39  ;;  %v1476_v16 = vpack.c.bf16 %v3024_v54, %v3020_v25 }
 0x1fd   : > { %v1116_v0 = vpop.xlane.xlu0 %1115  ;;  %v1477_v11 = vpack.c.bf16 %v3026_v23, %v3022_v19  ;;  %v1387_v14 = vadd.f32 %v3026_v23, %v3024_v54 }
 0x1fe   : > { %3039 = vpow2.f32 %v1278_v26  ;;  %v1202_v61 = vsub.f32 %v3541_v33, %v1116_v0  ;;  %v1203_v46 = vsub.f32 %v3547_v36, %v1116_v0 }
 0x1ff   : > { %v3028_v15 = vpop.eup %3027  ;;  %3041 = vpow2.f32 %v1280_v30  ;;  %1642 = vmatprep.mubr.bf16.mxu0 %v1477_v11  ;;  %1388 = vadd.xlane.f32.xlu1 %v1387_v14 }
 0x200   : > { %v3030_v27 = vpop.eup %3029  ;;  %v1282_v32 = vmul.f32 1.442695, %v1202_v61  ;;  %v1284_v1 = vmul.f32 1.442695, %v1203_v46  ;;  %1643 = vmatmul.mubr.bf16.gmra.mxu0 %v1476_v16 }
 0x201   : > { %v1119_v18 = vpop.xlane.xlu1 %1118  ;;  %v1390_v62 = vadd.f32 %v3030_v27, %v3028_v15 }
 0x202   : > { %3043 = vpow2.f32 %v1282_v32  ;;  %v1204_v2 = vsub.f32 %v3549_v37, %v1119_v18  ;;  %v1205_v47 = vsub.f32 %v3555_v40, %v1119_v18 }
 0x203   : > { %v3032_v17 = vpop.eup %3031  ;;  %3045 = vpow2.f32 %v1284_v1  ;;  %1391 = vadd.xlane.f32.xlu0 %v1390_v62 }
 0x204   : > { %v3034_v33 = vpop.eup %3033  ;;  %v1286_v36 = vmul.f32 1.442695, %v1204_v2  ;;  %v1288_v3 = vmul.f32 1.442695, %v1205_v47  ;;  %v1478_v6 = vpack.c.bf16 %v3032_v17, %v3028_v15 }
 0x205   : > { %v1122_v25 = vpop.xlane.xlu0 %1121  ;;  %v1479_v19 = vpack.c.bf16 %v3034_v33, %v3030_v27  ;;  %v1393_v22 = vadd.f32 %v3034_v33, %v3032_v17 }
 0x206   : > { %3047 = vpow2.f32 %v1286_v36  ;;  %v1206_v38 = vsub.f32 %v3557_v41, %v1122_v25  ;;  %v1207_v31 = vsub.f32 %v3563_v44, %v1122_v25 }
 0x207   : > { %v3036_v7 = vpop.eup %3035  ;;  %3049 = vpow2.f32 %v1288_v3  ;;  %1650 = vmatprep.mubr.bf16.mxu0 %v1479_v19  ;;  %1394 = vadd.xlane.f32.xlu1 %v1393_v22 }
 0x208   : > { %v3038_v37 = vpop.eup %3037  ;;  %v1290_v40 = vmul.f32 1.442695, %v1206_v38  ;;  %v1292_v10 = vmul.f32 1.442695, %v1207_v31  ;;  %1651 = vmatmul.mubr.bf16.gmra.mxu0 %v1478_v6 }
 0x209   : > { %v1125_v39 = vpop.xlane.xlu1 %1124  ;;  %v1396_v54 = vadd.f32 %v3038_v37, %v3036_v7 }
 0x20a   : > { %3051 = vpow2.f32 %v1290_v40  ;;  %v1208_v23 = vsub.f32 %v3565_v45, %v1125_v39  ;;  %v1209_v26 = vsub.f32 %v3571_v48, %v1125_v39 }
 0x20b   : > { %v3040_v30 = vpop.eup %3039  ;;  %3053 = vpow2.f32 %v1292_v10  ;;  %1397 = vadd.xlane.f32.xlu0 %v1396_v54 }
 0x20c   : > { %v3042_v41 = vpop.eup %3041  ;;  %v1294_v44 = vmul.f32 1.442695, %v1208_v23  ;;  %v1296_v16 = vmul.f32 1.442695, %v1209_v26  ;;  %v1480_v0 = vpack.c.bf16 %v3040_v30, %v3036_v7 }
 0x20d   : > { %v1128_v11 = vpop.xlane.xlu0 %1127  ;;  %v1481_v14 = vpack.c.bf16 %v3042_v41, %v3038_v37  ;;  %v1399_v61 = vadd.f32 %v3042_v41, %v3040_v30 }
 0x20e   : > { %3055 = vpow2.f32 %v1294_v44  ;;  %v1210_v46 = vsub.f32 %v3573_v49, %v1128_v11  ;;  %v1211_v15 = vsub.f32 %v3579_v52, %v1128_v11 }
 0x20f   : > { %v3044_v27 = vpop.eup %3043  ;;  %3057 = vpow2.f32 %v1296_v16  ;;  %1658 = vmatprep.mubr.bf16.mxu0 %v1481_v14  ;;  %1400 = vadd.xlane.f32.xlu1 %v1399_v61 }
 0x210   : > { %v3046_v45 = vpop.eup %3045  ;;  %v1298_v48 = vmul.f32 1.442695, %v1210_v46  ;;  %v1300_v32 = vmul.f32 1.442695, %v1211_v15  ;;  %1659 = vmatmul.mubr.bf16.gmra.mxu0 %v1480_v0 }
 0x211   : > { %v1131_v1 = vpop.xlane.xlu1 %1130  ;;  %v1402_v18 = vadd.f32 %v3046_v45, %v3044_v27 }
 0x212   : > { %3059 = vpow2.f32 %v1298_v48  ;;  %v1212_v62 = vsub.f32 %v3581_v53, %v1131_v1  ;;  %v1213_v2 = vsub.f32 %v3587_v56, %v1131_v1 }
 0x213   : > { %v3048_v47 = vpop.eup %3047  ;;  %3061 = vpow2.f32 %v1300_v32  ;;  %1403 = vadd.xlane.f32.xlu0 %v1402_v18  ;;  %v2999_v18 = vld [vmem:[%s3340_s26 + $0x30] ss:$8 sps:$4 sm:$0xff]  }
 0x214   : > { %v3050_v49 = vpop.eup %3049  ;;  %v1302_v52 = vmul.f32 1.442695, %v1212_v62  ;;  %v1304_v17 = vmul.f32 1.442695, %v1213_v2  ;;  %v1482_v33 = vpack.c.bf16 %v3048_v47, %v3044_v27  ;;  %v3004_v2 = vld [vmem:[%s3340_s26 + $0x24] ss:$8 sps:$4 sm:$0xff]  }
 0x215   : > { %v1134_v36 = vpop.xlane.xlu0 %1133  ;;  %v1483_v3 = vpack.c.bf16 %v3050_v49, %v3046_v45  ;;  %v1405_v6 = vadd.f32 %v3050_v49, %v3048_v47 }
 0x216   : > { %3063 = vpow2.f32 %v1302_v52  ;;  %v1214_v25 = vsub.f32 %v3589_v57, %v1134_v36  ;;  %v1215_v19 = vsub.f32 %v3595_v60, %v1134_v36  ;;  %v3002_v36 = vld [vmem:[%s3340_s26 + $0x20] ss:$8 sps:$4 sm:$0xff]  }
 0x217   : > { %v3052_v22 = vpop.eup %3051  ;;  %3065 = vpow2.f32 %v1304_v17  ;;  %1666 = vmatprep.mubr.bf16.mxu0 %v1483_v3  ;;  %1406 = vadd.xlane.f32.xlu1 %v1405_v6  ;;  %v3007_v3 = vld [vmem:[%s3340_s26 + $0x14] ss:$8 sps:$4 sm:$0xff]  }
 0x218   : > { %v3054_v53 = vpop.eup %3053  ;;  %v1306_v56 = vmul.f32 1.442695, %v1214_v25  ;;  %v1308_v38 = vmul.f32 1.442695, %v1215_v19  ;;  %1667 = vmatmul.mubr.bf16.gmra.mxu0 %v1482_v33 }
 0x219   : > { %v1137_v31 = vpop.xlane.xlu1 %1136  ;;  %v1408_v7 = vadd.f32 %v3054_v53, %v3052_v22 }
 0x21a   : > { %3067 = vpow2.f32 %v1306_v56  ;;  %v1216_v37 = vsub.f32 %v3597_v63, %v1137_v31  ;;  %v1217_v40 = vsub.f32 %v3603_v4, %v1137_v31 }
 0x21b   : > { %v3056_v10 = vpop.eup %3055  ;;  %3069 = vpow2.f32 %v1308_v38  ;;  %1409 = vadd.xlane.f32.xlu0 %v1408_v7  ;;  %v3005_v7 = vld [vmem:[%s3340_s26 + $0x10] ss:$8 sps:$4 sm:$0xff]  }
 0x21c   : > { %v3058_v57 = vpop.eup %3057  ;;  %v1310_v60 = vmul.f32 1.442695, %v1216_v37  ;;  %v1312_v39 = vmul.f32 1.442695, %v1217_v40  ;;  %v1484_v54 = vpack.c.bf16 %v3056_v10, %v3052_v22  ;;  %v3010_v37 = vld [vmem:[%s3340_s26 + $0x4] ss:$8 sps:$4 sm:$0xff]  }
 0x21d   : > { %v1140_v23 = vpop.xlane.xlu0 %1139  ;;  %v1485_v26 = vpack.c.bf16 %v3058_v57, %v3054_v53  ;;  %v1411_v30 = vadd.f32 %v3058_v57, %v3056_v10 }
 0x21e   : > { %3071 = vpow2.f32 %v1310_v60  ;;  %v1218_v41 = vsub.f32 %v3605_v5, %v1140_v23  ;;  %v1219_v44 = vsub.f32 %v3611_v12, %v1140_v23  ;;  %v3008_v23 = vld [vmem:[%s3340_s26] ss:$8 sps:$4 sm:$0xff]  }
 0x21f   : > { %v3060_v16 = vpop.eup %3059  ;;  %3073 = vpow2.f32 %v1312_v39  ;;  %1674 = vmatprep.mubr.bf16.mxu0 %v1485_v26  ;;  %1412 = vadd.xlane.f32.xlu1 %v1411_v30 }
 0x220   : > { %v3062_v63 = vpop.eup %3061  ;;  %v1314_v4 = vmul.f32 1.442695, %v1218_v41  ;;  %v1316_v0 = vmul.f32 1.442695, %v1219_v44  ;;  %1675 = vmatmul.mubr.bf16.gmra.mxu0 %v1484_v54 }
 0x221   : > { %v1143_v11 = vpop.xlane.xlu1 %1142  ;;  %v1414_v14 = vadd.f32 %v3062_v63, %v3060_v16 }
 0x222   : > { %3075 = vpow2.f32 %v1314_v4  ;;  %v1220_v61 = vsub.f32 %v3613_v13, %v1143_v11  ;;  %v1221_v46 = vsub.f32 %v3619_v20, %v1143_v11 }
 0x223   : > { %v3064_v5 = vpop.eup %3063  ;;  %3077 = vpow2.f32 %v1316_v0  ;;  %1415 = vadd.xlane.f32.xlu0 %v1414_v14 }
 0x224   : > { %v3066_v12 = vpop.eup %3065  ;;  %v1318_v15 = vmul.f32 1.442695, %v1220_v61  ;;  %v1320_v27 = vmul.f32 1.442695, %v1221_v46  ;;  %v1486_v45 = vpack.c.bf16 %v3064_v5, %v3060_v16 }
 0x225   : > { %v1146_v48 = vpop.xlane.xlu0 %1145  ;;  %v1487_v32 = vpack.c.bf16 %v3066_v12, %v3062_v63  ;;  %v1417_v1 = vadd.f32 %v3066_v12, %v3064_v5 }
 0x226   : > { %3079 = vpow2.f32 %v1318_v15  ;;  %v1222_v62 = vsub.f32 %v3621_v21, %v1146_v48  ;;  %v1223_v13 = vsub.f32 %v3627_v28, %v1146_v48 }
 0x227   : > { %v3068_v47 = vpop.eup %3067  ;;  %3081 = vpow2.f32 %v1320_v27  ;;  %1682 = vmatprep.mubr.bf16.mxu1 %v1487_v32  ;;  %1418 = vadd.xlane.f32.xlu1 %v1417_v1 }
 0x228   : > { %v3070_v20 = vpop.eup %3069  ;;  %v1322_v49 = vmul.f32 1.442695, %v1222_v62  ;;  %v1324_v52 = vmul.f32 1.442695, %v1223_v13  ;;  %1683 = vmatmul.mubr.bf16.vlgmr.msra.gmra.mxu1 %v1486_v45 }
 0x229   : > { %v1149_v17 = vpop.xlane.xlu1 %1148  ;;  %v1420_v33 = vadd.f32 %v3070_v20, %v3068_v47  ;;  %2012 = vmatpush1.bf16.msra.mxu1 %v2999_v18 }
 0x22a   : > { %3083 = vpow2.f32 %v1322_v49  ;;  %v1224_v21 = vsub.f32 %v3629_v29, %v1149_v17  ;;  %v1225_v28 = vsub.f32 %v3635_v34, %v1149_v17  ;;  %2013 = vmatprep.subr.bf16.mxu1 %v3004_v2  ;;  %v3956_v17 = vld [vmem:[#allocation5_spill] sm:$0xff] }
 0x22b   : > { %v3072_v6 = vpop.eup %3071  ;;  %3085 = vpow2.f32 %v1324_v52  ;;  %1421 = vadd.xlane.f32.xlu0 %v1420_v33 }
 0x22c   : > { %v3074_v25 = vpop.eup %3073  ;;  %v1326_v19 = vmul.f32 1.442695, %v1224_v21  ;;  %v1328_v22 = vmul.f32 1.442695, %v1225_v28  ;;  %v1488_v53 = vpack.c.bf16 %v3072_v6, %v3068_v47 }
 0x22d   : > { %v1152_v56 = vpop.xlane.xlu0 %1151  ;;  %v1489_v38 = vpack.c.bf16 %v3074_v25, %v3070_v20  ;;  %v1423_v31 = vadd.f32 %v3074_v25, %v3072_v6  ;;  %2014 = vmatpush1.bf16.msra.mxu1 %v3002_v36  ;;  %v3957_v36 = vld [vmem:[#allocation6_spill] sm:$0xff] }
 0x22e   : > { %3087 = vpow2.f32 %v1326_v19  ;;  %v1226_v29 = vsub.f32 %v3637_v35, %v1152_v56  ;;  %v1227_v34 = vsub.f32 %v3643_v42, %v1152_v56  ;;  %2015 = vmatprep.subr.bf16.mxu1 %v3007_v3 }
 0x22f   : > { %v3076_v40 = vpop.eup %3075  ;;  %3089 = vpow2.f32 %v1328_v22  ;;  %1690 = vmatprep.mubr.bf16.mxu1 %v1489_v38  ;;  %1424 = vadd.xlane.f32.xlu1 %v1423_v31  ;;  %v3959_v38 = vld [vmem:[#allocation8_spill] sm:$0xff] }
 0x230   : > { %v3078_v10 = vpop.eup %3077  ;;  %v1330_v57 = vmul.f32 1.442695, %v1226_v29  ;;  %v1332_v60 = vmul.f32 1.442695, %v1227_v34  ;;  %1691 = vmatmul.mubr.bf16.gmra.mxu1 %v1488_v53  ;;  %v3958_v53 = vld [vmem:[#allocation7_spill] sm:$0xff] }
 0x231   : > { %v1155_v39 = vpop.xlane.xlu1 %1154  ;;  %v1426_v54 = vadd.f32 %v3078_v10, %v3076_v40  ;;  %2016 = vmatpush1.bf16.msra.mxu1 %v3005_v7 }
 0x232   : > { %3091 = vpow2.f32 %v1330_v57  ;;  %v1228_v26 = vsub.f32 %v3645_v43, %v1155_v39  ;;  %v1229_v35 = vsub.f32 %v3651_v50, %v1155_v39  ;;  %2017 = vmatprep.subr.bf16.mxu1 %v3010_v37  ;;  %v3960_v57 = vld [vmem:[#allocation9_spill] sm:$0xff]  ;;  %v3961_v39 = vld [vmem:[#allocation10_spill] sm:$0xff] }
 0x233   : > { %v3080_v42 = vpop.eup %3079  ;;  %3093 = vpow2.f32 %v1332_v60  ;;  %1427 = vadd.xlane.f32.xlu0 %v1426_v54 }
 0x234   : > { %v3082_v30 = vpop.eup %3081  ;;  %v1334_v41 = vmul.f32 1.442695, %v1228_v26  ;;  %v1336_v44 = vmul.f32 1.442695, %v1229_v35  ;;  %v1490_v16 = vpack.c.bf16 %v3080_v42, %v3076_v40 }
 0x235   : > { %v1158_v63 = vpop.xlane.xlu0 %1157  ;;  %v1491_v4 = vpack.c.bf16 %v3082_v30, %v3078_v10  ;;  %v1429_v0 = vadd.f32 %v3082_v30, %v3080_v42  ;;  %2018 = vmatpush1.bf16.msra.mxu1 %v3008_v23 }
 0x236   : > { %3095 = vpow2.f32 %v1334_v41  ;;  %v1230_v11 = vsub.f32 %v3653_v51, %v1158_v63  ;;  %v1231_v14 = vsub.f32 %v3659_v58, %v1158_v63  ;;  %v3962_v63 = vld [vmem:[#allocation11_spill] sm:$0xff] }
 0x237   : > { %v3084_v43 = vpop.eup %3083  ;;  %3097 = vpow2.f32 %v1336_v44  ;;  %1698 = vmatprep.mubr.bf16.mxu1 %v1491_v4  ;;  %1430 = vadd.xlane.f32.xlu1 %v1429_v0  ;;  %v3963_v0 = vld [vmem:[#allocation12_spill] sm:$0xff] }
 0x238   : > { %v3086_v50 = vpop.eup %3085  ;;  %v1338_v61 = vmul.f32 1.442695, %v1230_v11  ;;  %v1340_v46 = vmul.f32 1.442695, %v1231_v14  ;;  %1699 = vmatmul.mubr.bf16.gmra.mxu1 %v1490_v16 }
 0x239   : > { %v1161_v5 = vpop.xlane.xlu1 %1160  ;;  %v1432_v12 = vadd.f32 %v3086_v50, %v3084_v43 }
 0x23a   : > { %3099 = vpow2.f32 %v1338_v61  ;;  %v1232_v15 = vsub.f32 %v3661_v59, %v1161_v5  ;;  %v1233_v27 = vsub.f32 %v3667_v8, %v1161_v5 }
 0x23b   : > { %v3088_v45 = vpop.eup %3087  ;;  %3101 = vpow2.f32 %v1340_v46  ;;  %1433 = vadd.xlane.f32.xlu0 %v1432_v12  ;;  %v3964_v12 = vld [vmem:[#allocation13_spill] sm:$0xff] }
 0x23c   : > { %v3090_v51 = vpop.eup %3089  ;;  %v1342_v58 = vmul.f32 1.442695, %v1232_v15  ;;  %v1344_v48 = vmul.f32 1.442695, %v1233_v27  ;;  %v1492_v32 = vpack.c.bf16 %v3088_v45, %v3084_v43  ;;  %v3965_v27 = vld [vmem:[#allocation14_spill] sm:$0xff] }
 0x23d   : > { %v1164_v1 = vpop.xlane.xlu0 %1163  ;;  %v1493_v18 = vpack.c.bf16 %v3090_v51, %v3086_v50  ;;  %v1435_v62 = vadd.f32 %v3090_v51, %v3088_v45 }
 0x23e   : > { %3103 = vpow2.f32 %v1342_v58  ;;  %v1234_v13 = vsub.f32 %v3669_v9, %v1164_v1  ;;  %v1235_v2 = vsub.f32 %v3675_v24, %v1164_v1 }
 0x23f   : > { %v3092_v47 = vpop.eup %3091  ;;  %3105 = vpow2.f32 %v1344_v48  ;;  %1706 = vmatprep.mubr.bf16.mxu1 %v1493_v18  ;;  %1436 = vadd.xlane.f32.xlu1 %v1435_v62 }
 0x240   : > { %v3094_v59 = vpop.eup %3093  ;;  %v1346_v8 = vmul.f32 1.442695, %v1234_v13  ;;  %v1348_v20 = vmul.f32 1.442695, %v1235_v2  ;;  %1707 = vmatmul.mubr.bf16.gmra.mxu1 %v1492_v32  ;;  %v3966_v2 = vld [vmem:[#allocation15_spill] sm:$0xff] }
 0x241   : > { %v1167_v49 = vpop.xlane.xlu1 %1166  ;;  %v1438_v52 = vadd.f32 %v3094_v59, %v3092_v47 }
 0x242   : > { %3107 = vpow2.f32 %v1346_v8  ;;  %v1236_v33 = vsub.f32 %v3956_v17, %v1167_v49  ;;  %v1237_v21 = vsub.f32 %v3957_v36, %v1167_v49 }
 0x243   : > { %v3096_v28 = vpop.eup %3095  ;;  %3109 = vpow2.f32 %v1348_v20  ;;  %1439 = vadd.xlane.f32.xlu0 %v1438_v52 }
 0x244   : > { %v3098_v9 = vpop.eup %3097  ;;  %v1350_v24 = vmul.f32 1.442695, %v1236_v33  ;;  %v1352_v3 = vmul.f32 1.442695, %v1237_v21  ;;  %v1494_v6 = vpack.c.bf16 %v3096_v28, %v3092_v47 }
 0x245   : > { %v1170_v25 = vpop.xlane.xlu0 %1169  ;;  %v1495_v19 = vpack.c.bf16 %v3098_v9, %v3094_v59  ;;  %v1441_v22 = vadd.f32 %v3098_v9, %v3096_v28  ;;  %v3967_v59 = vld [vmem:[#allocation16_spill] sm:$0xff]  ;;  %v3968_v28 = vld [vmem:[#allocation17_spill] sm:$0xff] }
 0x246   : > { %3111 = vpow2.f32 %v1350_v24  ;;  %v1238_v56 = vsub.f32 %v3958_v53, %v1170_v25  ;;  %v1239_v31 = vsub.f32 %v3959_v38, %v1170_v25 }
 0x247   : > { %v3100_v7 = vpop.eup %3099  ;;  %3113 = vpow2.f32 %v1352_v3  ;;  %1714 = vmatprep.mubr.bf16.mxu1 %v1495_v19  ;;  %1442 = vadd.xlane.f32.xlu1 %v1441_v22 }
 0x248   : > { %v3102_v29 = vpop.eup %3101  ;;  %v1354_v34 = vmul.f32 1.442695, %v1238_v56  ;;  %v1356_v37 = vmul.f32 1.442695, %v1239_v31  ;;  %1715 = vmatmul.mubr.bf16.gmra.mxu1 %v1494_v6 }
 0x249   : > { %v1173_v40 = vpop.xlane.xlu1 %1172  ;;  %v1444_v10 = vadd.f32 %v3102_v29, %v3100_v7 }
 0x24a   : > { %3115 = vpow2.f32 %v1354_v34  ;;  %v1240_v60 = vsub.f32 %v3960_v57, %v1173_v40  ;;  %v1241_v54 = vsub.f32 %v3961_v39, %v1173_v40 }
 0x24b   : > { %v3104_v23 = vpop.eup %3103  ;;  %3117 = vpow2.f32 %v1356_v37  ;;  %1445 = vadd.xlane.f32.xlu0 %v1444_v10 }
 0x24c   : > { %v3106_v26 = vpop.eup %3105  ;;  %v1358_v35 = vmul.f32 1.442695, %v1240_v60  ;;  %v1360_v42 = vmul.f32 1.442695, %v1241_v54  ;;  %v1496_v30 = vpack.c.bf16 %v3104_v23, %v3100_v7 }
 0x24d   : > { %v1176_v41 = vpop.xlane.xlu0 %1175  ;;  %v1497_v44 = vpack.c.bf16 %v3106_v26, %v3102_v29  ;;  %v1447_v16 = vadd.f32 %v3106_v26, %v3104_v23 }
 0x24e   : > { %3119 = vpow2.f32 %v1358_v35  ;;  %v1242_v4 = vsub.f32 %v3962_v63, %v1176_v41  ;;  %v1243_v11 = vsub.f32 %v3963_v0, %v1176_v41  ;;  %v3243_v35 = vmov 0  }
 0x24f   : > { %v3108_v14 = vpop.eup %3107  ;;  %3121 = vpow2.f32 %v1360_v42  ;;  %1722 = vmatprep.mubr.bf16.mxu1 %v1497_v44  ;;  %1448 = vadd.xlane.f32.xlu1 %v1447_v16 }
 0x250   : > { %v3110_v43 = vpop.eup %3109  ;;  %v1362_v50 = vmul.f32 1.442695, %v1242_v4  ;;  %v1364_v61 = vmul.f32 1.442695, %v1243_v11  ;;  %1723 = vmatmul.mubr.bf16.gmra.mxu1 %v1496_v30 }
 0x251   : > { %v1179_v46 = vpop.xlane.xlu1 %1178  ;;  %v1450_v5 = vadd.f32 %v3110_v43, %v3108_v14 }
 0x252   : > { %3123 = vpow2.f32 %v1362_v50  ;;  %v1244_v15 = vsub.f32 %v3964_v12, %v1179_v46  ;;  %v1245_v45 = vsub.f32 %v3965_v27, %v1179_v46 }
 0x253   : > { %v3112_v51 = vpop.eup %3111  ;;  %3125 = vpow2.f32 %v1364_v61  ;;  %1451 = vadd.xlane.f32.xlu0 %v1450_v5 }
 0x254   : > { %v3114_v58 = vpop.eup %3113  ;;  %v1366_v48 = vmul.f32 1.442695, %v1244_v15  ;;  %v1368_v32 = vmul.f32 1.442695, %v1245_v45  ;;  %v1498_v1 = vpack.c.bf16 %v3112_v51, %v3108_v14 }
 0x255   : > { %v1182_v18 = vpop.xlane.xlu0 %1181  ;;  %v1499_v62 = vpack.c.bf16 %v3114_v58, %v3110_v43  ;;  %v1453_v13 = vadd.f32 %v3114_v58, %v3112_v51 }
 0x256   : > { %3127 = vpow2.f32 %v1366_v48  ;;  %v1246_v47 = vsub.f32 %v3966_v2, %v1182_v18  ;;  %v1247_v8 = vsub.f32 %v3967_v59, %v1182_v18 }
 0x257   : > { %v3116_v20 = vpop.eup %3115  ;;  %3129 = vpow2.f32 %v1368_v32  ;;  %1730 = vmatprep.mubr.bf16.mxu1 %v1499_v62  ;;  %1454 = vadd.xlane.f32.xlu1 %v1453_v13 }
 0x258   : > { %v3118_v49 = vpop.eup %3117  ;;  %v1370_v52 = vmul.f32 1.442695, %v1246_v47  ;;  %v1372_v17 = vmul.f32 1.442695, %v1247_v8  ;;  %1731 = vmatmul.mubr.bf16.gmra.mxu1 %v1498_v1 }
 0x259   : > { %v1185_v33 = vpop.xlane.xlu1 %1184  ;;  %v1456_v36 = vadd.f32 %v3118_v49, %v3116_v20 }
 0x25a   : > { %3131 = vpow2.f32 %v1370_v52  ;;  %v1248_v21 = vsub.f32 %v3725_v55, %v1185_v33  ;;  %v1249_v9 = vsub.f32 %v3968_v28, %v1185_v33 }
 0x25b   : > { %v3120_v24 = vpop.eup %3119  ;;  %3133 = vpow2.f32 %v1372_v17  ;;  %1457 = vadd.xlane.f32.xlu0 %v1456_v36 }
 0x25c   : > { %v3122_v3 = vpop.eup %3121  ;;  %v1374_v6 = vmul.f32 1.442695, %v1248_v21  ;;  %v1376_v25 = vmul.f32 1.442695, %v1249_v9  ;;  %v1500_v19 = vpack.c.bf16 %v3120_v24, %v3116_v20 }
 0x25d   : > { %v1501_v22 = vpack.c.bf16 %v3122_v3, %v3118_v49  ;;  %v1459_v53 = vadd.f32 %v3122_v3, %v3120_v24 }
 0x25e   : > { %3135 = vpow2.f32 %v1374_v6 }
 0x25f   : > { %v3124_v56 = vpop.eup %3123  ;;  %3137 = vpow2.f32 %v1376_v25  ;;  %1738 = vmatprep.mubr.bf16.mxu1 %v1501_v22  ;;  %1460 = vadd.xlane.f32.xlu1 %v1459_v53 }
 0x260   : > { %v3126_v38 = vpop.eup %3125  ;;  %1739 = vmatmul.mubr.bf16.gmra.mxu1 %v1500_v19 }
 0x261   : > { %v1462_v31 = vadd.f32 %v3126_v38, %v3124_v56 }
 0x263   : > { %v3128_v55 = vpop.eup %3127  ;;  %1463 = vadd.xlane.f32.xlu0 %v1462_v31 }
 0x264   : > { %v3130_v7 = vpop.eup %3129  ;;  %v1502_v29 = vpack.c.bf16 %v3128_v55, %v3124_v56 }
 0x265   : > { %v1503_v34 = vpack.c.bf16 %v3130_v7, %v3126_v38  ;;  %v1465_v37 = vadd.f32 %v3130_v7, %v3128_v55 }
 0x267   : > { %v3132_v40 = vpop.eup %3131  ;;  %1746 = vmatprep.mubr.bf16.mxu1 %v1503_v34  ;;  %1466 = vadd.xlane.f32.xlu1 %v1465_v37 }
 0x268   : > { %v3134_v10 = vpop.eup %3133  ;;  %1747 = vmatmul.mubr.bf16.gmra.mxu1 %v1502_v29 }
 0x269   : > { %v1468_v57 = vadd.f32 %v3134_v10, %v3132_v40 }
 0x26b   : > { %v3136_v60 = vpop.eup %3135  ;;  %1469 = vadd.xlane.f32.xlu0 %v1468_v57 }
 0x26c   : > { %v3138_v39 = vpop.eup %3137  ;;  %v1504_v54 = vpack.c.bf16 %v3136_v60, %v3132_v40 }
 0x26d   : > { %v1505_v23 = vpack.c.bf16 %v3138_v39, %v3134_v10  ;;  %v1471_v26 = vadd.f32 %v3138_v39, %v3136_v60 }
 0x26f   : > { %1754 = vmatprep.mubr.bf16.mxu1 %v1505_v23  ;;  %1472 = vadd.xlane.f32.xlu1 %v1471_v26 }
 0x270   : > { %1755 = vmatmul.mubr.bf16.gmra.mxu1 %v1504_v54 }
 0x271   : > { %2035 = vmatprep.mubr.bf16.mxu1 %v3243_v35 }
 0x27c   : > { %v1380_v42 = vpop.xlane.xlu0 %1379 }
 0x27d   : > { %3139 = vrcp.f32 %v1380_v42 }
 0x280   : > { %v1383_v30 = vpop.xlane.xlu1 %1382 }
 0x281   : > { %3141 = vrcp.f32 %v1383_v30 }
 0x284   : > { %v1386_v41 = vpop.xlane.xlu0 %1385 }
 0x285   : > { %3143 = vrcp.f32 %v1386_v41 }
 0x288   : > { %v1389_v44 = vpop.xlane.xlu1 %1388 }
 0x289   : > { %3145 = vrcp.f32 %v1389_v44 }
 0x28a   : > { %v3140_v14 = vpop.eup %3139 }
 0x28c   : > { %v1392_v43 = vpop.xlane.xlu0 %1391 }
 0x28d   : > { %3147 = vrcp.f32 %v1392_v43 }
 0x28e   : > { %v3142_v61 = vpop.eup %3141 }
 0x290   : > { %v1395_v46 = vpop.xlane.xlu1 %1394 }
 0x291   : > { %3149 = vrcp.f32 %v1395_v46 }
 0x292   : > { %v3144_v32 = vpop.eup %3143 }
 0x294   : > { %v1398_v1 = vpop.xlane.xlu0 %1397 }
 0x295   : > { %3151 = vrcp.f32 %v1398_v1 }
 0x296   : > { %v3146_v62 = vpop.eup %3145 }
 0x298   : > { %v1401_v13 = vpop.xlane.xlu1 %1400 }
 0x299   : > { %3153 = vrcp.f32 %v1401_v13 }
 0x29a   : > { %v3148_v33 = vpop.eup %3147 }
 0x29c   : > { %v1404_v36 = vpop.xlane.xlu0 %1403 }
 0x29d   : > { %3155 = vrcp.f32 %v1404_v36 }
 0x29e   : > { %v3150_v28 = vpop.eup %3149 }
 0x2a0   : > { %v1407_v9 = vpop.xlane.xlu1 %1406 }
 0x2a1   : > { %3157 = vrcp.f32 %v1407_v9 }
 0x2a2   : > { %v3152_v38 = vpop.eup %3151 }
 0x2a4   : > { %v1410_v31 = vpop.xlane.xlu0 %1409 }
 0x2a5   : > { %3159 = vrcp.f32 %v1410_v31 }
 0x2a6   : > { %v3154_v7 = vpop.eup %3153 }
 0x2a8   : > { %v1413_v29 = vpop.xlane.xlu1 %1412 }
 0x2a9   : > { %3161 = vrcp.f32 %v1413_v29 }
 0x2aa   : > { %v3156_v23 = vpop.eup %3155 }
 0x2ac   : > { %v1416_v26 = vpop.xlane.xlu0 %1415 }
 0x2ad   : > { %3163 = vrcp.f32 %v1416_v26 }
 0x2ae   : > { %v3158_v30 = vpop.eup %3157 }
 0x2b0   : > { %v1419_v41 = vpop.xlane.xlu1 %1418 }
 0x2b1   : > { %3165 = vrcp.f32 %v1419_v41 }
 0x2b8   : > { %v2789_v16 = vpop.f32.mrf.mxu0 }
 0x2ba   : > { %v2790_v63 = vpop.f32.mrf.mxu0 }
 0x2bb   : > { %v2791_v0 = vadd.f32 %v2790_v63, %v2789_v16 }
 0x2bc   : > { %v2792_v4 = vpop.f32.mrf.mxu0 }
 0x2bd   : > { %v1795_v12 = vmul.f32 %v3140_v14, %v2791_v0 }
 0x2be   : > { %v2793_v11 = vpop.f32.mrf.mxu0 }
 0x2bf   : > { %v2794_v50 = vadd.f32 %v2793_v11, %v2792_v4 }
 0x2c0   : > { %v2795_v5 = vpop.f32.mrf.mxu0 }
 0x2c1   : > { %v1796_v15 = vmul.f32 %v3142_v61, %v2794_v50  ;;  %v3160_v50 = vpop.eup %3159  ;;  %v1422_v61 = vpop.xlane.xlu0 %1421 }
 0x2c2   : > { %v2796_v27 = vpop.f32.mrf.mxu0  ;;  %3167 = vrcp.f32 %v1422_v61 }
 0x2c3   : > { %v1891_v45 = vpack.c.bf16 %v1796_v15, %v1795_v12  ;;  %v2797_v58 = vadd.f32 %v2796_v27, %v2795_v5  ;;  %v3162_v5 = vpop.eup %3161  ;;  %v1425_v12 = vpop.xlane.xlu1 %1424 }
 0x2c4   : > { %v2798_v51 = vpop.f32.mrf.mxu0  ;;  %3169 = vrcp.f32 %v1425_v12 }
 0x2c5   : > { %2704 = vmatmul.mubr.msk.bf16.vlgmr.msra.gmra.mxu1 %vm731_vm0, %v1891_v45  ;;  %v1797_v47 = vmul.f32 %v3144_v32, %v2797_v58 }
 0x2c6   : > { %v2799_v48 = vpop.f32.mrf.mxu0  ;;  %2045 = vmatprep.mubr.bf16.mxu1 %v3243_v35 }
 0x2c7   : > { %v2800_v18 = vadd.f32 %v2799_v48, %v2798_v51 }
 0x2c8   : > { %v2801_v2 = vpop.f32.mrf.mxu0 }
 0x2c9   : > { %v1798_v59 = vmul.f32 %v3146_v62, %v2800_v18  ;;  %v3164_v18 = vpop.eup %3163  ;;  %v1428_v62 = vpop.xlane.xlu0 %1427 }
 0x2ca   : > { %v2802_v8 = vpop.f32.mrf.mxu0  ;;  %3171 = vrcp.f32 %v1428_v62 }
 0x2cb   : > { %v1892_v20 = vpack.c.bf16 %v1798_v59, %v1797_v47  ;;  %v2803_v52 = vadd.f32 %v2802_v8, %v2801_v2  ;;  %v3166_v2 = vpop.eup %3165  ;;  %v1431_v47 = vpop.xlane.xlu1 %1430 }
 0x2cc   : > { %v2804_v49 = vpop.f32.mrf.mxu0  ;;  %3173 = vrcp.f32 %v1431_v47 }
 0x2cd   : > { %2705 = vmatmul.mubr.msk.bf16.gmra.mxu1 %vm731_vm0, %v1892_v20  ;;  %v1799_v3 = vmul.f32 %v3148_v33, %v2803_v52 }
 0x2ce   : > { %v2805_v17 = vpop.f32.mrf.mxu0  ;;  %2055 = vmatprep.mubr.bf16.mxu1 %v3243_v35 }
 0x2cf   : > { %v2806_v21 = vadd.f32 %v2805_v17, %v2804_v49 }
 0x2d0   : > { %v2807_v24 = vpop.f32.mrf.mxu0 }
 0x2d1   : > { %v1800_v6 = vmul.f32 %v3150_v28, %v2806_v21  ;;  %v3168_v21 = vpop.eup %3167  ;;  %v1434_v28 = vpop.xlane.xlu0 %1433 }
 0x2d2   : > { %v2808_v25 = vpop.f32.mrf.mxu0  ;;  %3175 = vrcp.f32 %v1434_v28 }
 0x2d3   : > { %v1893_v19 = vpack.c.bf16 %v1800_v6, %v1799_v3  ;;  %v2809_v53 = vadd.f32 %v2808_v25, %v2807_v24  ;;  %v3170_v24 = vpop.eup %3169  ;;  %v1437_v3 = vpop.xlane.xlu1 %1436 }
 0x2d4   : > { %v2810_v22 = vpop.f32.mrf.mxu0  ;;  %3177 = vrcp.f32 %v1437_v3 }
 0x2d5   : > { %2706 = vmatmul.mubr.msk.bf16.gmra.mxu1 %vm731_vm0, %v1893_v19  ;;  %v1801_v37 = vmul.f32 %v3152_v38, %v2809_v53 }
 0x2d6   : > { %v2811_v56 = vpop.f32.mrf.mxu0  ;;  %2065 = vmatprep.mubr.bf16.mxu1 %v3243_v35 }
 0x2d7   : > { %v2812_v55 = vadd.f32 %v2811_v56, %v2810_v22 }
 0x2d8   : > { %v2813_v34 = vpop.f32.mrf.mxu0 }
 0x2d9   : > { %v1802_v40 = vmul.f32 %v3154_v7, %v2812_v55  ;;  %v3172_v55 = vpop.eup %3171  ;;  %v1440_v7 = vpop.xlane.xlu0 %1439 }
 0x2da   : > { %v2814_v10 = vpop.f32.mrf.mxu0  ;;  %3179 = vrcp.f32 %v1440_v7 }
 0x2db   : > { %v1894_v57 = vpack.c.bf16 %v1802_v40, %v1801_v37  ;;  %v2815_v39 = vadd.f32 %v2814_v10, %v2813_v34  ;;  %v3174_v34 = vpop.eup %3173  ;;  %v1443_v37 = vpop.xlane.xlu1 %1442 }
 0x2dc   : > { %v2816_v60 = vpop.f32.mrf.mxu0  ;;  %3181 = vrcp.f32 %v1443_v37 }
 0x2dd   : > { %2707 = vmatmul.mubr.msk.bf16.gmra.mxu1 %vm731_vm0, %v1894_v57  ;;  %v1803_v16 = vmul.f32 %v3156_v23, %v2815_v39 }
 0x2de   : > { %v2817_v54 = vpop.f32.mrf.mxu0  ;;  %2075 = vmatprep.mubr.bf16.mxu1 %v3243_v35 }
 0x2df   : > { %v2818_v42 = vadd.f32 %v2817_v54, %v2816_v60 }
 0x2e0   : > { %v2819_v44 = vpop.f32.mrf.mxu0 }
 0x2e1   : > { %v1804_v63 = vmul.f32 %v3158_v30, %v2818_v42  ;;  %v3176_v42 = vpop.eup %3175  ;;  %v1446_v30 = vpop.xlane.xlu0 %1445 }
 0x2e2   : > { %v2820_v4 = vpop.f32.mrf.mxu0  ;;  %3183 = vrcp.f32 %v1446_v30 }
 0x2e3   : > { %v1895_v0 = vpack.c.bf16 %v1804_v63, %v1803_v16  ;;  %v2821_v14 = vadd.f32 %v2820_v4, %v2819_v44  ;;  %v3178_v44 = vpop.eup %3177  ;;  %v1449_v16 = vpop.xlane.xlu1 %1448 }
 0x2e4   : > { %v2822_v11 = vpop.f32.mrf.mxu0  ;;  %3185 = vrcp.f32 %v1449_v16 }
 0x2e5   : > { %2708 = vmatmul.mubr.msk.bf16.gmra.mxu1 %vm731_vm0, %v1895_v0  ;;  %v1805_v27 = vmul.f32 %v3160_v50, %v2821_v14 }
 0x2e6   : > { %v2823_v43 = vpop.f32.mrf.mxu0  ;;  %2085 = vmatprep.mubr.bf16.mxu1 %v3243_v35 }
 0x2e7   : > { %v2824_v46 = vadd.f32 %v2823_v43, %v2822_v11 }
 0x2e8   : > { %v2825_v15 = vpop.f32.mrf.mxu1 }
 0x2e9   : > { %v1806_v45 = vmul.f32 %v3162_v5, %v2824_v46  ;;  %v3180_v46 = vpop.eup %3179  ;;  %v1452_v5 = vpop.xlane.xlu0 %1451 }
 0x2ea   : > { %v2826_v51 = vpop.f32.mrf.mxu1  ;;  %3187 = vrcp.f32 %v1452_v5 }
 0x2eb   : > { %v1896_v58 = vpack.c.bf16 %v1806_v45, %v1805_v27  ;;  %v2827_v32 = vadd.f32 %v2826_v51, %v2825_v15  ;;  %v3182_v15 = vpop.eup %3181  ;;  %v1455_v27 = vpop.xlane.xlu1 %1454 }
 0x2ec   : > { %v2828_v48 = vpop.f32.mrf.mxu1  ;;  %3189 = vrcp.f32 %v1455_v27 }
 0x2ed   : > { %2709 = vmatmul.mubr.msk.bf16.gmra.mxu1 %vm731_vm0, %v1896_v58  ;;  %v1807_v8 = vmul.f32 %v3164_v18, %v2827_v32 }
 0x2ee   : > { %v2829_v1 = vpop.f32.mrf.mxu1  ;;  %2095 = vmatprep.mubr.bf16.mxu1 %v3243_v35 }
 0x2ef   : > { %v2830_v13 = vadd.f32 %v2829_v1, %v2828_v48 }
 0x2f0   : > { %v2831_v59 = vpop.f32.mrf.mxu1 }
 0x2f1   : > { %v1808_v20 = vmul.f32 %v3166_v2, %v2830_v13  ;;  %v3184_v13 = vpop.eup %3183  ;;  %v1458_v2 = vpop.xlane.xlu0 %1457 }
 0x2f2   : > { %v2832_v49 = vpop.f32.mrf.mxu1  ;;  %3191 = vrcp.f32 %v1458_v2  ;;  %v1830_v2 = vld [vmem:[#allocation2 + $0x18] sm:$0xff] }
 0x2f3   : > { %v1897_v52 = vpack.c.bf16 %v1808_v20, %v1807_v8  ;;  %v2833_v33 = vadd.f32 %v2832_v49, %v2831_v59  ;;  %v3186_v59 = vpop.eup %3185  ;;  %v1461_v8 = vpop.xlane.xlu1 %1460 }
 0x2f4   : > { %v2834_v17 = vpop.f32.mrf.mxu1  ;;  %3193 = vrcp.f32 %v1461_v8 }
 0x2f5   : > { %2710 = vmatmul.mubr.msk.bf16.gmra.mxu1 %vm731_vm0, %v1897_v52  ;;  %v1809_v25 = vmul.f32 %v3168_v21, %v2833_v33 }
 0x2f6   : > { %v2835_v36 = vpop.f32.mrf.mxu1  ;;  %2105 = vmatprep.mubr.bf16.mxu1 %v3243_v35 }
 0x2f7   : > { %v2836_v9 = vadd.f32 %v2835_v36, %v2834_v17 }
 0x2f8   : > { %v2837_v6 = vpop.f32.mrf.mxu1 }
 0x2f9   : > { %v1810_v19 = vmul.f32 %v3170_v24, %v2836_v9  ;;  %v3188_v9 = vpop.eup %3187  ;;  %v1464_v24 = vpop.xlane.xlu0 %1463 }
 0x2fa   : > { %v2838_v22 = vpop.f32.mrf.mxu1  ;;  %3195 = vrcp.f32 %v1464_v24 }
 0x2fb   : > { %v1898_v53 = vpack.c.bf16 %v1810_v19, %v1809_v25  ;;  %v2839_v38 = vadd.f32 %v2838_v22, %v2837_v6  ;;  %v3190_v6 = vpop.eup %3189  ;;  %v1467_v25 = vpop.xlane.xlu1 %1466 }
 0x2fc   : > { %v2840_v56 = vpop.f32.mrf.mxu1  ;;  %3197 = vrcp.f32 %v1467_v25 }
 0x2fd   : > { %2711 = vmatmul.mubr.msk.bf16.gmra.mxu1 %vm731_vm0, %v1898_v53  ;;  %v1811_v10 = vmul.f32 %v3172_v55, %v2839_v38 }
 0x2fe   : > { %v2841_v31 = vpop.f32.mrf.mxu1  ;;  %2115 = vmatprep.mubr.bf16.mxu1 %v3243_v35 }
 0x2ff   : > { %v2842_v29 = vadd.f32 %v2841_v31, %v2840_v56 }
 0x300   : > { %v2843_v40 = vpop.f32.mrf.mxu1 }
 0x301   : > { %v1812_v57 = vmul.f32 %v3174_v34, %v2842_v29  ;;  %v3192_v29 = vpop.eup %3191  ;;  %v1470_v34 = vpop.xlane.xlu0 %1469 }
 0x302   : > { %v2844_v60 = vpop.f32.mrf.mxu1  ;;  %3199 = vrcp.f32 %v1470_v34  ;;  %v1839_v34 = vld [vmem:[#allocation2 + $0x120] sm:$0xff] }
 0x303   : > { %v1899_v39 = vpack.c.bf16 %v1812_v57, %v1811_v10  ;;  %v2845_v23 = vadd.f32 %v2844_v60, %v2843_v40  ;;  %v3194_v40 = vpop.eup %3193  ;;  %v1473_v10 = vpop.xlane.xlu1 %1472 }
 0x304   : > { %v2846_v54 = vpop.f32.mrf.mxu1  ;;  %3201 = vrcp.f32 %v1473_v10  ;;  %v1840_v10 = vld [vmem:[#allocation2 + $0x150] sm:$0xff] }
 0x305   : > { %2712 = vmatmul.mubr.msk.bf16.gmra.mxu1 %vm731_vm0, %v1899_v39  ;;  %v1813_v4 = vmul.f32 %v3176_v42, %v2845_v23 }
 0x306   : > { %v2847_v26 = vpop.f32.mrf.mxu1  ;;  %2125 = vmatprep.mubr.bf16.mxu1 %v3243_v35 }
 0x307   : > { %v2848_v41 = vadd.f32 %v2847_v26, %v2846_v54 }
 0x308   : > { %v2849_v63 = vpop.f32.mrf.mxu1 }
 0x309   : > { %v1814_v0 = vmul.f32 %v3178_v44, %v2848_v41  ;;  %v3196_v41 = vpop.eup %3195 }
 0x30a   : > { %v2850_v11 = vpop.f32.mrf.mxu1  ;;  %v3198_v16 = vpop.eup %3197 }
 0x30b   : > { %v1900_v14 = vpack.c.bf16 %v1814_v0, %v1813_v4  ;;  %v2851_v50 = vadd.f32 %v2850_v11, %v2849_v63 }
 0x30c   : > { %v2852_v43 = vpop.f32.mrf.mxu1 }
 0x30d   : > { %2713 = vmatmul.mubr.msk.bf16.gmra.mxu1 %vm731_vm0, %v1900_v14  ;;  %v1815_v51 = vmul.f32 %v3180_v46, %v2851_v50 }
 0x30e   : > { %v2853_v61 = vpop.f32.mrf.mxu1  ;;  %2135 = vmatprep.mubr.bf16.mxu1 %v3243_v35 }
 0x30f   : > { %v2854_v12 = vadd.f32 %v2853_v61, %v2852_v43  ;;  %v3200_v46 = vpop.eup %3199 }
 0x310   : > { %v2855_v45 = vpop.f32.mrf.mxu1 }
 0x311   : > { %v1816_v58 = vmul.f32 %v3182_v15, %v2854_v12  ;;  %v3202_v12 = vpop.eup %3201 }
 0x312   : > { %v2856_v48 = vpop.f32.mrf.mxu1 }
 0x313   : > { %v1901_v32 = vpack.c.bf16 %v1816_v58, %v1815_v51  ;;  %v2857_v18 = vadd.f32 %v2856_v48, %v2855_v45  ;;  %v1827_v51 = vld [vmem:[#allocation2 + $0xb0] sm:$0xff] }
 0x314   : > { %v2858_v1 = vpop.f32.mrf.mxu1  ;;  %v1828_v48 = vld [vmem:[#allocation2 + $0x1b0] sm:$0xff] }
 0x315   : > { %2714 = vmatmul.mubr.msk.bf16.gmra.mxu1 %vm731_vm0, %v1901_v32  ;;  %v1817_v49 = vmul.f32 %v3184_v13, %v2857_v18  ;;  %v1829_v18 = vld [vmem:[#allocation2 + $0xd8] sm:$0xff] }
 0x316   : > { %v2859_v62 = vpop.f32.mrf.mxu1  ;;  %2145 = vmatprep.mubr.bf16.mxu1 %v3243_v35 }
 0x317   : > { %v2860_v47 = vadd.f32 %v2859_v62, %v2858_v1 }
 0x318   : > { %v2861_v20 = vpop.f32.mrf.mxu1 }
 0x319   : > { %v1818_v52 = vmul.f32 %v3186_v59, %v2860_v47  ;;  %v1831_v59 = vld [vmem:[#allocation2 + $0x50] sm:$0xff] }
 0x31a   : > { %v2862_v17 = vpop.f32.mrf.mxu1 }
 0x31b   : > { %v1902_v33 = vpack.c.bf16 %v1818_v52, %v1817_v49  ;;  %v2863_v21 = vadd.f32 %v2862_v17, %v2861_v20  ;;  %v1832_v49 = vld [vmem:[#allocation2 + $0x168] sm:$0xff] }
 0x31c   : > { %v2864_v36 = vpop.f32.mrf.mxu1 }
 0x31d   : > { %2715 = vmatmul.mubr.msk.bf16.gmra.mxu1 %vm731_vm0, %v1902_v33  ;;  %v1819_v22 = vmul.f32 %v3188_v9, %v2863_v21  ;;  %v1833_v33 = vld [vmem:[#allocation2 + $0x130] sm:$0xff] }
 0x31e   : > { %v2865_v28 = vpop.f32.mrf.mxu1  ;;  %2155 = vmatprep.mubr.bf16.mxu1 %v3243_v35 }
 0x31f   : > { %v2866_v3 = vadd.f32 %v2865_v28, %v2864_v36  ;;  %v1834_v28 = vld [vmem:[#allocation2 + $0x48] sm:$0xff] }
 0x320   : > { %v2867_v19 = vpop.f32.mrf.mxu1 }
 0x321   : > { %v1820_v53 = vmul.f32 %v3190_v6, %v2866_v3  ;;  %v1835_v3 = vld [vmem:[#allocation2 + $0x180] sm:$0xff] }
 0x322   : > { %v2868_v56 = vpop.f32.mrf.mxu1 }
 0x323   : > { %v1903_v38 = vpack.c.bf16 %v1820_v53, %v1819_v22  ;;  %v2869_v55 = vadd.f32 %v2868_v56, %v2867_v19  ;;  %v1836_v19 = vld [vmem:[#allocation2 + $0x110] sm:$0xff]  ;;  %v1837_v56 = vld [vmem:[#allocation2 + $0x118] sm:$0xff] }
 0x324   : > { %v2870_v31 = vpop.f32.mrf.mxu1 }
 0x325   : > { %2716 = vmatmul.mubr.msk.bf16.gmra.mxu1 %vm731_vm0, %v1903_v38  ;;  %v1821_v60 = vmul.f32 %v3192_v29, %v2869_v55  ;;  %v1838_v55 = vld [vmem:[#allocation2 + $0x98] sm:$0xff] }
 0x326   : > { %v2871_v7 = vpop.f32.mrf.mxu1  ;;  %2165 = vmatprep.mubr.bf16.mxu1 %v3243_v35 }
 0x327   : > { %v2872_v37 = vadd.f32 %v2871_v7, %v2870_v31 }
 0x328   : > { %v2873_v57 = vpop.f32.mrf.mxu1 }
 0x329   : > { %v1822_v39 = vmul.f32 %v3194_v40, %v2872_v37 }
 0x32a   : > { %v2874_v54 = vpop.f32.mrf.mxu1 }
 0x32b   : > { %v1904_v23 = vpack.c.bf16 %v1822_v39, %v1821_v60  ;;  %v2875_v42 = vadd.f32 %v2874_v54, %v2873_v57  ;;  %v1841_v39 = vld [vmem:[#allocation2 + $0x108] sm:$0xff] }
 0x32c   : > { %v2876_v26 = vpop.f32.mrf.mxu1 }
 0x32d   : > { %2717 = vmatmul.mubr.msk.bf16.gmra.mxu1 %vm731_vm0, %v1904_v23  ;;  %v1823_v4 = vmul.f32 %v3196_v41, %v2875_v42  ;;  %v1843_v41 = vld [vmem:[#allocation2 + $0xe0] sm:$0xff] }
 0x32e   : > { %v2877_v30 = vpop.f32.mrf.mxu1  ;;  %2175 = vmatprep.mubr.bf16.mxu1 %v3243_v35 }
 0x32f   : > { %v2878_v44 = vadd.f32 %v2877_v30, %v2876_v26  ;;  %v1842_v26 = vld [vmem:[#allocation2 + $0x60] sm:$0xff] }
 0x330   : > { %v2879_v63 = vpop.f32.mrf.mxu1 }
 0x331   : > { %v1824_v0 = vmul.f32 %v3198_v16, %v2878_v44 }
 0x332   : > { %v2880_v11 = vpop.f32.mrf.mxu1 }
 0x333   : > { %v1905_v14 = vpack.c.bf16 %v1824_v0, %v1823_v4  ;;  %v2881_v50 = vadd.f32 %v2880_v11, %v2879_v63  ;;  %v1844_v63 = vld [vmem:[#allocation2 + $0x188] sm:$0xff]  ;;  %v1845_v11 = vld [vmem:[#allocation2 + $0x138] sm:$0xff] }
 0x334   : > { %v2882_v43 = vpop.f32.mrf.mxu1 }
 0x335   : > { %2718 = vmatmul.mubr.msk.bf16.gmra.mxu1 %vm731_vm0, %v1905_v14  ;;  %v1825_v15 = vmul.f32 %v3200_v46, %v2881_v50  ;;  %v1846_v50 = vld [vmem:[#allocation2 + $0x140] sm:$0xff] }
 0x336   : > { %v2883_v61 = vpop.f32.mrf.mxu1  ;;  %2185 = vmatprep.mubr.bf16.mxu1 %v3243_v35 }
 0x337   : > { %v2884_v5 = vadd.f32 %v2883_v61, %v2882_v43 }
 0x339   : > { %v1826_v27 = vmul.f32 %v3202_v12, %v2884_v5  ;;  %v1847_v5 = vld [vmem:[#allocation2 + $0x80] sm:$0xff] }
 0x33b   : > { %v1906_v45 = vpack.c.bf16 %v1826_v27, %v1825_v15  ;;  %v1848_v27 = vld [vmem:[#allocation2 + $0x1a8] sm:$0xff] }
 0x33d   : > { %2719 = vmatmul.mubr.msk.bf16.gmra.mxu1 %vm731_vm0, %v1906_v45 }
 0x385   : > { %v2037_v58 = vpop.f32.mrf.mxu1 }
 0x386   : > { %v2196_v32 = vadd.f32 %v2037_v58, %v1827_v51  ;;  %v1849_v58 = vld [vmem:[#allocation2 + $0x1b8] sm:$0xff] }
 0x387   : > { %v2039_v1 = vpop.f32.mrf.mxu1 }
 0x388   : > { %2260 = vst [vmem:[#allocation2 + $0xb0] sm:$0xff] %v2196_v32  ;;  %v2197_v62 = vadd.f32 %v2039_v1, %v1828_v48  ;;  %v1850_v1 = vld [vmem:[#allocation2 + $0x28] sm:$0xff] }
 0x389   : > { %v2041_v13 = vpop.f32.mrf.mxu1 }
 0x38a   : > { %2261 = vst [vmem:[#allocation2 + $0x1b0] sm:$0xff] %v2197_v62  ;;  %v2198_v35 = vadd.f32 %v2041_v13, %v1829_v18  ;;  %v1851_v13 = vld [vmem:[#allocation2 + $0x1e8] sm:$0xff] }
 0x38b   : > { %v2043_v47 = vpop.f32.mrf.mxu1 }
 0x38c   : > { %2262 = vst [vmem:[#allocation2 + $0xd8] sm:$0xff] %v2198_v35  ;;  %v2199_v8 = vadd.f32 %v2043_v47, %v1830_v2  ;;  %v1852_v47 = vld [vmem:[#allocation2 + $0xf8] sm:$0xff] }
 0x38d   : > { %v2047_v20 = vpop.f32.mrf.mxu1 }
 0x38e   : > { %2263 = vst [vmem:[#allocation2 + $0x18] sm:$0xff] %v2199_v8  ;;  %v2200_v52 = vadd.f32 %v2047_v20, %v1831_v59  ;;  %v1853_v20 = vld [vmem:[#allocation2 + $0x160] sm:$0xff] }
 0x38f   : > { %v2049_v17 = vpop.f32.mrf.mxu1 }
 0x390   : > { %2264 = vst [vmem:[#allocation2 + $0x50] sm:$0xff] %v2200_v52  ;;  %v2201_v36 = vadd.f32 %v2049_v17, %v1832_v49  ;;  %v1854_v17 = vld [vmem:[#allocation2 + $0x30] sm:$0xff] }
 0x391   : > { %v2051_v21 = vpop.f32.mrf.mxu1 }
 0x392   : > { %2265 = vst [vmem:[#allocation2 + $0x168] sm:$0xff] %v2201_v36  ;;  %v2202_v9 = vadd.f32 %v2051_v21, %v1833_v33  ;;  %v1855_v21 = vld [vmem:[#allocation2 + $0x1e0] sm:$0xff] }
 0x393   : > { %v2053_v24 = vpop.f32.mrf.mxu1 }
 0x394   : > { %2266 = vst [vmem:[#allocation2 + $0x130] sm:$0xff] %v2202_v9  ;;  %v2203_v6 = vadd.f32 %v2053_v24, %v1834_v28  ;;  %v1856_v24 = vld [vmem:[#allocation2] sm:$0xff] }
 0x395   : > { %v2057_v25 = vpop.f32.mrf.mxu1 }
 0x396   : > { %2267 = vst [vmem:[#allocation2 + $0x48] sm:$0xff] %v2203_v6  ;;  %v2204_v22 = vadd.f32 %v2057_v25, %v1835_v3  ;;  %v1857_v25 = vld [vmem:[#allocation2 + $0xf0] sm:$0xff] }
 0x397   : > { %v2059_v53 = vpop.f32.mrf.mxu1 }
 0x398   : > { %2268 = vst [vmem:[#allocation2 + $0x180] sm:$0xff] %v2204_v22  ;;  %v2205_v38 = vadd.f32 %v2059_v53, %v1836_v19  ;;  %v1858_v53 = vld [vmem:[#allocation2 + $0x8] sm:$0xff] }
 0x399   : > { %v2061_v31 = vpop.f32.mrf.mxu1 }
 0x39a   : > { %2269 = vst [vmem:[#allocation2 + $0x110] sm:$0xff] %v2205_v38  ;;  %v2206_v7 = vadd.f32 %v2061_v31, %v1837_v56  ;;  %v1859_v31 = vld [vmem:[#allocation2 + $0x148] sm:$0xff] }
 0x39b   : > { %v2063_v29 = vpop.f32.mrf.mxu1 }
 0x39c   : > { %2270 = vst [vmem:[#allocation2 + $0x118] sm:$0xff] %v2206_v7  ;;  %v2207_v37 = vadd.f32 %v2063_v29, %v1838_v55  ;;  %v1860_v29 = vld [vmem:[#allocation2 + $0x1d0] sm:$0xff] }
 0x39d   : > { %v2067_v40 = vpop.f32.mrf.mxu1 }
 0x39e   : > { %2271 = vst [vmem:[#allocation2 + $0x98] sm:$0xff] %v2207_v37  ;;  %v2208_v57 = vadd.f32 %v2067_v40, %v1839_v34  ;;  %v1861_v40 = vld [vmem:[#allocation2 + $0x100] sm:$0xff] }
 0x39f   : > { %v2069_v60 = vpop.f32.mrf.mxu1 }
 0x3a0   : > { %2272 = vst [vmem:[#allocation2 + $0x120] sm:$0xff] %v2208_v57  ;;  %v2209_v54 = vadd.f32 %v2069_v60, %v1840_v10  ;;  %v1862_v60 = vld [vmem:[#allocation2 + $0xc8] sm:$0xff] }
 0x3a1   : > { %v2071_v23 = vpop.f32.mrf.mxu1 }
 0x3a2   : > { %2273 = vst [vmem:[#allocation2 + $0x150] sm:$0xff] %v2209_v54  ;;  %v2210_v42 = vadd.f32 %v2071_v23, %v1841_v39  ;;  %v1863_v23 = vld [vmem:[#allocation2 + $0x40] sm:$0xff] }
 0x3a3   : > { %v2073_v30 = vpop.f32.mrf.mxu1 }
 0x3a4   : > { %2274 = vst [vmem:[#allocation2 + $0x108] sm:$0xff] %v2210_v42  ;;  %v2211_v44 = vadd.f32 %v2073_v30, %v1842_v26  ;;  %v1864_v30 = vld [vmem:[#allocation2 + $0x1f8] sm:$0xff] }
 0x3a5   : > { %v2077_v16 = vpop.f32.mrf.mxu1 }
 0x3a6   : > { %2275 = vst [vmem:[#allocation2 + $0x60] sm:$0xff] %v2211_v44  ;;  %v2212_v4 = vadd.f32 %v2077_v16, %v1843_v41  ;;  %v1865_v16 = vld [vmem:[#allocation2 + $0x20] sm:$0xff] }
 0x3a7   : > { %v2079_v0 = vpop.f32.mrf.mxu1 }
 0x3a8   : > { %2276 = vst [vmem:[#allocation2 + $0xe0] sm:$0xff] %v2212_v4  ;;  %v2213_v14 = vadd.f32 %v2079_v0, %v1844_v63  ;;  %v1866_v0 = vld [vmem:[#allocation2 + $0x128] sm:$0xff] }
 0x3a9   : > { %v2081_v43 = vpop.f32.mrf.mxu1 }
 0x3aa   : > { %2277 = vst [vmem:[#allocation2 + $0x188] sm:$0xff] %v2213_v14  ;;  %v2214_v61 = vadd.f32 %v2081_v43, %v1845_v11  ;;  %v1867_v43 = vld [vmem:[#allocation2 + $0x1a0] sm:$0xff] }
 0x3ab   : > { %v2083_v46 = vpop.f32.mrf.mxu1 }
 0x3ac   : > { %2278 = vst [vmem:[#allocation2 + $0x138] sm:$0xff] %v2214_v61  ;;  %v2215_v12 = vadd.f32 %v2083_v46, %v1846_v50  ;;  %v1868_v46 = vld [vmem:[#allocation2 + $0x1f0] sm:$0xff] }
 0x3ad   : > { %v2087_v15 = vpop.f32.mrf.mxu1 }
 0x3ae   : > { %2279 = vst [vmem:[#allocation2 + $0x140] sm:$0xff] %v2215_v12  ;;  %v2216_v45 = vadd.f32 %v2087_v15, %v1847_v5  ;;  %v1869_v15 = vld [vmem:[#allocation2 + $0xe8] sm:$0xff] }
 0x3af   : > { %v2089_v51 = vpop.f32.mrf.mxu1 }
 0x3b0   : > { %2280 = vst [vmem:[#allocation2 + $0x80] sm:$0xff] %v2216_v45  ;;  %v2217_v48 = vadd.f32 %v2089_v51, %v1848_v27  ;;  %v1870_v51 = vld [vmem:[#allocation2 + $0x78] sm:$0xff] }
 0x3b1   : > { %v2091_v32 = vpop.f32.mrf.mxu1 }
 0x3b2   : > { %2281 = vst [vmem:[#allocation2 + $0x1a8] sm:$0xff] %v2217_v48  ;;  %v2218_v18 = vadd.f32 %v2091_v32, %v1849_v58  ;;  %v1871_v32 = vld [vmem:[#allocation2 + $0x70] sm:$0xff] }
 0x3b3   : > { %v2093_v62 = vpop.f32.mrf.mxu1 }
 0x3b4   : > { %2282 = vst [vmem:[#allocation2 + $0x1b8] sm:$0xff] %v2218_v18  ;;  %v2219_v2 = vadd.f32 %v2093_v62, %v1850_v1  ;;  %v1872_v62 = vld [vmem:[#allocation2 + $0x90] sm:$0xff] }
 0x3b5   : > { %v2097_v35 = vpop.f32.mrf.mxu1 }
 0x3b6   : > { %2283 = vst [vmem:[#allocation2 + $0x28] sm:$0xff] %v2219_v2  ;;  %v2220_v59 = vadd.f32 %v2097_v35, %v1851_v13  ;;  %v1873_v35 = vld [vmem:[#allocation2 + $0x1d8] sm:$0xff] }
 0x3b7   : > { %v2099_v8 = vpop.f32.mrf.mxu1 }
 0x3b8   : > { %2284 = vst [vmem:[#allocation2 + $0x1e8] sm:$0xff] %v2220_v59  ;;  %v2221_v49 = vadd.f32 %v2099_v8, %v1852_v47  ;;  %v1874_v8 = vld [vmem:[#allocation2 + $0xd0] sm:$0xff] }
 0x3b9   : > { %v2101_v52 = vpop.f32.mrf.mxu1 }
 0x3ba   : > { %2285 = vst [vmem:[#allocation2 + $0xf8] sm:$0xff] %v2221_v49  ;;  %v2222_v33 = vadd.f32 %v2101_v52, %v1853_v20  ;;  %v1875_v52 = vld [vmem:[#allocation2 + $0xb8] sm:$0xff] }
 0x3bb   : > { %v2103_v36 = vpop.f32.mrf.mxu1 }
 0x3bc   : > { %2286 = vst [vmem:[#allocation2 + $0x160] sm:$0xff] %v2222_v33  ;;  %v2223_v28 = vadd.f32 %v2103_v36, %v1854_v17  ;;  %v1876_v36 = vld [vmem:[#allocation2 + $0x88] sm:$0xff] }
 0x3bd   : > { %v2107_v9 = vpop.f32.mrf.mxu1 }
 0x3be   : > { %2287 = vst [vmem:[#allocation2 + $0x30] sm:$0xff] %v2223_v28  ;;  %v2224_v3 = vadd.f32 %v2107_v9, %v1855_v21  ;;  %v1877_v9 = vld [vmem:[#allocation2 + $0xa8] sm:$0xff] }
 0x3bf   : > { %v2109_v6 = vpop.f32.mrf.mxu1 }
 0x3c0   : > { %2288 = vst [vmem:[#allocation2 + $0x1e0] sm:$0xff] %v2224_v3  ;;  %v2225_v19 = vadd.f32 %v2109_v6, %v1856_v24  ;;  %v1878_v6 = vld [vmem:[#allocation2 + $0x1c8] sm:$0xff] }
 0x3c1   : > { %v2111_v22 = vpop.f32.mrf.mxu1 }
 0x3c2   : > { %2289 = vst [vmem:[#allocation2] sm:$0xff] %v2225_v19  ;;  %v2226_v56 = vadd.f32 %v2111_v22, %v1857_v25  ;;  %v1879_v22 = vld [vmem:[#allocation2 + $0x170] sm:$0xff] }
 0x3c3   : > { %v2113_v38 = vpop.f32.mrf.mxu1 }
 0x3c4   : > { %2290 = vst [vmem:[#allocation2 + $0xf0] sm:$0xff] %v2226_v56  ;;  %v2227_v55 = vadd.f32 %v2113_v38, %v1858_v53  ;;  %v1880_v38 = vld [vmem:[#allocation2 + $0x178] sm:$0xff] }
 0x3c5   : > { %v2117_v7 = vpop.f32.mrf.mxu1 }
 0x3c6   : > { %2291 = vst [vmem:[#allocation2 + $0x8] sm:$0xff] %v2227_v55  ;;  %v2228_v34 = vadd.f32 %v2117_v7, %v1859_v31  ;;  %v1881_v7 = vld [vmem:[#allocation2 + $0x68] sm:$0xff] }
 0x3c7   : > { %v2119_v37 = vpop.f32.mrf.mxu1 }
 0x3c8   : > { %2292 = vst [vmem:[#allocation2 + $0x148] sm:$0xff] %v2228_v34  ;;  %v2229_v10 = vadd.f32 %v2119_v37, %v1860_v29  ;;  %v1882_v37 = vld [vmem:[#allocation2 + $0x190] sm:$0xff] }
 0x3c9   : > { %v2121_v57 = vpop.f32.mrf.mxu1 }
 0x3ca   : > { %2293 = vst [vmem:[#allocation2 + $0x1d0] sm:$0xff] %v2229_v10  ;;  %v2230_v39 = vadd.f32 %v2121_v57, %v1861_v40  ;;  %v1883_v57 = vld [vmem:[#allocation2 + $0x198] sm:$0xff] }
 0x3cb   : > { %v2123_v54 = vpop.f32.mrf.mxu1 }
 0x3cc   : > { %2294 = vst [vmem:[#allocation2 + $0x100] sm:$0xff] %v2230_v39  ;;  %v2231_v26 = vadd.f32 %v2123_v54, %v1862_v60  ;;  %v1884_v54 = vld [vmem:[#allocation2 + $0x38] sm:$0xff] }
 0x3cd   : > { %v2127_v42 = vpop.f32.mrf.mxu1 }
 0x3ce   : > { %2295 = vst [vmem:[#allocation2 + $0xc8] sm:$0xff] %v2231_v26  ;;  %v2232_v41 = vadd.f32 %v2127_v42, %v1863_v23  ;;  %v1885_v42 = vld [vmem:[#allocation2 + $0xc0] sm:$0xff] }
 0x3cf   : > { %v2129_v44 = vpop.f32.mrf.mxu1 }
 0x3d0   : > { %2296 = vst [vmem:[#allocation2 + $0x40] sm:$0xff] %v2232_v41  ;;  %v2233_v63 = vadd.f32 %v2129_v44, %v1864_v30  ;;  %v1886_v44 = vld [vmem:[#allocation2 + $0x1c0] sm:$0xff] }
 0x3d1   : > { %v2131_v4 = vpop.f32.mrf.mxu1 }
 0x3d2   : > { %2297 = vst [vmem:[#allocation2 + $0x1f8] sm:$0xff] %v2233_v63  ;;  %v2234_v11 = vadd.f32 %v2131_v4, %v1865_v16  ;;  %v1887_v4 = vld [vmem:[#allocation2 + $0x158] sm:$0xff] }
 0x3d3   : > { %v2133_v14 = vpop.f32.mrf.mxu1 }
 0x3d4   : > { %2298 = vst [vmem:[#allocation2 + $0x20] sm:$0xff] %v2234_v11  ;;  %v2235_v50 = vadd.f32 %v2133_v14, %v1866_v0  ;;  %v1888_v14 = vld [vmem:[#allocation2 + $0x10] sm:$0xff] }
 0x3d5   : > { %v2137_v61 = vpop.f32.mrf.mxu1 }
 0x3d6   : > { %2299 = vst [vmem:[#allocation2 + $0x128] sm:$0xff] %v2235_v50  ;;  %v2236_v5 = vadd.f32 %v2137_v61, %v1867_v43  ;;  %v1889_v61 = vld [vmem:[#allocation2 + $0x58] sm:$0xff] }
 0x3d7   : > { %v2139_v12 = vpop.f32.mrf.mxu1 }
 0x3d8   : > { %2300 = vst [vmem:[#allocation2 + $0x1a0] sm:$0xff] %v2236_v5  ;;  %v2237_v27 = vadd.f32 %v2139_v12, %v1868_v46  ;;  %v1890_v12 = vld [vmem:[#allocation2 + $0xa0] sm:$0xff] }
 0x3d9   : > { %v2141_v45 = vpop.f32.mrf.mxu1 }
 0x3da   : > { %2301 = vst [vmem:[#allocation2 + $0x1f0] sm:$0xff] %v2237_v27  ;;  %v2238_v58 = vadd.f32 %v2141_v45, %v1869_v15 }
 0x3db   : > { %v2143_v48 = vpop.f32.mrf.mxu1 }
 0x3dc   : > { %2302 = vst [vmem:[#allocation2 + $0xe8] sm:$0xff] %v2238_v58  ;;  %v2239_v1 = vadd.f32 %v2143_v48, %v1870_v51 }
 0x3dd   : > { %v2147_v18 = vpop.f32.mrf.mxu1 }
 0x3de   : > { %2303 = vst [vmem:[#allocation2 + $0x78] sm:$0xff] %v2239_v1  ;;  %v2240_v13 = vadd.f32 %v2147_v18, %v1871_v32 }
 0x3df   : > { %v2149_v2 = vpop.f32.mrf.mxu1 }
 0x3e0   : > { %2304 = vst [vmem:[#allocation2 + $0x70] sm:$0xff] %v2240_v13  ;;  %v2241_v47 = vadd.f32 %v2149_v2, %v1872_v62 }
 0x3e1   : > { %v2151_v59 = vpop.f32.mrf.mxu1 }
 0x3e2   : > { %2305 = vst [vmem:[#allocation2 + $0x90] sm:$0xff] %v2241_v47  ;;  %v2242_v20 = vadd.f32 %v2151_v59, %v1873_v35 }
 0x3e3   : > { %v2153_v49 = vpop.f32.mrf.mxu1 }
 0x3e4   : > { %2306 = vst [vmem:[#allocation2 + $0x1d8] sm:$0xff] %v2242_v20  ;;  %v2243_v17 = vadd.f32 %v2153_v49, %v1874_v8 }
 0x3e5   : > { %v2157_v33 = vpop.f32.mrf.mxu1 }
 0x3e6   : > { %2307 = vst [vmem:[#allocation2 + $0xd0] sm:$0xff] %v2243_v17  ;;  %v2244_v21 = vadd.f32 %v2157_v33, %v1875_v52 }
 0x3e7   : > { %v2159_v28 = vpop.f32.mrf.mxu1 }
 0x3e8   : > { %2308 = vst [vmem:[#allocation2 + $0xb8] sm:$0xff] %v2244_v21  ;;  %v2245_v24 = vadd.f32 %v2159_v28, %v1876_v36 }
 0x3e9   : > { %v2161_v3 = vpop.f32.mrf.mxu1 }
 0x3ea   : > { %2309 = vst [vmem:[#allocation2 + $0x88] sm:$0xff] %v2245_v24  ;;  %v2246_v25 = vadd.f32 %v2161_v3, %v1877_v9 }
 0x3eb   : > { %v2163_v19 = vpop.f32.mrf.mxu1 }
 0x3ec   : > { %2310 = vst [vmem:[#allocation2 + $0xa8] sm:$0xff] %v2246_v25  ;;  %v2247_v53 = vadd.f32 %v2163_v19, %v1878_v6 }
 0x3ed   : > { %v2167_v56 = vpop.f32.mrf.mxu1 }
 0x3ee   : > { %2311 = vst [vmem:[#allocation2 + $0x1c8] sm:$0xff] %v2247_v53  ;;  %v2248_v31 = vadd.f32 %v2167_v56, %v1879_v22 }
 0x3ef   : > { %v2169_v55 = vpop.f32.mrf.mxu1 }
 0x3f0   : > { %2312 = vst [vmem:[#allocation2 + $0x170] sm:$0xff] %v2248_v31  ;;  %v2249_v29 = vadd.f32 %v2169_v55, %v1880_v38 }
 0x3f1   : > { %v2171_v34 = vpop.f32.mrf.mxu1 }
 0x3f2   : > { %2313 = vst [vmem:[#allocation2 + $0x178] sm:$0xff] %v2249_v29  ;;  %v2250_v40 = vadd.f32 %v2171_v34, %v1881_v7 }
 0x3f3   : > { %v2173_v10 = vpop.f32.mrf.mxu1 }
 0x3f4   : > { %2314 = vst [vmem:[#allocation2 + $0x68] sm:$0xff] %v2250_v40  ;;  %v2251_v60 = vadd.f32 %v2173_v10, %v1882_v37 }
 0x3f5   : > { %v2177_v39 = vpop.f32.mrf.mxu1 }
 0x3f6   : > { %2315 = vst [vmem:[#allocation2 + $0x190] sm:$0xff] %v2251_v60  ;;  %v2252_v23 = vadd.f32 %v2177_v39, %v1883_v57 }
 0x3f7   : > { %v2179_v26 = vpop.f32.mrf.mxu1 }
 0x3f8   : > { %2316 = vst [vmem:[#allocation2 + $0x198] sm:$0xff] %v2252_v23  ;;  %v2253_v30 = vadd.f32 %v2179_v26, %v1884_v54 }
 0x3f9   : > { %v2181_v41 = vpop.f32.mrf.mxu1 }
 0x3fa   : > { %2317 = vst [vmem:[#allocation2 + $0x38] sm:$0xff] %v2253_v30  ;;  %v2254_v16 = vadd.f32 %v2181_v41, %v1885_v42 }
 0x3fb   : > { %v2183_v63 = vpop.f32.mrf.mxu1 }
 0x3fc   : > { %2318 = vst [vmem:[#allocation2 + $0xc0] sm:$0xff] %v2254_v16  ;;  %v2255_v0 = vadd.f32 %v2183_v63, %v1886_v44 }
 0x3fd   : > { %v2187_v11 = vpop.f32.mrf.mxu1 }
 0x3fe   : > { %2319 = vst [vmem:[#allocation2 + $0x1c0] sm:$0xff] %v2255_v0  ;;  %v2256_v43 = vadd.f32 %v2187_v11, %v1887_v4 }
 0x3ff   : > { %v2189_v50 = vpop.f32.mrf.mxu1 }
 0x400   : > { %2320 = vst [vmem:[#allocation2 + $0x158] sm:$0xff] %v2256_v43  ;;  %v2257_v46 = vadd.f32 %v2189_v50, %v1888_v14 }
 0x401   : > { %v2191_v5 = vpop.f32.mrf.mxu1 }
 0x402   : > { %2321 = vst [vmem:[#allocation2 + $0x10] sm:$0xff] %v2257_v46  ;;  %v2258_v15 = vadd.f32 %v2191_v5, %v1889_v61  ;;  %2327 = sbr.rel (%p2720_p11) target bundleno = 1064 (0x428), region = 48 }
 0x403   : > { %v2193_v27 = vpop.f32.mrf.mxu1 }
 0x404   : > { %2322 = vst [vmem:[#allocation2 + $0x58] sm:$0xff] %v2258_v15  ;;  %v2259_v45 = vadd.f32 %v2193_v27, %v1890_v12 }
 0x406   : > { %2323 = vst [vmem:[#allocation2 + $0xa0] sm:$0xff] %v2259_v45 }
 0x407   : > { %v2328_v51 = vld [vmem:[#allocation2 + $0xb0] sm:$0xff]  ;;  %v2330_v48 = vld [vmem:[#allocation2 + $0xd8] sm:$0xff]  ;;  %v2333_v18 = vld [vmem:[#allocation2 + $0x168] sm:$0xff] }
 0x408   : > { %v2329_v58 = vld [vmem:[#allocation2 + $0x1b0] sm:$0xff]  ;;  %2392 = vst [vmem:[%s3323_s16] sm:$0xff] %v2328_v51  ;;  %2394 = vst [vmem:[%s3323_s16 + $0x10] sm:$0xff] %v2330_v48  ;;  %v2331_v32 = vld [vmem:[#allocation2 + $0x18] sm:$0xff] }
 0x409   : > { %2393 = vst [vmem:[%s3323_s16 + $0x8] sm:$0xff] %v2329_v58  ;;  %v2332_v1 = vld [vmem:[#allocation2 + $0x50] sm:$0xff]  ;;  %2395 = vst [vmem:[%s3323_s16 + $0x18] sm:$0xff] %v2331_v32  ;;  %v2335_v13 = vld [vmem:[#allocation2 + $0x48] sm:$0xff] }
 0x40a   : > { %2396 = vst [vmem:[%s3323_s16 + $0x20] sm:$0xff] %v2332_v1  ;;  %2397 = vst [vmem:[%s3323_s16 + $0x28] sm:$0xff] %v2333_v18  ;;  %v2334_v62 = vld [vmem:[#allocation2 + $0x130] sm:$0xff]  ;;  %v2336_v2 = vld [vmem:[#allocation2 + $0x180] sm:$0xff] }
 0x40b   : > { %2398 = vst [vmem:[%s3323_s16 + $0x30] sm:$0xff] %v2334_v62  ;;  %2399 = vst [vmem:[%s3323_s16 + $0x38] sm:$0xff] %v2335_v13  ;;  %v2337_v35 = vld [vmem:[#allocation2 + $0x110] sm:$0xff]  ;;  %v2338_v47 = vld [vmem:[#allocation2 + $0x118] sm:$0xff] }
 0x40c   : > { %2400 = vst [vmem:[%s3323_s16 + $0x40] sm:$0xff] %v2336_v2  ;;  %v2339_v59 = vld [vmem:[#allocation2 + $0x98] sm:$0xff]  ;;  %2401 = vst [vmem:[%s3323_s16 + $0x48] sm:$0xff] %v2337_v35  ;;  %v2340_v8 = vld [vmem:[#allocation2 + $0x120] sm:$0xff] }
 0x40d   : > { %2402 = vst [vmem:[%s3323_s16 + $0x50] sm:$0xff] %v2338_v47  ;;  %2403 = vst [vmem:[%s3323_s16 + $0x58] sm:$0xff] %v2339_v59  ;;  %v2341_v20 = vld [vmem:[#allocation2 + $0x150] sm:$0xff]  ;;  %v2342_v49 = vld [vmem:[#allocation2 + $0x108] sm:$0xff] }
 0x40e   : > { %2404 = vst [vmem:[%s3323_s16 + $0x60] sm:$0xff] %v2340_v8  ;;  %2405 = vst [vmem:[%s3323_s16 + $0x68] sm:$0xff] %v2341_v20  ;;  %v2343_v52 = vld [vmem:[#allocation2 + $0x60] sm:$0xff]  ;;  %v2345_v33 = vld [vmem:[#allocation2 + $0x188] sm:$0xff] }
 0x40f   : > { %2406 = vst [vmem:[%s3323_s16 + $0x70] sm:$0xff] %v2342_v49  ;;  %v2344_v17 = vld [vmem:[#allocation2 + $0xe0] sm:$0xff]  ;;  %2407 = vst [vmem:[%s3323_s16 + $0x78] sm:$0xff] %v2343_v52  ;;  %v2346_v36 = vld [vmem:[#allocation2 + $0x138] sm:$0xff] }
 0x410   : > { %2408 = vst [vmem:[%s3323_s16 + $0x80] sm:$0xff] %v2344_v17  ;;  %2409 = vst [vmem:[%s3323_s16 + $0x88] sm:$0xff] %v2345_v33  ;;  %v2347_v21 = vld [vmem:[#allocation2 + $0x140] sm:$0xff]  ;;  %v2349_v9 = vld [vmem:[#allocation2 + $0x1a8] sm:$0xff] }
 0x411   : > { %v2348_v28 = vld [vmem:[#allocation2 + $0x80] sm:$0xff]  ;;  %2410 = vst [vmem:[%s3323_s16 + $0x90] sm:$0xff] %v2346_v36  ;;  %2411 = vst [vmem:[%s3323_s16 + $0x98] sm:$0xff] %v2347_v21  ;;  %v2350_v24 = vld [vmem:[#allocation2 + $0x1b8] sm:$0xff] }
 0x412   : > { %2412 = vst [vmem:[%s3323_s16 + $0xa0] sm:$0xff] %v2348_v28  ;;  %v2351_v3 = vld [vmem:[#allocation2 + $0x28] sm:$0xff]  ;;  %2413 = vst [vmem:[%s3323_s16 + $0xa8] sm:$0xff] %v2349_v9  ;;  %v2353_v25 = vld [vmem:[#allocation2 + $0xf8] sm:$0xff] }
 0x413   : > { %2414 = vst [vmem:[%s3323_s16 + $0xb0] sm:$0xff] %v2350_v24  ;;  %2415 = vst [vmem:[%s3323_s16 + $0xb8] sm:$0xff] %v2351_v3  ;;  %v2352_v6 = vld [vmem:[#allocation2 + $0x1e8] sm:$0xff]  ;;  %v2354_v19 = vld [vmem:[#allocation2 + $0x160] sm:$0xff] }
 0x414   : > { %2416 = vst [vmem:[%s3323_s16 + $0xc0] sm:$0xff] %v2352_v6  ;;  %2417 = vst [vmem:[%s3323_s16 + $0xc8] sm:$0xff] %v2353_v25  ;;  %v2355_v22 = vld [vmem:[#allocation2 + $0x30] sm:$0xff]  ;;  %v2356_v53 = vld [vmem:[#allocation2 + $0x1e0] sm:$0xff] }
 0x415   : > { %2418 = vst [vmem:[%s3323_s16 + $0xd0] sm:$0xff] %v2354_v19  ;;  %v2357_v56 = vld [vmem:[#allocation2] sm:$0xff]  ;;  %2419 = vst [vmem:[%s3323_s16 + $0xd8] sm:$0xff] %v2355_v22  ;;  %v2358_v38 = vld [vmem:[#allocation2 + $0xf0] sm:$0xff] }
 0x416   : > { %2420 = vst [vmem:[%s3323_s16 + $0xe0] sm:$0xff] %v2356_v53  ;;  %2421 = vst [vmem:[%s3323_s16 + $0xe8] sm:$0xff] %v2357_v56  ;;  %v2359_v31 = vld [vmem:[#allocation2 + $0x8] sm:$0xff]  ;;  %v2361_v7 = vld [vmem:[#allocation2 + $0x1d0] sm:$0xff] }
 0x417   : > { %v2360_v55 = vld [vmem:[#allocation2 + $0x148] sm:$0xff]  ;;  %2422 = vst [vmem:[%s3323_s16 + $0xf0] sm:$0xff] %v2358_v38  ;;  %2423 = vst [vmem:[%s3323_s16 + $0xf8] sm:$0xff] %v2359_v31  ;;  %v2362_v29 = vld [vmem:[#allocation2 + $0x100] sm:$0xff] }
 0x418   : > { %2424 = vst [vmem:[%s3323_s16 + $0x100] sm:$0xff] %v2360_v55  ;;  %v2363_v34 = vld [vmem:[#allocation2 + $0xc8] sm:$0xff]  ;;  %2425 = vst [vmem:[%s3323_s16 + $0x108] sm:$0xff] %v2361_v7  ;;  %v2364_v37 = vld [vmem:[#allocation2 + $0x40] sm:$0xff] }
 0x419   : > { %2426 = vst [vmem:[%s3323_s16 + $0x110] sm:$0xff] %v2362_v29  ;;  %2427 = vst [vmem:[%s3323_s16 + $0x118] sm:$0xff] %v2363_v34  ;;  %v2365_v40 = vld [vmem:[#allocation2 + $0x1f8] sm:$0xff]  ;;  %v2366_v10 = vld [vmem:[#allocation2 + $0x20] sm:$0xff] }
 0x41a   : > { %2428 = vst [vmem:[%s3323_s16 + $0x120] sm:$0xff] %v2364_v37  ;;  %2429 = vst [vmem:[%s3323_s16 + $0x128] sm:$0xff] %v2365_v40  ;;  %v2367_v57 = vld [vmem:[#allocation2 + $0x128] sm:$0xff]  ;;  %v2368_v60 = vld [vmem:[#allocation2 + $0x1a0] sm:$0xff] }
 0x41b   : > { %2430 = vst [vmem:[%s3323_s16 + $0x130] sm:$0xff] %v2366_v10  ;;  %v2369_v39 = vld [vmem:[#allocation2 + $0x1f0] sm:$0xff]  ;;  %2431 = vst [vmem:[%s3323_s16 + $0x138] sm:$0xff] %v2367_v57  ;;  %v2370_v54 = vld [vmem:[#allocation2 + $0xe8] sm:$0xff] }
 0x41c   : > { %2432 = vst [vmem:[%s3323_s16 + $0x140] sm:$0xff] %v2368_v60  ;;  %2433 = vst [vmem:[%s3323_s16 + $0x148] sm:$0xff] %v2369_v39  ;;  %v2371_v23 = vld [vmem:[#allocation2 + $0x78] sm:$0xff]  ;;  %v2372_v26 = vld [vmem:[#allocation2 + $0x70] sm:$0xff] }
 0x41d   : > { %2434 = vst [vmem:[%s3323_s16 + $0x150] sm:$0xff] %v2370_v54  ;;  %2435 = vst [vmem:[%s3323_s16 + $0x158] sm:$0xff] %v2371_v23  ;;  %v2373_v42 = vld [vmem:[#allocation2 + $0x90] sm:$0xff]  ;;  %v2374_v30 = vld [vmem:[#allocation2 + $0x1d8] sm:$0xff] }
 0x41e   : > { %2436 = vst [vmem:[%s3323_s16 + $0x160] sm:$0xff] %v2372_v26  ;;  %v2375_v41 = vld [vmem:[#allocation2 + $0xd0] sm:$0xff]  ;;  %2437 = vst [vmem:[%s3323_s16 + $0x168] sm:$0xff] %v2373_v42  ;;  %v2376_v44 = vld [vmem:[#allocation2 + $0xb8] sm:$0xff] }
 0x41f   : > { %2438 = vst [vmem:[%s3323_s16 + $0x170] sm:$0xff] %v2374_v30  ;;  %2439 = vst [vmem:[%s3323_s16 + $0x178] sm:$0xff] %v2375_v41  ;;  %v2377_v16 = vld [vmem:[#allocation2 + $0x88] sm:$0xff]  ;;  %v2380_v0 = vld [vmem:[#allocation2 + $0x170] sm:$0xff] }
 0x420   : > { %v2378_v63 = vld [vmem:[#allocation2 + $0xa8] sm:$0xff]  ;;  %2440 = vst [vmem:[%s3323_s16 + $0x180] sm:$0xff] %v2376_v44  ;;  %2441 = vst [vmem:[%s3323_s16 + $0x188] sm:$0xff] %v2377_v16  ;;  %v2381_v11 = vld [vmem:[#allocation2 + $0x178] sm:$0xff] }
 0x421   : > { %2442 = vst [vmem:[%s3323_s16 + $0x190] sm:$0xff] %v2378_v63  ;;  %v2379_v4 = vld [vmem:[#allocation2 + $0x1c8] sm:$0xff]  ;;  %2444 = vst [vmem:[%s3323_s16 + $0x1a0] sm:$0xff] %v2380_v0  ;;  %v2383_v43 = vld [vmem:[#allocation2 + $0x190] sm:$0xff] }
 0x422   : > { %2443 = vst [vmem:[%s3323_s16 + $0x198] sm:$0xff] %v2379_v4  ;;  %2445 = vst [vmem:[%s3323_s16 + $0x1a8] sm:$0xff] %v2381_v11  ;;  %v2382_v14 = vld [vmem:[#allocation2 + $0x68] sm:$0xff]  ;;  %v2384_v50 = vld [vmem:[#allocation2 + $0x198] sm:$0xff] }
 0x423   : > { %2446 = vst [vmem:[%s3323_s16 + $0x1b0] sm:$0xff] %v2382_v14  ;;  %2447 = vst [vmem:[%s3323_s16 + $0x1b8] sm:$0xff] %v2383_v43  ;;  %v2385_v61 = vld [vmem:[#allocation2 + $0x38] sm:$0xff]  ;;  %v2386_v46 = vld [vmem:[#allocation2 + $0xc0] sm:$0xff] }
 0x424   : > { %2448 = vst [vmem:[%s3323_s16 + $0x1c0] sm:$0xff] %v2384_v50  ;;  %v2387_v5 = vld [vmem:[#allocation2 + $0x1c0] sm:$0xff]  ;;  %2449 = vst [vmem:[%s3323_s16 + $0x1c8] sm:$0xff] %v2385_v61  ;;  %v2388_v12 = vld [vmem:[#allocation2 + $0x158] sm:$0xff] }
 0x425   : > { %2450 = vst [vmem:[%s3323_s16 + $0x1d0] sm:$0xff] %v2386_v46  ;;  %2451 = vst [vmem:[%s3323_s16 + $0x1d8] sm:$0xff] %v2387_v5  ;;  %v2389_v15 = vld [vmem:[#allocation2 + $0x10] sm:$0xff]  ;;  %v2390_v27 = vld [vmem:[#allocation2 + $0x58] sm:$0xff] }
 0x426   : > { %2452 = vst [vmem:[%s3323_s16 + $0x1e0] sm:$0xff] %v2388_v12  ;;  %2453 = vst [vmem:[%s3323_s16 + $0x1e8] sm:$0xff] %v2389_v15  ;;  %v2391_v45 = vld [vmem:[#allocation2 + $0xa0] sm:$0xff] }
 0x427   : > { %2454 = vst [vmem:[%s3323_s16 + $0x1f0] sm:$0xff] %v2390_v27  ;;  %2455 = vst [vmem:[%s3323_s16 + $0x1f8] sm:$0xff] %v2391_v45 }
 0x428 PF: > { %s15_s22 = sadd.s32 1, %s3241_s22   ;;  %s3969_s0 = sld [smem:[#allocation3_spill]] }
 0x429   : > { %p12_p12 = scmp.ge.s32.totalorder %s15_s22, 10   ;;  %s3970_s28 = sld [smem:[#allocation4_spill]] }
 0x42a   : > { %s3971_s18 = smov %s3233_s20  ;;  %s3972_s19 = smov %s3237_s21 }
 0x42b   :  { %14 = sbr.rel (!%p12_p12) target bundleno = 3 (0x3), region = 87 }
 0x42e   : > { %s3973_s20 = smov %s3969_s0 }
 0x42f   : > { %s3974_s21 = smov %s3970_s28 }

// kernel: attention_forward.2
= control target key start
LH: loop header
LB: loop body
LE: loop exit
PB: predicated region body
PF: predicated region fallthrough
CT: control target
= control target key end

     0   :  { %s4352_s9 = smov 0   ;;  %s4354_s10 = smov 0   ;;  %s6548_s0 = inlined_call_operand.vmem [shape: f32[2,256,256], index: 0, kind: input, shape index: {}]   ;;  %s6549_s1 = inlined_call_operand.vmem [shape: bf16[768,256], index: 1, kind: input, shape index: {}]   ;;  %s6550_s2 = inlined_call_operand.vmem [shape: bf16[2,12,256,64], index: 2, kind: output, shape index: {}]  }
   0x1   :  { %s4356_s11 = smov 0  }
   0x2 LB: > { %s24_s12 = sadd.s32 1, %s4330_s10  ;;  %p3271_p0 = scmp.ge.s32.totalorder %s4334_s11, 1  ;;  %s4334_s11 = sphi %s4356_s11, %s12_s11   ;;  %s4330_s10 = sphi %s4354_s10, %s6609_s10   ;;  %s4326_s9 = sphi %s4352_s9, %s6608_s9  }
   0x3   : > { %p26_p1 = scmp.ge.s32.totalorder %s24_s12, 2  ;;  %p134_p2 = scmp.lt.s32.totalorder %s4334_s11, 3 }
   0x5   : > { %s6611_s12 = smov (%p26_p1, %s24_s12), 0  ;;  %p135_p3 = pnand %p3271_p0, %p134_p2 }
   0x7   : > { %138 = sbr.rel (%p135_p3) target bundleno = 837 (0x345), region = 28 }
   0xc   : > { %v4168_v0 = vld [vmem:[%s6549_s1 + $0x74] ss:$8 sps:$4 sm:$0xff]   ;;  %v4172_v2 = vld [vmem:[%s6549_s1 + $0x70] ss:$8 sps:$4 sm:$0xff]   ;;  %v4174_v4 = vld [vmem:[%s6549_s1 + $0x64] ss:$8 sps:$4 sm:$0xff]  }
   0xd   : > { %v4170_v1 = vld [vmem:[%s6549_s1 + $0x174] ss:$8 sps:$4 sm:$0xff]   ;;  %858 = vmatprep.subr.bf16.mxu0 %v4168_v0  ;;  %v4173_v3 = vld [vmem:[%s6549_s1 + $0x170] ss:$8 sps:$4 sm:$0xff]   ;;  %v4176_v5 = vld [vmem:[%s6549_s1 + $0x164] ss:$8 sps:$4 sm:$0xff]  }
   0xe   : > { %1051 = vmatprep.subr.bf16.mxu1 %v4170_v1  ;;  %859 = vmatpush1.bf16.xpose.msra.mxu0 %v4172_v2  ;;  %v4178_v6 = vld [vmem:[%s6549_s1 + $0x60] ss:$8 sps:$4 sm:$0xff]   ;;  %v4180_v8 = vld [vmem:[%s6549_s1 + $0x54] ss:$8 sps:$4 sm:$0xff]   ;;  %v4184_v10 = vld [vmem:[%s6549_s1 + $0x50] ss:$8 sps:$4 sm:$0xff]  }
   0xf   : > { %1052 = vmatpush1.bf16.xpose.msra.mxu1 %v4173_v3  ;;  %860 = vmatprep.subr.bf16.mxu0 %v4174_v4  ;;  %v4179_v7 = vld [vmem:[%s6549_s1 + $0x160] ss:$8 sps:$4 sm:$0xff]   ;;  %v4182_v9 = vld [vmem:[%s6549_s1 + $0x154] ss:$8 sps:$4 sm:$0xff]   ;;  %v4185_v11 = vld [vmem:[%s6549_s1 + $0x150] ss:$8 sps:$4 sm:$0xff]  }
  0x10   : > { %1053 = vmatprep.subr.bf16.mxu1 %v4176_v5  ;;  %v4186_v12 = vld [vmem:[%s6549_s1 + $0x44] ss:$8 sps:$4 sm:$0xff]   ;;  %v4190_v14 = vld [vmem:[%s6549_s1 + $0x40] ss:$8 sps:$4 sm:$0xff]   ;;  %v4192_v16 = vld [vmem:[%s6549_s1 + $0x34] ss:$8 sps:$4 sm:$0xff]  }
  0x11   : > { %v4188_v13 = vld [vmem:[%s6549_s1 + $0x144] ss:$8 sps:$4 sm:$0xff]   ;;  %v4191_v15 = vld [vmem:[%s6549_s1 + $0x140] ss:$8 sps:$4 sm:$0xff]   ;;  %v4194_v17 = vld [vmem:[%s6549_s1 + $0x134] ss:$8 sps:$4 sm:$0xff]  }
  0x12   : > { %p166_p4 = scmp.lt.s32.totalorder %s4326_s9, 1  ;;  %v4196_v18 = vld [vmem:[%s6549_s1 + $0x30] ss:$8 sps:$4 sm:$0xff]   ;;  %v4198_v20 = vld [vmem:[%s6549_s1 + $0x24] ss:$8 sps:$4 sm:$0xff]   ;;  %vm1565_vm0 = vcmask 519168  }
  0x13   : > { %v4197_v19 = vld [vmem:[%s6549_s1 + $0x130] ss:$8 sps:$4 sm:$0xff]   ;;  %v4200_v21 = vld [vmem:[%s6549_s1 + $0x124] ss:$8 sps:$4 sm:$0xff]   ;;  %v4202_v22 = vld [vmem:[%s6549_s1 + $0x20] ss:$8 sps:$4 sm:$0xff]  }
  0x14   : > { %s6613_s9 = smov (!%p166_p4, %s4326_s9), 1  ;;  %v4203_v23 = vld [vmem:[%s6549_s1 + $0x120] ss:$8 sps:$4 sm:$0xff]   ;;  %v4204_v24 = vld [vmem:[%s6549_s1 + $0x14] ss:$8 sps:$4 sm:$0xff]  }
  0x15   : > { %s3917_s5 = sshll.u32 %s6613_s9, 9  ;;  %v4206_v25 = vld [vmem:[%s6549_s1 + $0x114] ss:$8 sps:$4 sm:$0xff]   ;;  %v4208_v29 = vld [vmem:[%s6549_s1 + $0x10] ss:$8 sps:$4 sm:$0xff]  }
  0x16   : > { %861 = vmatpush1.bf16.xpose.msra.mxu0 %v4178_v6  ;;  %s4452_s16 = scalar_lea.vmem %s6548_s0, %s3917_s5  ;;  %v4209_v30 = vld [vmem:[%s6549_s1 + $0x110] ss:$8 sps:$4 sm:$0xff]   ;;  %v4210_v31 = vld [vmem:[%s6549_s1 + $0x4] ss:$8 sps:$4 sm:$0xff]   ;;  %v4214_v33 = vld [vmem:[%s6549_s1] ss:$8 sps:$4 sm:$0xff]  }
  0x17   : > { %1054 = vmatpush1.bf16.xpose.msra.mxu1 %v4179_v7  ;;  %862 = vmatprep.subr.bf16.mxu0 %v4180_v8  ;;  %v187_v26 = vld [vmem:[%s4452_s16 + $0x8] sm:$0xff]  ;;  %v189_v27 = vld [vmem:[%s4452_s16 + $0x18] sm:$0xff]  ;;  %v186_v4 = vld [vmem:[%s4452_s16] sm:$0xff] }
  0x18   : > { %1055 = vmatprep.subr.bf16.mxu1 %v4182_v9  ;;  %v4462_v28 = vpack.c.bf16 %v189_v27, %v187_v26  ;;  %v4212_v32 = vld [vmem:[%s6549_s1 + $0x104] ss:$8 sps:$4 sm:$0xff]   ;;  %v4215_v34 = vld [vmem:[%s6549_s1 + $0x100] ss:$8 sps:$4 sm:$0xff]   ;;  %v4216_v35 = vld [vmem:[%s6549_s1 + $0xf4] ss:$8 sps:$4 sm:$0xff]  }
  0x19   : > { %v4218_v36 = vld [vmem:[%s6549_s1 + $0x1f4] ss:$8 sps:$4 sm:$0xff]   ;;  %v4220_v37 = vld [vmem:[%s6549_s1 + $0xf0] ss:$8 sps:$4 sm:$0xff]   ;;  %v4222_v39 = vld [vmem:[%s6549_s1 + $0xe4] ss:$8 sps:$4 sm:$0xff]  }
  0x1a   : > { %890 = vmatprep.mubr.bf16.mxu0 %v4462_v28  ;;  %1083 = vmatprep.mubr.bf16.mxu1 %v4462_v28  ;;  %v4221_v38 = vld [vmem:[%s6549_s1 + $0x1f0] ss:$8 sps:$4 sm:$0xff]   ;;  %v4224_v40 = vld [vmem:[%s6549_s1 + $0x1e4] ss:$8 sps:$4 sm:$0xff]   ;;  %v4226_v41 = vld [vmem:[%s6549_s1 + $0xe0] ss:$8 sps:$4 sm:$0xff]  }
  0x1b   : > { %v4227_v42 = vld [vmem:[%s6549_s1 + $0x1e0] ss:$8 sps:$4 sm:$0xff]   ;;  %v4228_v43 = vld [vmem:[%s6549_s1 + $0xd4] ss:$8 sps:$4 sm:$0xff]   ;;  %v4232_v45 = vld [vmem:[%s6549_s1 + $0xd0] ss:$8 sps:$4 sm:$0xff]  }
  0x1c   : > { %v4230_v44 = vld [vmem:[%s6549_s1 + $0x1d4] ss:$8 sps:$4 sm:$0xff]   ;;  %v4233_v46 = vld [vmem:[%s6549_s1 + $0x1d0] ss:$8 sps:$4 sm:$0xff]   ;;  %v4234_v47 = vld [vmem:[%s6549_s1 + $0xc4] ss:$8 sps:$4 sm:$0xff]  }
  0x1d   : > { %v4236_v48 = vld [vmem:[%s6549_s1 + $0x1c4] ss:$8 sps:$4 sm:$0xff]   ;;  %v4238_v49 = vld [vmem:[%s6549_s1 + $0xc0] ss:$8 sps:$4 sm:$0xff]   ;;  %v4240_v51 = vld [vmem:[%s6549_s1 + $0xb4] ss:$8 sps:$4 sm:$0xff]  }
  0x1e   : > { %863 = vmatpush1.bf16.xpose.msra.mxu0 %v4184_v10  ;;  %v4239_v50 = vld [vmem:[%s6549_s1 + $0x1c0] ss:$8 sps:$4 sm:$0xff]   ;;  %v4242_v52 = vld [vmem:[%s6549_s1 + $0x1b4] ss:$8 sps:$4 sm:$0xff]   ;;  %v4244_v53 = vld [vmem:[%s6549_s1 + $0xb0] ss:$8 sps:$4 sm:$0xff]  }
  0x1f   : > { %1056 = vmatpush1.bf16.xpose.msra.mxu1 %v4185_v11  ;;  %864 = vmatprep.subr.bf16.mxu0 %v4186_v12  ;;  %v4245_v54 = vld [vmem:[%s6549_s1 + $0x1b0] ss:$8 sps:$4 sm:$0xff]   ;;  %v4246_v55 = vld [vmem:[%s6549_s1 + $0xa4] ss:$8 sps:$4 sm:$0xff]   ;;  %v4250_v57 = vld [vmem:[%s6549_s1 + $0xa0] ss:$8 sps:$4 sm:$0xff]  }
  0x20   : > { %1057 = vmatprep.subr.bf16.mxu1 %v4188_v13  ;;  %v4248_v56 = vld [vmem:[%s6549_s1 + $0x1a4] ss:$8 sps:$4 sm:$0xff]   ;;  %v4251_v58 = vld [vmem:[%s6549_s1 + $0x1a0] ss:$8 sps:$4 sm:$0xff]   ;;  %v4252_v59 = vld [vmem:[%s6549_s1 + $0x94] ss:$8 sps:$4 sm:$0xff]  }
  0x21   : > { %v4254_v60 = vld [vmem:[%s6549_s1 + $0x194] ss:$8 sps:$4 sm:$0xff]   ;;  %v4256_v61 = vld [vmem:[%s6549_s1 + $0x90] ss:$8 sps:$4 sm:$0xff]   ;;  %v4258_v63 = vld [vmem:[%s6549_s1 + $0x84] ss:$8 sps:$4 sm:$0xff]  }
  0x22   : > { %v4257_v62 = vld [vmem:[%s6549_s1 + $0x190] ss:$8 sps:$4 sm:$0xff]   ;;  %v4260_v0 = vld [vmem:[%s6549_s1 + $0x184] ss:$8 sps:$4 sm:$0xff]   ;;  %v4262_v1 = vld [vmem:[%s6549_s1 + $0x80] ss:$8 sps:$4 sm:$0xff]  }
  0x23   : > { %v4263_v2 = vld [vmem:[%s6549_s1 + $0x180] ss:$8 sps:$4 sm:$0xff]   ;;  %v4266_v3 = vld [vmem:[%s6549_s1 + $0x274] ss:$8 sps:$4 sm:$0xff]   ;;  %v4264_v10 = vld [vmem:[%s6549_s1 + $0x270] ss:$8 sps:$4 sm:$0xff]  }
  0x24   : > { %v188_v5 = vld [vmem:[%s4452_s16 + $0x10] sm:$0xff]  ;;  %v191_v6 = vld [vmem:[%s4452_s16 + $0x28] sm:$0xff]  ;;  %v193_v7 = vld [vmem:[%s4452_s16 + $0x38] sm:$0xff] }
  0x25   : > { %v4587_v8 = vpack.c.bf16 %v188_v5, %v186_v4  ;;  %v4589_v9 = vpack.c.bf16 %v193_v7, %v191_v6  ;;  %v4269_v11 = vld [vmem:[%s6549_s1 + $0x264] ss:$8 sps:$4 sm:$0xff]   ;;  %v192_v13 = vld [vmem:[%s4452_s16 + $0x30] sm:$0xff] }
  0x26   : > { %865 = vmatpush1.bf16.xpose.msra.mxu0 %v4190_v14  ;;  %v190_v12 = vld [vmem:[%s4452_s16 + $0x20] sm:$0xff]  ;;  %v195_v14 = vld [vmem:[%s4452_s16 + $0x48] sm:$0xff]  ;;  %v4270_v26 = vld [vmem:[%s6549_s1 + $0x250] ss:$8 sps:$4 sm:$0xff]  }
  0x27   : > { %1058 = vmatpush1.bf16.xpose.msra.mxu1 %v4191_v15  ;;  %866 = vmatprep.subr.bf16.mxu0 %v4192_v16  ;;  %v197_v15 = vld [vmem:[%s4452_s16 + $0x58] sm:$0xff]  ;;  %v4605_v16 = vpack.c.bf16 %v192_v13, %v190_v12  ;;  %v4275_v27 = vld [vmem:[%s6549_s1 + $0x244] ss:$8 sps:$4 sm:$0xff]   ;;  %v220_v6 = vld [vmem:[%s4452_s16 + $0x110] sm:$0xff] }
  0x28   : > { %1059 = vmatprep.subr.bf16.mxu1 %v4194_v17  ;;  %v4607_v17 = vpack.c.bf16 %v197_v15, %v195_v14  ;;  %v4290_v4 = vld [vmem:[%s6549_s1 + $0x2f4] ss:$8 sps:$4 sm:$0xff]   ;;  %v218_v5 = vld [vmem:[%s4452_s16 + $0x100] sm:$0xff]  ;;  %v223_v7 = vld [vmem:[%s4452_s16 + $0x128] sm:$0xff] }
  0x29   : > { %v4288_v13 = vld [vmem:[%s6549_s1 + $0x2f0] ss:$8 sps:$4 sm:$0xff]   ;;  %v4293_v14 = vld [vmem:[%s6549_s1 + $0x2e4] ss:$8 sps:$4 sm:$0xff]  }
  0x2a   : > { %v222_v15 = vld [vmem:[%s4452_s16 + $0x120] sm:$0xff] }
  0x2e   : > { %867 = vmatpush1.bf16.xpose.msra.mxu0 %v4196_v18  ;;  %v4267_v18 = vld [vmem:[%s6549_s1 + $0x260] ss:$8 sps:$4 sm:$0xff]  }
  0x2f   : > { %1060 = vmatpush1.bf16.xpose.msra.mxu1 %v4197_v19  ;;  %868 = vmatprep.subr.bf16.mxu0 %v4198_v20  ;;  %v4272_v19 = vld [vmem:[%s6549_s1 + $0x254] ss:$8 sps:$4 sm:$0xff]   ;;  %v194_v20 = vld [vmem:[%s4452_s16 + $0x40] sm:$0xff] }
  0x30   : > { %1061 = vmatprep.subr.bf16.mxu1 %v4200_v21  ;;  %v196_v21 = vld [vmem:[%s4452_s16 + $0x50] sm:$0xff] }
  0x36   : > { %869 = vmatpush1.bf16.xpose.msra.mxu0 %v4202_v22  ;;  %v199_v22 = vld [vmem:[%s4452_s16 + $0x68] sm:$0xff] }
  0x37   : > { %1062 = vmatpush1.bf16.xpose.msra.mxu1 %v4203_v23  ;;  %870 = vmatprep.subr.bf16.mxu0 %v4204_v24  ;;  %v201_v23 = vld [vmem:[%s4452_s16 + $0x78] sm:$0xff]  ;;  %v4623_v24 = vpack.c.bf16 %v196_v21, %v194_v20 }
  0x38   : > { %1063 = vmatprep.subr.bf16.mxu1 %v4206_v25  ;;  %v4625_v25 = vpack.c.bf16 %v201_v23, %v199_v22  ;;  %v229_v20 = vld [vmem:[%s4452_s16 + $0x158] sm:$0xff]  ;;  %v4291_v23 = vld [vmem:[%s6549_s1 + $0x2e0] ss:$8 sps:$4 sm:$0xff]  }
  0x3e   : > { %871 = vmatpush1.bf16.xpose.msra.mxu0 %v4208_v29  ;;  %v198_v29 = vld [vmem:[%s4452_s16 + $0x60] sm:$0xff] }
  0x3f   : > { %1064 = vmatpush1.bf16.xpose.msra.mxu1 %v4209_v30  ;;  %872 = vmatprep.subr.bf16.mxu0 %v4210_v31  ;;  %v200_v30 = vld [vmem:[%s4452_s16 + $0x70] sm:$0xff]  ;;  %v203_v31 = vld [vmem:[%s4452_s16 + $0x88] sm:$0xff] }
  0x40   : > { %1065 = vmatprep.subr.bf16.mxu1 %v4212_v32  ;;  %v205_v32 = vld [vmem:[%s4452_s16 + $0x98] sm:$0xff] }
  0x46   : > { %873 = vmatpush1.bf16.xpose.msra.mxu0 %v4214_v33  ;;  %v4641_v33 = vpack.c.bf16 %v200_v30, %v198_v29  ;;  %v228_v29 = vld [vmem:[%s4452_s16 + $0x150] sm:$0xff]  ;;  %v231_v30 = vld [vmem:[%s4452_s16 + $0x168] sm:$0xff] }
  0x47   : > { %1066 = vmatpush1.bf16.xpose.msra.mxu1 %v4215_v34  ;;  %874 = vmatprep.subr.bf16.mxu0 %v4216_v35  ;;  %v4643_v34 = vpack.c.bf16 %v205_v32, %v203_v31  ;;  %v4273_v35 = vld [vmem:[%s6549_s1 + $0x240] ss:$8 sps:$4 sm:$0xff]   ;;  %v233_v31 = vld [vmem:[%s4452_s16 + $0x178] sm:$0xff] }
  0x48   : > { %1067 = vmatprep.subr.bf16.mxu1 %v4218_v36  ;;  %v4278_v36 = vld [vmem:[%s6549_s1 + $0x234] ss:$8 sps:$4 sm:$0xff]  }
  0x4e   : > { %875 = vmatpush2.bf16.xpose.msra.mxu0 %v4220_v37  ;;  %v202_v37 = vld [vmem:[%s4452_s16 + $0x80] sm:$0xff] }
  0x4f   : > { %1068 = vmatpush2.bf16.xpose.msra.mxu1 %v4221_v38  ;;  %876 = vmatprep.subr.bf16.mxu0 %v4222_v39  ;;  %v204_v38 = vld [vmem:[%s4452_s16 + $0x90] sm:$0xff]  ;;  %v207_v39 = vld [vmem:[%s4452_s16 + $0xa8] sm:$0xff] }
  0x50   : > { %1069 = vmatprep.subr.bf16.mxu1 %v4224_v40  ;;  %v209_v40 = vld [vmem:[%s4452_s16 + $0xb8] sm:$0xff] }
  0x56   : > { %877 = vmatpush2.bf16.xpose.msra.mxu0 %v4226_v41  ;;  %v4659_v41 = vpack.c.bf16 %v204_v38, %v202_v37  ;;  %v4299_v37 = vld [vmem:[%s6549_s1 + $0x2c4] ss:$8 sps:$4 sm:$0xff]  }
  0x57   : > { %1070 = vmatpush2.bf16.xpose.msra.mxu1 %v4227_v42  ;;  %878 = vmatprep.subr.bf16.mxu0 %v4228_v43  ;;  %v4661_v42 = vpack.c.bf16 %v209_v40, %v207_v39  ;;  %v4276_v43 = vld [vmem:[%s6549_s1 + $0x230] ss:$8 sps:$4 sm:$0xff]   ;;  %v230_v38 = vld [vmem:[%s4452_s16 + $0x160] sm:$0xff]  ;;  %v235_v40 = vld [vmem:[%s4452_s16 + $0x188] sm:$0xff] }
  0x58   : > { %1071 = vmatprep.subr.bf16.mxu1 %v4230_v44  ;;  %v4281_v44 = vld [vmem:[%s6549_s1 + $0x224] ss:$8 sps:$4 sm:$0xff]   ;;  %v232_v39 = vld [vmem:[%s4452_s16 + $0x170] sm:$0xff] }
  0x5e   : > { %879 = vmatpush2.bf16.xpose.msra.mxu0 %v4232_v45  ;;  %v206_v45 = vld [vmem:[%s4452_s16 + $0xa0] sm:$0xff] }
  0x5f   : > { %1072 = vmatpush2.bf16.xpose.msra.mxu1 %v4233_v46  ;;  %880 = vmatprep.subr.bf16.mxu0 %v4234_v47  ;;  %v208_v46 = vld [vmem:[%s4452_s16 + $0xb0] sm:$0xff]  ;;  %v211_v47 = vld [vmem:[%s4452_s16 + $0xc8] sm:$0xff] }
  0x60   : > { %1073 = vmatprep.subr.bf16.mxu1 %v4236_v48  ;;  %v213_v48 = vld [vmem:[%s4452_s16 + $0xd8] sm:$0xff] }
  0x66   : > { %881 = vmatpush2.bf16.xpose.msra.mxu0 %v4238_v49  ;;  %v4677_v49 = vpack.c.bf16 %v208_v46, %v206_v45  ;;  %v4297_v46 = vld [vmem:[%s6549_s1 + $0x2c0] ss:$8 sps:$4 sm:$0xff]  }
  0x67   : > { %1074 = vmatpush2.bf16.xpose.msra.mxu1 %v4239_v50  ;;  %882 = vmatprep.subr.bf16.mxu0 %v4240_v51  ;;  %v4679_v50 = vpack.c.bf16 %v213_v48, %v211_v47  ;;  %v4279_v51 = vld [vmem:[%s6549_s1 + $0x220] ss:$8 sps:$4 sm:$0xff]   ;;  %v4302_v47 = vld [vmem:[%s6549_s1 + $0x2b4] ss:$8 sps:$4 sm:$0xff]  }
  0x68   : > { %1075 = vmatprep.subr.bf16.mxu1 %v4242_v52  ;;  %v4284_v52 = vld [vmem:[%s6549_s1 + $0x214] ss:$8 sps:$4 sm:$0xff]   ;;  %v234_v48 = vld [vmem:[%s4452_s16 + $0x180] sm:$0xff] }
  0x6e   : > { %883 = vmatpush2.bf16.xpose.msra.mxu0 %v4244_v53  ;;  %v210_v53 = vld [vmem:[%s4452_s16 + $0xc0] sm:$0xff] }
  0x6f   : > { %1076 = vmatpush2.bf16.xpose.msra.mxu1 %v4245_v54  ;;  %884 = vmatprep.subr.bf16.mxu0 %v4246_v55  ;;  %v212_v54 = vld [vmem:[%s4452_s16 + $0xd0] sm:$0xff]  ;;  %v215_v55 = vld [vmem:[%s4452_s16 + $0xe8] sm:$0xff] }
  0x70   : > { %1077 = vmatprep.subr.bf16.mxu1 %v4248_v56  ;;  %v217_v56 = vld [vmem:[%s4452_s16 + $0xf8] sm:$0xff] }
  0x76   : > { %885 = vmatpush2.bf16.xpose.msra.mxu0 %v4250_v57  ;;  %v4695_v57 = vpack.c.bf16 %v212_v54, %v210_v53  ;;  %v241_v53 = vld [vmem:[%s4452_s16 + $0x1b8] sm:$0xff] }
  0x77   : > { %1078 = vmatpush2.bf16.xpose.msra.mxu1 %v4251_v58  ;;  %886 = vmatprep.subr.bf16.mxu0 %v4252_v59  ;;  %v4697_v58 = vpack.c.bf16 %v217_v56, %v215_v55  ;;  %v4282_v59 = vld [vmem:[%s6549_s1 + $0x210] ss:$8 sps:$4 sm:$0xff]  }
  0x78   : > { %1079 = vmatprep.subr.bf16.mxu1 %v4254_v60  ;;  %v4287_v60 = vld [vmem:[%s6549_s1 + $0x204] ss:$8 sps:$4 sm:$0xff]   ;;  %v4300_v56 = vld [vmem:[%s6549_s1 + $0x2b0] ss:$8 sps:$4 sm:$0xff]  }
  0x7e   : > { %887 = vmatpush2.bf16.xpose.msra.mxu0 %v4256_v61  ;;  %v214_v61 = vld [vmem:[%s4452_s16 + $0xe0] sm:$0xff] }
  0x7f   : > { %1080 = vmatpush2.bf16.xpose.msra.mxu1 %v4257_v62  ;;  %888 = vmatprep.subr.bf16.mxu0 %v4258_v63  ;;  %v216_v62 = vld [vmem:[%s4452_s16 + $0xf0] sm:$0xff]  ;;  %v219_v63 = vld [vmem:[%s4452_s16 + $0x108] sm:$0xff] }
  0x80   : > { %1081 = vmatprep.subr.bf16.mxu1 %v4260_v0  ;;  %v221_v0 = vld [vmem:[%s4452_s16 + $0x118] sm:$0xff] }
  0x86   : > { %889 = vmatpush2.bf16.xpose.msra.mxu0 %v4262_v1  ;;  %v4713_v1 = vpack.c.bf16 %v216_v62, %v214_v61  ;;  %v240_v61 = vld [vmem:[%s4452_s16 + $0x1b0] sm:$0xff]  ;;  %v243_v62 = vld [vmem:[%s4452_s16 + $0x1c8] sm:$0xff] }
  0x87   : > { %1082 = vmatpush2.bf16.xpose.msra.mxu1 %v4263_v2  ;;  %1244 = vmatprep.subr.bf16.mxu0 %v4266_v3  ;;  %v4715_v2 = vpack.c.bf16 %v221_v0, %v219_v63  ;;  %v245_v63 = vld [vmem:[%s4452_s16 + $0x1d8] sm:$0xff] }
  0x88   : > { %4110 = vmatprep.subr.bf16.mxu1 %v4266_v3  ;;  %v4285_v3 = vld [vmem:[%s6549_s1 + $0x200] ss:$8 sps:$4 sm:$0xff]  }
  0x8d   : > { %891 = vmatmul.mubr.bf16.vlgmr.msra.gmra.mxu0 %v4587_v8 }
  0x8e   : > { %1084 = vmatmul.mubr.bf16.vlgmr.msra.gmra.mxu1 %v4587_v8  ;;  %900 = vmatprep.mubr.bf16.mxu0 %v4589_v9 }
  0x8f   : > { %1093 = vmatprep.mubr.bf16.mxu1 %v4589_v9  ;;  %1245 = vmatpush1.bf16.xpose.msra.mxu0 %v4264_v10 }
  0x90   : > { %4126 = vmatpush1.bf16.xpose.msra.mxu1 %v4264_v10  ;;  %1246 = vmatprep.subr.bf16.mxu0 %v4269_v11  ;;  %v225_v10 = vld [vmem:[%s4452_s16 + $0x138] sm:$0xff] }
  0x91   : > { %4111 = vmatprep.subr.bf16.mxu1 %v4269_v11  ;;  %v4731_v11 = vpack.c.bf16 %v220_v6, %v218_v5  ;;  %v4733_v12 = vpack.c.bf16 %v225_v10, %v223_v7  ;;  %v4308_v5 = vld [vmem:[%s6549_s1 + $0x294] ss:$8 sps:$4 sm:$0xff]   ;;  %v242_v6 = vld [vmem:[%s4452_s16 + $0x1c0] sm:$0xff]  ;;  %v247_v10 = vld [vmem:[%s4452_s16 + $0x1e8] sm:$0xff] }
  0x92   : > { %v244_v7 = vld [vmem:[%s4452_s16 + $0x1d0] sm:$0xff] }
  0x95   : > { %901 = vmatmul.mubr.bf16.gmra.mxu0 %v4605_v16 }
  0x96   : > { %1094 = vmatmul.mubr.bf16.gmra.mxu1 %v4605_v16  ;;  %910 = vmatprep.mubr.bf16.mxu0 %v4607_v17 }
  0x97   : > { %1103 = vmatprep.mubr.bf16.mxu1 %v4607_v17  ;;  %1247 = vmatpush1.bf16.xpose.msra.mxu0 %v4267_v18 }
  0x98   : > { %4127 = vmatpush1.bf16.xpose.msra.mxu1 %v4267_v18  ;;  %1248 = vmatprep.subr.bf16.mxu0 %v4272_v19  ;;  %v224_v18 = vld [vmem:[%s4452_s16 + $0x130] sm:$0xff] }
  0x99   : > { %4112 = vmatprep.subr.bf16.mxu1 %v4272_v19  ;;  %v227_v19 = vld [vmem:[%s4452_s16 + $0x148] sm:$0xff]  ;;  %v4749_v21 = vpack.c.bf16 %v224_v18, %v222_v15  ;;  %v4306_v18 = vld [vmem:[%s6549_s1 + $0x290] ss:$8 sps:$4 sm:$0xff]  }
  0x9a   : > { %v4751_v22 = vpack.c.bf16 %v229_v20, %v227_v19  ;;  %v4311_v19 = vld [vmem:[%s6549_s1 + $0x284] ss:$8 sps:$4 sm:$0xff]  }
  0x9b   : > { %v246_v20 = vld [vmem:[%s4452_s16 + $0x1e0] sm:$0xff] }
  0x9d   : > { %911 = vmatmul.mubr.bf16.gmra.mxu0 %v4623_v24 }
  0x9e   : > { %1104 = vmatmul.mubr.bf16.gmra.mxu1 %v4623_v24  ;;  %920 = vmatprep.mubr.bf16.mxu0 %v4625_v25 }
  0x9f   : > { %1113 = vmatprep.mubr.bf16.mxu1 %v4625_v25  ;;  %1249 = vmatpush1.bf16.xpose.msra.mxu0 %v4270_v26 }
  0xa0   : > { %4128 = vmatpush1.bf16.xpose.msra.mxu1 %v4270_v26  ;;  %1250 = vmatprep.subr.bf16.mxu0 %v4275_v27  ;;  %v4296_v26 = vld [vmem:[%s6549_s1 + $0x2d4] ss:$8 sps:$4 sm:$0xff]  }
  0xa1   : > { %4113 = vmatprep.subr.bf16.mxu1 %v4275_v27  ;;  %v226_v27 = vld [vmem:[%s4452_s16 + $0x140] sm:$0xff] }
  0xa2   : > { %v4767_v32 = vpack.c.bf16 %v228_v29, %v226_v27  ;;  %v4309_v27 = vld [vmem:[%s6549_s1 + $0x280] ss:$8 sps:$4 sm:$0xff]  }
  0xa5   : > { %921 = vmatmul.mubr.bf16.gmra.mxu0 %v4641_v33 }
  0xa6   : > { %1114 = vmatmul.mubr.bf16.gmra.mxu1 %v4641_v33  ;;  %930 = vmatprep.mubr.bf16.mxu0 %v4643_v34 }
  0xa7   : > { %1123 = vmatprep.mubr.bf16.mxu1 %v4643_v34  ;;  %1251 = vmatpush1.bf16.xpose.msra.mxu0 %v4273_v35 }
  0xa8   : > { %4129 = vmatpush1.bf16.xpose.msra.mxu1 %v4273_v35  ;;  %1252 = vmatprep.subr.bf16.mxu0 %v4278_v36  ;;  %v4769_v35 = vpack.c.bf16 %v233_v31, %v231_v30 }
  0xa9   : > { %4114 = vmatprep.subr.bf16.mxu1 %v4278_v36  ;;  %v4294_v36 = vld [vmem:[%s6549_s1 + $0x2d0] ss:$8 sps:$4 sm:$0xff]  }
  0xad   : > { %931 = vmatmul.mubr.bf16.gmra.mxu0 %v4659_v41 }
  0xae   : > { %1124 = vmatmul.mubr.bf16.gmra.mxu1 %v4659_v41  ;;  %940 = vmatprep.mubr.bf16.mxu0 %v4661_v42 }
  0xaf   : > { %1133 = vmatprep.mubr.bf16.mxu1 %v4661_v42  ;;  %1253 = vmatpush1.bf16.xpose.msra.mxu0 %v4276_v43 }
  0xb0   : > { %4130 = vmatpush1.bf16.xpose.msra.mxu1 %v4276_v43  ;;  %1254 = vmatprep.subr.bf16.mxu0 %v4281_v44  ;;  %v237_v43 = vld [vmem:[%s4452_s16 + $0x198] sm:$0xff] }
  0xb1   : > { %4115 = vmatprep.subr.bf16.mxu1 %v4281_v44  ;;  %v4785_v44 = vpack.c.bf16 %v232_v39, %v230_v38  ;;  %v4787_v45 = vpack.c.bf16 %v237_v43, %v235_v40 }
  0xb5   : > { %941 = vmatmul.mubr.bf16.gmra.mxu0 %v4677_v49 }
  0xb6   : > { %1134 = vmatmul.mubr.bf16.gmra.mxu1 %v4677_v49  ;;  %950 = vmatprep.mubr.bf16.mxu0 %v4679_v50 }
  0xb7   : > { %1143 = vmatprep.mubr.bf16.mxu1 %v4679_v50  ;;  %1255 = vmatpush1.bf16.xpose.msra.mxu0 %v4279_v51 }
  0xb8   : > { %4131 = vmatpush1.bf16.xpose.msra.mxu1 %v4279_v51  ;;  %1256 = vmatprep.subr.bf16.mxu0 %v4284_v52  ;;  %v236_v51 = vld [vmem:[%s4452_s16 + $0x190] sm:$0xff] }
  0xb9   : > { %4116 = vmatprep.subr.bf16.mxu1 %v4284_v52  ;;  %v239_v52 = vld [vmem:[%s4452_s16 + $0x1a8] sm:$0xff]  ;;  %v4803_v54 = vpack.c.bf16 %v236_v51, %v234_v48 }
  0xba   : > { %v4805_v55 = vpack.c.bf16 %v241_v53, %v239_v52 }
  0xbd   : > { %951 = vmatmul.mubr.bf16.gmra.mxu0 %v4695_v57 }
  0xbe   : > { %1144 = vmatmul.mubr.bf16.gmra.mxu1 %v4695_v57  ;;  %960 = vmatprep.mubr.bf16.mxu0 %v4697_v58 }
  0xbf   : > { %1153 = vmatprep.mubr.bf16.mxu1 %v4697_v58  ;;  %1257 = vmatpush1.bf16.xpose.msra.mxu0 %v4282_v59 }
  0xc0   : > { %4132 = vmatpush1.bf16.xpose.msra.mxu1 %v4282_v59  ;;  %1258 = vmatprep.subr.bf16.mxu0 %v4287_v60  ;;  %v4305_v59 = vld [vmem:[%s6549_s1 + $0x2a4] ss:$8 sps:$4 sm:$0xff]  }
  0xc1   : > { %4117 = vmatprep.subr.bf16.mxu1 %v4287_v60  ;;  %v238_v60 = vld [vmem:[%s4452_s16 + $0x1a0] sm:$0xff] }
  0xc2   : > { %v276_v0 = vpack.c.bf16 %v240_v61, %v238_v60 }
  0xc5   : > { %961 = vmatmul.mubr.bf16.gmra.mxu0 %v4713_v1 }
  0xc6   : > { %1154 = vmatmul.mubr.bf16.gmra.mxu1 %v4713_v1  ;;  %970 = vmatprep.mubr.bf16.mxu0 %v4715_v2 }
  0xc7   : > { %1163 = vmatprep.mubr.bf16.mxu1 %v4715_v2  ;;  %1259 = vmatpush1.bf16.xpose.msra.mxu0 %v4285_v3 }
  0xc8   : > { %4133 = vmatpush1.bf16.xpose.msra.mxu1 %v4285_v3  ;;  %1260 = vmatprep.subr.bf16.mxu0 %v4290_v4  ;;  %v279_v3 = vpack.c.bf16 %v245_v63, %v243_v62 }
  0xc9   : > { %4118 = vmatprep.subr.bf16.mxu1 %v4290_v4  ;;  %v4303_v4 = vld [vmem:[%s6549_s1 + $0x2a0] ss:$8 sps:$4 sm:$0xff]  }
  0xcd   : > { %971 = vmatmul.mubr.bf16.gmra.mxu0 %v4731_v11 }
  0xce   : > { %1164 = vmatmul.mubr.bf16.gmra.mxu1 %v4731_v11  ;;  %980 = vmatprep.mubr.bf16.mxu0 %v4733_v12 }
  0xcf   : > { %1173 = vmatprep.mubr.bf16.mxu1 %v4733_v12  ;;  %1261 = vmatpush2.bf16.xpose.msra.mxu0 %v4288_v13 }
  0xd0   : > { %4134 = vmatpush2.bf16.xpose.msra.mxu1 %v4288_v13  ;;  %1262 = vmatprep.subr.bf16.mxu0 %v4293_v14  ;;  %v249_v13 = vld [vmem:[%s4452_s16 + $0x1f8] sm:$0xff] }
  0xd1   : > { %4119 = vmatprep.subr.bf16.mxu1 %v4293_v14  ;;  %v278_v14 = vpack.c.bf16 %v244_v7, %v242_v6  ;;  %v281_v15 = vpack.c.bf16 %v249_v13, %v247_v10 }
  0xd5   : > { %981 = vmatmul.mubr.bf16.gmra.mxu0 %v4749_v21 }
  0xd6   : > { %1174 = vmatmul.mubr.bf16.gmra.mxu1 %v4749_v21  ;;  %990 = vmatprep.mubr.bf16.mxu0 %v4751_v22 }
  0xd7   : > { %1183 = vmatprep.mubr.bf16.mxu1 %v4751_v22  ;;  %1263 = vmatpush2.bf16.xpose.msra.mxu0 %v4291_v23 }
  0xd8   : > { %4135 = vmatpush2.bf16.xpose.msra.mxu1 %v4291_v23  ;;  %1264 = vmatprep.subr.bf16.mxu0 %v4296_v26  ;;  %v248_v23 = vld [vmem:[%s4452_s16 + $0x1f0] sm:$0xff]  ;;  %s4142_s16 = smul.u32 1536, %s6613_s9  ;;  %s4336_s9 = smov 64  }
  0xd9   : > { %4120 = vmatprep.subr.bf16.mxu1 %v4296_v26  ;;  %v280_v26 = vpack.c.bf16 %v248_v23, %v246_v20 }
  0xda   : > { %s4873_s25 = scalar_lea.vmem %s6550_s2, %s4142_s16 }
  0xdd   : > { %991 = vmatmul.mubr.bf16.gmra.mxu0 %v4767_v32 }
  0xde   : > { %1184 = vmatmul.mubr.bf16.gmra.mxu1 %v4767_v32  ;;  %1000 = vmatprep.mubr.bf16.mxu0 %v4769_v35 }
  0xdf   : > { %1193 = vmatprep.mubr.bf16.mxu1 %v4769_v35  ;;  %1265 = vmatpush2.bf16.xpose.msra.mxu0 %v4294_v36 }
  0xe0   : > { %4136 = vmatpush2.bf16.xpose.msra.mxu1 %v4294_v36  ;;  %1266 = vmatprep.subr.bf16.mxu0 %v4299_v37 }
  0xe1   : > { %4121 = vmatprep.subr.bf16.mxu1 %v4299_v37 }
  0xe5   : > { %1001 = vmatmul.mubr.bf16.gmra.mxu0 %v4785_v44 }
  0xe6   : > { %1194 = vmatmul.mubr.bf16.gmra.mxu1 %v4785_v44  ;;  %1010 = vmatprep.mubr.bf16.mxu0 %v4787_v45 }
  0xe7   : > { %1203 = vmatprep.mubr.bf16.mxu1 %v4787_v45  ;;  %1267 = vmatpush2.bf16.xpose.msra.mxu0 %v4297_v46 }
  0xe8   : > { %4137 = vmatpush2.bf16.xpose.msra.mxu1 %v4297_v46  ;;  %1268 = vmatprep.subr.bf16.mxu0 %v4302_v47 }
  0xe9   : > { %4122 = vmatprep.subr.bf16.mxu1 %v4302_v47 }
  0xed   : > { %1011 = vmatmul.mubr.bf16.gmra.mxu0 %v4803_v54 }
  0xee   : > { %1204 = vmatmul.mubr.bf16.gmra.mxu1 %v4803_v54  ;;  %1020 = vmatprep.mubr.bf16.mxu0 %v4805_v55 }
  0xef   : > { %1213 = vmatprep.mubr.bf16.mxu1 %v4805_v55  ;;  %1269 = vmatpush2.bf16.xpose.msra.mxu0 %v4300_v56 }
  0xf0   : > { %4138 = vmatpush2.bf16.xpose.msra.mxu1 %v4300_v56  ;;  %1270 = vmatprep.subr.bf16.mxu0 %v4305_v59 }
  0xf1   : > { %4123 = vmatprep.subr.bf16.mxu1 %v4305_v59 }
  0xf5   : > { %1021 = vmatmul.mubr.bf16.gmra.mxu0 %v276_v0 }
  0xf6   : > { %1214 = vmatmul.mubr.bf16.gmra.mxu1 %v276_v0  ;;  %1030 = vmatprep.mubr.bf16.mxu0 %v279_v3 }
  0xf7   : > { %1223 = vmatprep.mubr.bf16.mxu1 %v279_v3  ;;  %1271 = vmatpush2.bf16.xpose.msra.mxu0 %v4303_v4 }
  0xf8   : > { %4139 = vmatpush2.bf16.xpose.msra.mxu1 %v4303_v4  ;;  %1272 = vmatprep.subr.bf16.mxu0 %v4308_v5 }
  0xf9   : > { %4124 = vmatprep.subr.bf16.mxu1 %v4308_v5 }
  0xfd   : > { %1031 = vmatmul.mubr.bf16.gmra.mxu0 %v278_v14 }
  0xfe   : > { %1224 = vmatmul.mubr.bf16.gmra.mxu1 %v278_v14  ;;  %1040 = vmatprep.mubr.bf16.mxu0 %v281_v15 }
  0xff   : > { %1233 = vmatprep.mubr.bf16.mxu1 %v281_v15  ;;  %1273 = vmatpush2.bf16.xpose.msra.mxu0 %v4306_v18 }
 0x100   : > { %4140 = vmatpush2.bf16.xpose.msra.mxu1 %v4306_v18  ;;  %1274 = vmatprep.subr.bf16.mxu0 %v4311_v19 }
 0x101   : > { %4125 = vmatprep.subr.bf16.mxu1 %v4311_v19 }
 0x105   : > { %1041 = vmatmul.mubr.bf16.gmra.mxu0 %v280_v26 }
 0x106   : > { %1234 = vmatmul.mubr.bf16.gmra.mxu1 %v280_v26  ;;  %1276 = vmatprep.mubr.bf16.mxu0 %v4462_v28 }
 0x107   : > { %1356 = vmatprep.mubr.bf16.mxu1 %v4715_v2  ;;  %1275 = vmatpush2.bf16.xpose.msra.mxu0 %v4309_v27 }
 0x108   : > { %4141 = vmatpush2.bf16.xpose.msra.mxu1 %v4309_v27 }
 0x10e   : > { %1277 = vmatmul.mubr.bf16.vlgmr.msra.gmra.mxu0 %v4587_v8 }
 0x10f   : > { %1357 = vmatmul.mubr.bf16.vlgmr.msra.gmra.mxu1 %v4731_v11  ;;  %1286 = vmatprep.mubr.bf16.mxu0 %v4589_v9 }
 0x110   : > { %1366 = vmatprep.mubr.bf16.mxu1 %v4733_v12 }
 0x116   : > { %1287 = vmatmul.mubr.bf16.gmra.mxu0 %v4605_v16 }
 0x117   : > { %1367 = vmatmul.mubr.bf16.gmra.mxu1 %v4749_v21  ;;  %1296 = vmatprep.mubr.bf16.mxu0 %v4607_v17 }
 0x118   : > { %1376 = vmatprep.mubr.bf16.mxu1 %v4751_v22 }
 0x11e   : > { %1297 = vmatmul.mubr.bf16.gmra.mxu0 %v4623_v24 }
 0x11f   : > { %1377 = vmatmul.mubr.bf16.gmra.mxu1 %v4767_v32  ;;  %1306 = vmatprep.mubr.bf16.mxu0 %v4625_v25 }
 0x120   : > { %1386 = vmatprep.mubr.bf16.mxu1 %v4769_v35 }
 0x126   : > { %1307 = vmatmul.mubr.bf16.gmra.mxu0 %v4641_v33 }
 0x127   : > { %1387 = vmatmul.mubr.bf16.gmra.mxu1 %v4785_v44  ;;  %1316 = vmatprep.mubr.bf16.mxu0 %v4643_v34 }
 0x128   : > { %1396 = vmatprep.mubr.bf16.mxu1 %v4787_v45 }
 0x12e   : > { %1317 = vmatmul.mubr.bf16.gmra.mxu0 %v4659_v41 }
 0x12f   : > { %1397 = vmatmul.mubr.bf16.gmra.mxu1 %v4803_v54  ;;  %1326 = vmatprep.mubr.bf16.mxu0 %v4661_v42 }
 0x130   : > { %1406 = vmatprep.mubr.bf16.mxu1 %v4805_v55 }
 0x136   : > { %1327 = vmatmul.mubr.bf16.gmra.mxu0 %v4677_v49 }
 0x137   : > { %1407 = vmatmul.mubr.bf16.gmra.mxu1 %v276_v0  ;;  %1336 = vmatprep.mubr.bf16.mxu0 %v4679_v50 }
 0x138   : > { %1416 = vmatprep.mubr.bf16.mxu1 %v279_v3 }
 0x13e   : > { %1337 = vmatmul.mubr.bf16.gmra.mxu0 %v4695_v57 }
 0x13f   : > { %1417 = vmatmul.mubr.bf16.gmra.mxu1 %v278_v14  ;;  %1346 = vmatprep.mubr.bf16.mxu0 %v4697_v58 }
 0x140   : > { %1426 = vmatprep.mubr.bf16.mxu1 %v281_v15 }
 0x146   : > { %1347 = vmatmul.mubr.bf16.gmra.mxu0 %v4713_v1 }
 0x147   : > { %1427 = vmatmul.mubr.bf16.gmra.mxu1 %v280_v26 }
 0x14d   : > { %v892_v28 = vpop.f32.mrf.mxu0 }
 0x14e   : > { %v1085_v8 = vpop.f32.mrf.mxu1  ;;  %v3918_v9 = vpack.c.bf16 %v892_v28, %v892_v28 }
 0x14f   : > { %v3982_v16 = vpack.c.bf16 %v1085_v8, %v1085_v8  ;;  %v894_v17 = vpop.f32.mrf.mxu0 }
 0x150   : > { %v1087_v24 = vpop.f32.mrf.mxu1  ;;  %1566 = vst.msk [vmem:[%s4873_s25] sm:$0xf] %vm1565_vm0, %v3918_v9  ;;  %v3950_v25 = vpack.c.bf16 %v894_v17, %v894_v17  ;;  %1598 = vrot.lane.b32.xlu0 %v3918_v9, %s4336_s9 }
 0x151   : > { %3563 = vst.msk [vmem:[%s4873_s25 + $0x200] sm:$0xf] %vm1565_vm0, %v3982_v16  ;;  %v4014_v33 = vpack.c.bf16 %v1087_v24, %v1087_v24  ;;  %v896_v34 = vpop.f32.mrf.mxu0 }
 0x152   : > { %v1089_v41 = vpop.f32.mrf.mxu1  ;;  %3467 = vst.msk [vmem:[%s4873_s25 + $0x100] sm:$0xf] %vm1565_vm0, %v3950_v25  ;;  %v3919_v42 = vpack.c.bf16 %v896_v34, %v896_v34 }
 0x153   : > { %3659 = vst.msk [vmem:[%s4873_s25 + $0x300] sm:$0xf] %vm1565_vm0, %v4014_v33  ;;  %v3983_v49 = vpack.c.bf16 %v1089_v41, %v1089_v41  ;;  %v898_v50 = vpop.f32.mrf.mxu0 }
 0x154   : > { %v1091_v57 = vpop.f32.mrf.mxu1  ;;  %1567 = vst.msk [vmem:[%s4873_s25 + $0x4] sm:$0xf] %vm1565_vm0, %v3919_v42  ;;  %v3951_v58 = vpack.c.bf16 %v898_v50, %v898_v50  ;;  %2178 = vrot.lane.b32.xlu0 %v3982_v16, %s4336_s9 }
 0x155   : > { %3564 = vst.msk [vmem:[%s4873_s25 + $0x204] sm:$0xf] %vm1565_vm0, %v3983_v49  ;;  %v4015_v1 = vpack.c.bf16 %v1091_v57, %v1091_v57  ;;  %2180 = vrot.lane.b32.xlu1 %v3983_v49, %s4336_s9  ;;  %v902_v2 = vpop.f32.mrf.mxu0 }
 0x156   : > { %v1095_v11 = vpop.f32.mrf.mxu1  ;;  %3468 = vst.msk [vmem:[%s4873_s25 + $0x104] sm:$0xf] %vm1565_vm0, %v3951_v58  ;;  %v3920_v12 = vpack.c.bf16 %v902_v2, %v902_v2 }
 0x157   : > { %3660 = vst.msk [vmem:[%s4873_s25 + $0x304] sm:$0xf] %vm1565_vm0, %v4015_v1  ;;  %v3984_v21 = vpack.c.bf16 %v1095_v11, %v1095_v11  ;;  %v904_v22 = vpop.f32.mrf.mxu0 }
 0x158   : > { %v1097_v29 = vpop.f32.mrf.mxu1  ;;  %1568 = vst.msk [vmem:[%s4873_s25 + $0x8] sm:$0xf] %vm1565_vm0, %v3920_v12  ;;  %1888 = vrot.lane.b32.xlu0 %v3950_v25, %s4336_s9  ;;  %v3952_v30 = vpack.c.bf16 %v904_v22, %v904_v22 }
 0x159   : > { %1890 = vrot.lane.b32.xlu1 %v3951_v58, %s4336_s9  ;;  %3565 = vst.msk [vmem:[%s4873_s25 + $0x208] sm:$0xf] %vm1565_vm0, %v3984_v21  ;;  %v4900_v31 = vpack.c.bf16 %v1097_v29, %v1097_v29  ;;  %v906_v32 = vpop.f32.mrf.mxu0 }
 0x15a   : > { %v1099_v35 = vpop.f32.mrf.mxu1  ;;  %3469 = vst.msk [vmem:[%s4873_s25 + $0x108] sm:$0xf] %vm1565_vm0, %v3952_v30  ;;  %v3921_v36 = vpack.c.bf16 %v906_v32, %v906_v32 }
 0x15b   : > { %3661 = vst.msk [vmem:[%s4873_s25 + $0x308] sm:$0xf] %vm1565_vm0, %v4900_v31  ;;  %v3985_v37 = vpack.c.bf16 %v1099_v35, %v1099_v35  ;;  %v908_v38 = vpop.f32.mrf.mxu0 }
 0x15c   : > { %v1101_v39 = vpop.f32.mrf.mxu1  ;;  %1569 = vst.msk [vmem:[%s4873_s25 + $0xc] sm:$0xf] %vm1565_vm0, %v3921_v36  ;;  %2468 = vrot.lane.b32.xlu0 %v4014_v33, %s4336_s9  ;;  %v3953_v40 = vpack.c.bf16 %v908_v38, %v908_v38 }
 0x15d   : > { %2470 = vrot.lane.b32.xlu1 %v4015_v1, %s4336_s9  ;;  %3566 = vst.msk [vmem:[%s4873_s25 + $0x20c] sm:$0xf] %vm1565_vm0, %v3985_v37  ;;  %v4913_v43 = vpack.c.bf16 %v1101_v39, %v1101_v39  ;;  %v912_v44 = vpop.f32.mrf.mxu0 }
 0x15e   : > { %v1105_v45 = vpop.f32.mrf.mxu1  ;;  %3470 = vst.msk [vmem:[%s4873_s25 + $0x10c] sm:$0xf] %vm1565_vm0, %v3953_v40  ;;  %v3922_v46 = vpack.c.bf16 %v912_v44, %v912_v44 }
 0x15f   : > { %3662 = vst.msk [vmem:[%s4873_s25 + $0x30c] sm:$0xf] %vm1565_vm0, %v4913_v43  ;;  %v4920_v47 = vpack.c.bf16 %v1105_v45, %v1105_v45  ;;  %v914_v48 = vpop.f32.mrf.mxu0 }
 0x160   : > { %v1107_v51 = vpop.f32.mrf.mxu1  ;;  %1600 = vrot.lane.b32.xlu0 %v3919_v42, %s4336_s9  ;;  %1570 = vst.msk [vmem:[%s4873_s25 + $0x10] sm:$0xf] %vm1565_vm0, %v3922_v46  ;;  %v4926_v52 = vpack.c.bf16 %v914_v48, %v914_v48 }
 0x161   : > { %1602 = vrot.lane.b32.xlu1 %v3920_v12, %s4336_s9  ;;  %3567 = vst.msk [vmem:[%s4873_s25 + $0x210] sm:$0xf] %vm1565_vm0, %v4920_v47  ;;  %v4931_v53 = vpack.c.bf16 %v1107_v51, %v1107_v51  ;;  %v916_v54 = vpop.f32.mrf.mxu0 }
 0x162   : > { %v1109_v55 = vpop.f32.mrf.mxu1  ;;  %3471 = vst.msk [vmem:[%s4873_s25 + $0x110] sm:$0xf] %vm1565_vm0, %v4926_v52  ;;  %v3923_v56 = vpack.c.bf16 %v916_v54, %v916_v54 }
 0x163   : > { %3663 = vst.msk [vmem:[%s4873_s25 + $0x310] sm:$0xf] %vm1565_vm0, %v4931_v53  ;;  %v4939_v59 = vpack.c.bf16 %v1109_v55, %v1109_v55  ;;  %v918_v60 = vpop.f32.mrf.mxu0 }
 0x164   : > { %v1111_v61 = vpop.f32.mrf.mxu1  ;;  %2182 = vrot.lane.b32.xlu0 %v3984_v21, %s4336_s9  ;;  %1571 = vst.msk [vmem:[%s4873_s25 + $0x14] sm:$0xf] %vm1565_vm0, %v3923_v56  ;;  %v4945_v62 = vpack.c.bf16 %v918_v60, %v918_v60 }
 0x165   : > { %1604 = vrot.lane.b32.xlu1 %v3921_v36, %s4336_s9  ;;  %3568 = vst.msk [vmem:[%s4873_s25 + $0x214] sm:$0xf] %vm1565_vm0, %v4939_v59  ;;  %v4950_v63 = vpack.c.bf16 %v1111_v61, %v1111_v61  ;;  %v922_v0 = vpop.f32.mrf.mxu0 }
 0x166   : > { %v1115_v3 = vpop.f32.mrf.mxu1  ;;  %3472 = vst.msk [vmem:[%s4873_s25 + $0x114] sm:$0xf] %vm1565_vm0, %v4945_v62  ;;  %v4958_v4 = vpack.c.bf16 %v922_v0, %v922_v0 }
 0x167   : > { %3664 = vst.msk [vmem:[%s4873_s25 + $0x314] sm:$0xf] %vm1565_vm0, %v4950_v63  ;;  %v4960_v5 = vpack.c.bf16 %v1115_v3, %v1115_v3  ;;  %v924_v6 = vpop.f32.mrf.mxu0 }
 0x168   : > { %v1117_v7 = vpop.f32.mrf.mxu1  ;;  %1892 = vrot.lane.b32.xlu0 %v3952_v30, %s4336_s9  ;;  %1572 = vst.msk [vmem:[%s4873_s25 + $0x18] sm:$0xf] %vm1565_vm0, %v4958_v4  ;;  %v4967_v10 = vpack.c.bf16 %v924_v6, %v924_v6 }
 0x169   : > { %2184 = vrot.lane.b32.xlu1 %v3985_v37, %s4336_s9  ;;  %3569 = vst.msk [vmem:[%s4873_s25 + $0x218] sm:$0xf] %vm1565_vm0, %v4960_v5  ;;  %v4972_v13 = vpack.c.bf16 %v1117_v7, %v1117_v7  ;;  %v926_v14 = vpop.f32.mrf.mxu0 }
 0x16a   : > { %v1119_v15 = vpop.f32.mrf.mxu1  ;;  %3473 = vst.msk [vmem:[%s4873_s25 + $0x118] sm:$0xf] %vm1565_vm0, %v4967_v10  ;;  %v4977_v18 = vpack.c.bf16 %v926_v14, %v926_v14 }
 0x16b   : > { %3665 = vst.msk [vmem:[%s4873_s25 + $0x318] sm:$0xf] %vm1565_vm0, %v4972_v13  ;;  %v4982_v19 = vpack.c.bf16 %v1119_v15, %v1119_v15  ;;  %v928_v20 = vpop.f32.mrf.mxu0 }
 0x16c   : > { %v1121_v23 = vpop.f32.mrf.mxu1  ;;  %2472 = vrot.lane.b32.xlu0 %v4900_v31, %s4336_s9  ;;  %1573 = vst.msk [vmem:[%s4873_s25 + $0x1c] sm:$0xf] %vm1565_vm0, %v4977_v18  ;;  %v4990_v26 = vpack.c.bf16 %v928_v20, %v928_v20 }
 0x16d   : > { %1894 = vrot.lane.b32.xlu1 %v3953_v40, %s4336_s9  ;;  %3570 = vst.msk [vmem:[%s4873_s25 + $0x21c] sm:$0xf] %vm1565_vm0, %v4982_v19  ;;  %v4995_v27 = vpack.c.bf16 %v1121_v23, %v1121_v23  ;;  %v932_v28 = vpop.f32.mrf.mxu0 }
 0x16e   : > { %v1125_v8 = vpop.f32.mrf.mxu1  ;;  %3474 = vst.msk [vmem:[%s4873_s25 + $0x11c] sm:$0xf] %vm1565_vm0, %v4990_v26  ;;  %v5003_v9 = vpack.c.bf16 %v932_v28, %v932_v28 }
 0x16f   : > { %3666 = vst.msk [vmem:[%s4873_s25 + $0x31c] sm:$0xf] %vm1565_vm0, %v4995_v27  ;;  %v5005_v16 = vpack.c.bf16 %v1125_v8, %v1125_v8  ;;  %v934_v17 = vpop.f32.mrf.mxu0 }
 0x170   : > { %v1127_v24 = vpop.f32.mrf.mxu1  ;;  %1606 = vrot.lane.b32.xlu0 %v3922_v46, %s4336_s9  ;;  %1574 = vst.msk [vmem:[%s4873_s25 + $0x20] sm:$0xf] %vm1565_vm0, %v5003_v9  ;;  %v5013_v25 = vpack.c.bf16 %v934_v17, %v934_v17 }
 0x171   : > { %2474 = vrot.lane.b32.xlu1 %v4913_v43, %s4336_s9  ;;  %3571 = vst.msk [vmem:[%s4873_s25 + $0x220] sm:$0xf] %vm1565_vm0, %v5005_v16  ;;  %v5018_v33 = vpack.c.bf16 %v1127_v24, %v1127_v24  ;;  %v936_v34 = vpop.f32.mrf.mxu0 }
 0x172   : > { %v1129_v41 = vpop.f32.mrf.mxu1  ;;  %3475 = vst.msk [vmem:[%s4873_s25 + $0x120] sm:$0xf] %vm1565_vm0, %v5013_v25  ;;  %v5023_v42 = vpack.c.bf16 %v936_v34, %v936_v34 }
 0x173   : > { %3667 = vst.msk [vmem:[%s4873_s25 + $0x320] sm:$0xf] %vm1565_vm0, %v5018_v33  ;;  %v5028_v49 = vpack.c.bf16 %v1129_v41, %v1129_v41  ;;  %v938_v50 = vpop.f32.mrf.mxu0 }
 0x174   : > { %v1131_v57 = vpop.f32.mrf.mxu1  ;;  %2186 = vrot.lane.b32.xlu0 %v4920_v47, %s4336_s9  ;;  %1575 = vst.msk [vmem:[%s4873_s25 + $0x24] sm:$0xf] %vm1565_vm0, %v5023_v42  ;;  %v5036_v58 = vpack.c.bf16 %v938_v50, %v938_v50 }
 0x175   : > { %1608 = vrot.lane.b32.xlu1 %v3923_v56, %s4336_s9  ;;  %3572 = vst.msk [vmem:[%s4873_s25 + $0x224] sm:$0xf] %vm1565_vm0, %v5028_v49  ;;  %v5041_v1 = vpack.c.bf16 %v1131_v57, %v1131_v57  ;;  %v942_v2 = vpop.f32.mrf.mxu0 }
 0x176   : > { %v1135_v11 = vpop.f32.mrf.mxu1  ;;  %3476 = vst.msk [vmem:[%s4873_s25 + $0x124] sm:$0xf] %vm1565_vm0, %v5036_v58  ;;  %v5049_v12 = vpack.c.bf16 %v942_v2, %v942_v2 }
 0x177   : > { %3668 = vst.msk [vmem:[%s4873_s25 + $0x324] sm:$0xf] %vm1565_vm0, %v5041_v1  ;;  %v5051_v21 = vpack.c.bf16 %v1135_v11, %v1135_v11  ;;  %v944_v22 = vpop.f32.mrf.mxu0 }
 0x178   : > { %v1137_v29 = vpop.f32.mrf.mxu1  ;;  %1896 = vrot.lane.b32.xlu0 %v4926_v52, %s4336_s9  ;;  %1576 = vst.msk [vmem:[%s4873_s25 + $0x28] sm:$0xf] %vm1565_vm0, %v5049_v12  ;;  %v5060_v30 = vpack.c.bf16 %v944_v22, %v944_v22 }
 0x179   : > { %2188 = vrot.lane.b32.xlu1 %v4939_v59, %s4336_s9  ;;  %3573 = vst.msk [vmem:[%s4873_s25 + $0x228] sm:$0xf] %vm1565_vm0, %v5051_v21  ;;  %v5065_v31 = vpack.c.bf16 %v1137_v29, %v1137_v29  ;;  %v946_v32 = vpop.f32.mrf.mxu0 }
 0x17a   : > { %v1139_v35 = vpop.f32.mrf.mxu1  ;;  %3477 = vst.msk [vmem:[%s4873_s25 + $0x128] sm:$0xf] %vm1565_vm0, %v5060_v30  ;;  %v5070_v36 = vpack.c.bf16 %v946_v32, %v946_v32 }
 0x17b   : > { %3669 = vst.msk [vmem:[%s4873_s25 + $0x328] sm:$0xf] %vm1565_vm0, %v5065_v31  ;;  %v5075_v37 = vpack.c.bf16 %v1139_v35, %v1139_v35  ;;  %v948_v38 = vpop.f32.mrf.mxu0 }
 0x17c   : > { %v1141_v39 = vpop.f32.mrf.mxu1  ;;  %2476 = vrot.lane.b32.xlu0 %v4931_v53, %s4336_s9  ;;  %1577 = vst.msk [vmem:[%s4873_s25 + $0x2c] sm:$0xf] %vm1565_vm0, %v5070_v36  ;;  %v5084_v40 = vpack.c.bf16 %v948_v38, %v948_v38 }
 0x17d   : > { %1898 = vrot.lane.b32.xlu1 %v4945_v62, %s4336_s9  ;;  %3574 = vst.msk [vmem:[%s4873_s25 + $0x22c] sm:$0xf] %vm1565_vm0, %v5075_v37  ;;  %v5089_v43 = vpack.c.bf16 %v1141_v39, %v1141_v39  ;;  %v952_v44 = vpop.f32.mrf.mxu0 }
 0x17e   : > { %v1145_v45 = vpop.f32.mrf.mxu1  ;;  %3478 = vst.msk [vmem:[%s4873_s25 + $0x12c] sm:$0xf] %vm1565_vm0, %v5084_v40  ;;  %v5097_v46 = vpack.c.bf16 %v952_v44, %v952_v44 }
 0x17f   : > { %3670 = vst.msk [vmem:[%s4873_s25 + $0x32c] sm:$0xf] %vm1565_vm0, %v5089_v43  ;;  %v5099_v47 = vpack.c.bf16 %v1145_v45, %v1145_v45  ;;  %v954_v48 = vpop.f32.mrf.mxu0 }
 0x180   : > { %v1147_v51 = vpop.f32.mrf.mxu1  ;;  %1610 = vrot.lane.b32.xlu0 %v4958_v4, %s4336_s9  ;;  %1578 = vst.msk [vmem:[%s4873_s25 + $0x30] sm:$0xf] %vm1565_vm0, %v5097_v46  ;;  %v5108_v52 = vpack.c.bf16 %v954_v48, %v954_v48 }
 0x181   : > { %2478 = vrot.lane.b32.xlu1 %v4950_v63, %s4336_s9  ;;  %3575 = vst.msk [vmem:[%s4873_s25 + $0x230] sm:$0xf] %vm1565_vm0, %v5099_v47  ;;  %v5113_v53 = vpack.c.bf16 %v1147_v51, %v1147_v51  ;;  %v956_v54 = vpop.f32.mrf.mxu0 }
 0x182   : > { %v1149_v55 = vpop.f32.mrf.mxu1  ;;  %3479 = vst.msk [vmem:[%s4873_s25 + $0x130] sm:$0xf] %vm1565_vm0, %v5108_v52  ;;  %v5118_v56 = vpack.c.bf16 %v956_v54, %v956_v54 }
 0x183   : > { %3671 = vst.msk [vmem:[%s4873_s25 + $0x330] sm:$0xf] %vm1565_vm0, %v5113_v53  ;;  %v5123_v59 = vpack.c.bf16 %v1149_v55, %v1149_v55  ;;  %v958_v60 = vpop.f32.mrf.mxu0 }
 0x184   : > { %v1151_v61 = vpop.f32.mrf.mxu1  ;;  %2190 = vrot.lane.b32.xlu0 %v4960_v5, %s4336_s9  ;;  %1579 = vst.msk [vmem:[%s4873_s25 + $0x34] sm:$0xf] %vm1565_vm0, %v5118_v56  ;;  %v5132_v62 = vpack.c.bf16 %v958_v60, %v958_v60 }
 0x185   : > { %1612 = vrot.lane.b32.xlu1 %v4977_v18, %s4336_s9  ;;  %3576 = vst.msk [vmem:[%s4873_s25 + $0x234] sm:$0xf] %vm1565_vm0, %v5123_v59  ;;  %v5137_v63 = vpack.c.bf16 %v1151_v61, %v1151_v61  ;;  %v962_v0 = vpop.f32.mrf.mxu0 }
 0x186   : > { %v1155_v3 = vpop.f32.mrf.mxu1  ;;  %3480 = vst.msk [vmem:[%s4873_s25 + $0x134] sm:$0xf] %vm1565_vm0, %v5132_v62  ;;  %v5145_v4 = vpack.c.bf16 %v962_v0, %v962_v0 }
 0x187   : > { %3672 = vst.msk [vmem:[%s4873_s25 + $0x334] sm:$0xf] %vm1565_vm0, %v5137_v63  ;;  %v5147_v5 = vpack.c.bf16 %v1155_v3, %v1155_v3  ;;  %v964_v6 = vpop.f32.mrf.mxu0 }
 0x188   : > { %v1157_v7 = vpop.f32.mrf.mxu1  ;;  %1900 = vrot.lane.b32.xlu0 %v4967_v10, %s4336_s9  ;;  %1580 = vst.msk [vmem:[%s4873_s25 + $0x38] sm:$0xf] %vm1565_vm0, %v5145_v4  ;;  %v5156_v14 = vpack.c.bf16 %v964_v6, %v964_v6 }
 0x189   : > { %2192 = vrot.lane.b32.xlu1 %v4982_v19, %s4336_s9  ;;  %3577 = vst.msk [vmem:[%s4873_s25 + $0x238] sm:$0xf] %vm1565_vm0, %v5147_v5  ;;  %v5161_v15 = vpack.c.bf16 %v1157_v7, %v1157_v7  ;;  %v966_v18 = vpop.f32.mrf.mxu0 }
 0x18a   : > { %v1159_v20 = vpop.f32.mrf.mxu1  ;;  %3481 = vst.msk [vmem:[%s4873_s25 + $0x138] sm:$0xf] %vm1565_vm0, %v5156_v14  ;;  %v5166_v10 = vpack.c.bf16 %v966_v18, %v966_v18 }
 0x18b   : > { %3673 = vst.msk [vmem:[%s4873_s25 + $0x338] sm:$0xf] %vm1565_vm0, %v5161_v15  ;;  %v5171_v19 = vpack.c.bf16 %v1159_v20, %v1159_v20  ;;  %v968_v23 = vpop.f32.mrf.mxu0 }
 0x18c   : > { %v1161_v28 = vpop.f32.mrf.mxu1  ;;  %2480 = vrot.lane.b32.xlu0 %v4972_v13, %s4336_s9  ;;  %1581 = vst.msk [vmem:[%s4873_s25 + $0x3c] sm:$0xf] %vm1565_vm0, %v5166_v10  ;;  %v5180_v8 = vpack.c.bf16 %v968_v23, %v968_v23 }
 0x18d   : > { %1902 = vrot.lane.b32.xlu1 %v4990_v26, %s4336_s9  ;;  %3578 = vst.msk [vmem:[%s4873_s25 + $0x23c] sm:$0xf] %vm1565_vm0, %v5171_v19  ;;  %v5185_v17 = vpack.c.bf16 %v1161_v28, %v1161_v28  ;;  %v972_v24 = vpop.f32.mrf.mxu0 }
 0x18e   : > { %v1165_v34 = vpop.f32.mrf.mxu1  ;;  %3482 = vst.msk [vmem:[%s4873_s25 + $0x13c] sm:$0xf] %vm1565_vm0, %v5180_v8  ;;  %v5193_v13 = vpack.c.bf16 %v972_v24, %v972_v24 }
 0x18f   : > { %3674 = vst.msk [vmem:[%s4873_s25 + $0x33c] sm:$0xf] %vm1565_vm0, %v5185_v17  ;;  %v5195_v26 = vpack.c.bf16 %v1165_v34, %v1165_v34  ;;  %v974_v41 = vpop.f32.mrf.mxu0 }
 0x190   : > { %v1167_v50 = vpop.f32.mrf.mxu1  ;;  %1614 = vrot.lane.b32.xlu0 %v5003_v9, %s4336_s9  ;;  %1582 = vst.msk [vmem:[%s4873_s25 + $0x40] sm:$0xf] %vm1565_vm0, %v5193_v13  ;;  %v5204_v57 = vpack.c.bf16 %v974_v41, %v974_v41 }
 0x191   : > { %2482 = vrot.lane.b32.xlu1 %v4995_v27, %s4336_s9  ;;  %3579 = vst.msk [vmem:[%s4873_s25 + $0x240] sm:$0xf] %vm1565_vm0, %v5195_v26  ;;  %v5209_v2 = vpack.c.bf16 %v1167_v50, %v1167_v50  ;;  %v976_v11 = vpop.f32.mrf.mxu0 }
 0x192   : > { %v1169_v22 = vpop.f32.mrf.mxu1  ;;  %3483 = vst.msk [vmem:[%s4873_s25 + $0x140] sm:$0xf] %vm1565_vm0, %v5204_v57  ;;  %v5214_v27 = vpack.c.bf16 %v976_v11, %v976_v11 }
 0x193   : > { %3675 = vst.msk [vmem:[%s4873_s25 + $0x340] sm:$0xf] %vm1565_vm0, %v5209_v2  ;;  %v5219_v9 = vpack.c.bf16 %v1169_v22, %v1169_v22  ;;  %v978_v29 = vpop.f32.mrf.mxu0 }
 0x194   : > { %v1171_v32 = vpop.f32.mrf.mxu1  ;;  %2194 = vrot.lane.b32.xlu0 %v5005_v16, %s4336_s9  ;;  %1583 = vst.msk [vmem:[%s4873_s25 + $0x44] sm:$0xf] %vm1565_vm0, %v5214_v27  ;;  %v5228_v35 = vpack.c.bf16 %v978_v29, %v978_v29 }
 0x195   : > { %1616 = vrot.lane.b32.xlu1 %v5023_v42, %s4336_s9  ;;  %3580 = vst.msk [vmem:[%s4873_s25 + $0x244] sm:$0xf] %vm1565_vm0, %v5219_v9  ;;  %v5233_v38 = vpack.c.bf16 %v1171_v32, %v1171_v32  ;;  %v982_v39 = vpop.f32.mrf.mxu0 }
 0x196   : > { %v1175_v44 = vpop.f32.mrf.mxu1  ;;  %3484 = vst.msk [vmem:[%s4873_s25 + $0x144] sm:$0xf] %vm1565_vm0, %v5228_v35  ;;  %v5241_v16 = vpack.c.bf16 %v982_v39, %v982_v39 }
 0x197   : > { %3676 = vst.msk [vmem:[%s4873_s25 + $0x344] sm:$0xf] %vm1565_vm0, %v5233_v38  ;;  %v5243_v42 = vpack.c.bf16 %v1175_v44, %v1175_v44  ;;  %v984_v45 = vpop.f32.mrf.mxu0 }
 0x198   : > { %v1177_v48 = vpop.f32.mrf.mxu1  ;;  %1904 = vrot.lane.b32.xlu0 %v5013_v25, %s4336_s9  ;;  %1584 = vst.msk [vmem:[%s4873_s25 + $0x48] sm:$0xf] %vm1565_vm0, %v5241_v16  ;;  %v5252_v51 = vpack.c.bf16 %v984_v45, %v984_v45 }
 0x199   : > { %2196 = vrot.lane.b32.xlu1 %v5028_v49, %s4336_s9  ;;  %3581 = vst.msk [vmem:[%s4873_s25 + $0x248] sm:$0xf] %vm1565_vm0, %v5243_v42  ;;  %v5257_v54 = vpack.c.bf16 %v1177_v48, %v1177_v48  ;;  %v986_v55 = vpop.f32.mrf.mxu0 }
 0x19a   : > { %v1179_v60 = vpop.f32.mrf.mxu1  ;;  %3485 = vst.msk [vmem:[%s4873_s25 + $0x148] sm:$0xf] %vm1565_vm0, %v5252_v51  ;;  %v5262_v25 = vpack.c.bf16 %v986_v55, %v986_v55 }
 0x19b   : > { %3677 = vst.msk [vmem:[%s4873_s25 + $0x348] sm:$0xf] %vm1565_vm0, %v5257_v54  ;;  %v5267_v49 = vpack.c.bf16 %v1179_v60, %v1179_v60  ;;  %v988_v61 = vpop.f32.mrf.mxu0 }
 0x19c   : > { %v1181_v0 = vpop.f32.mrf.mxu1  ;;  %2484 = vrot.lane.b32.xlu0 %v5018_v33, %s4336_s9  ;;  %1585 = vst.msk [vmem:[%s4873_s25 + $0x4c] sm:$0xf] %vm1565_vm0, %v5262_v25  ;;  %v5276_v3 = vpack.c.bf16 %v988_v61, %v988_v61 }
 0x19d   : > { %1906 = vrot.lane.b32.xlu1 %v5036_v58, %s4336_s9  ;;  %3582 = vst.msk [vmem:[%s4873_s25 + $0x24c] sm:$0xf] %vm1565_vm0, %v5267_v49  ;;  %v5281_v6 = vpack.c.bf16 %v1181_v0, %v1181_v0  ;;  %v992_v7 = vpop.f32.mrf.mxu0 }
 0x19e   : > { %v1185_v18 = vpop.f32.mrf.mxu1  ;;  %3486 = vst.msk [vmem:[%s4873_s25 + $0x14c] sm:$0xf] %vm1565_vm0, %v5276_v3  ;;  %v5289_v33 = vpack.c.bf16 %v992_v7, %v992_v7 }
 0x19f   : > { %3678 = vst.msk [vmem:[%s4873_s25 + $0x34c] sm:$0xf] %vm1565_vm0, %v5281_v6  ;;  %v5291_v58 = vpack.c.bf16 %v1185_v18, %v1185_v18  ;;  %v994_v20 = vpop.f32.mrf.mxu0 }
 0x1a0   : > { %v1187_v23 = vpop.f32.mrf.mxu1  ;;  %1618 = vrot.lane.b32.xlu0 %v5049_v12, %s4336_s9  ;;  %1586 = vst.msk [vmem:[%s4873_s25 + $0x50] sm:$0xf] %vm1565_vm0, %v5289_v33  ;;  %v5300_v28 = vpack.c.bf16 %v994_v20, %v994_v20 }
 0x1a1   : > { %2486 = vrot.lane.b32.xlu1 %v5041_v1, %s4336_s9  ;;  %3583 = vst.msk [vmem:[%s4873_s25 + $0x250] sm:$0xf] %vm1565_vm0, %v5291_v58  ;;  %v5305_v24 = vpack.c.bf16 %v1187_v23, %v1187_v23  ;;  %v996_v34 = vpop.f32.mrf.mxu0 }
 0x1a2   : > { %v1189_v41 = vpop.f32.mrf.mxu1  ;;  %3487 = vst.msk [vmem:[%s4873_s25 + $0x150] sm:$0xf] %vm1565_vm0, %v5300_v28  ;;  %v5310_v1 = vpack.c.bf16 %v996_v34, %v996_v34 }
 0x1a3   : > { %3679 = vst.msk [vmem:[%s4873_s25 + $0x350] sm:$0xf] %vm1565_vm0, %v5305_v24  ;;  %v5315_v12 = vpack.c.bf16 %v1189_v41, %v1189_v41  ;;  %v998_v50 = vpop.f32.mrf.mxu0 }
 0x1a4   : > { %v1191_v11 = vpop.f32.mrf.mxu1  ;;  %2198 = vrot.lane.b32.xlu0 %v5051_v21, %s4336_s9  ;;  %1587 = vst.msk [vmem:[%s4873_s25 + $0x54] sm:$0xf] %vm1565_vm0, %v5310_v1  ;;  %v5324_v22 = vpack.c.bf16 %v998_v50, %v998_v50 }
 0x1a5   : > { %1620 = vrot.lane.b32.xlu1 %v5070_v36, %s4336_s9  ;;  %3584 = vst.msk [vmem:[%s4873_s25 + $0x254] sm:$0xf] %vm1565_vm0, %v5315_v12  ;;  %v5329_v29 = vpack.c.bf16 %v1191_v11, %v1191_v11  ;;  %v1002_v32 = vpop.f32.mrf.mxu0 }
 0x1a6   : > { %v1195_v39 = vpop.f32.mrf.mxu1  ;;  %3488 = vst.msk [vmem:[%s4873_s25 + $0x154] sm:$0xf] %vm1565_vm0, %v5324_v22  ;;  %v5337_v21 = vpack.c.bf16 %v1002_v32, %v1002_v32 }
 0x1a7   : > { %3680 = vst.msk [vmem:[%s4873_s25 + $0x354] sm:$0xf] %vm1565_vm0, %v5329_v29  ;;  %v5339_v36 = vpack.c.bf16 %v1195_v39, %v1195_v39  ;;  %v1004_v44 = vpop.f32.mrf.mxu0 }
 0x1a8   : > { %v1197_v45 = vpop.f32.mrf.mxu1  ;;  %1908 = vrot.lane.b32.xlu0 %v5060_v30, %s4336_s9  ;;  %1588 = vst.msk [vmem:[%s4873_s25 + $0x58] sm:$0xf] %vm1565_vm0, %v5337_v21  ;;  %v5348_v48 = vpack.c.bf16 %v1004_v44, %v1004_v44 }
 0x1a9   : > { %2200 = vrot.lane.b32.xlu1 %v5075_v37, %s4336_s9  ;;  %3585 = vst.msk [vmem:[%s4873_s25 + $0x258] sm:$0xf] %vm1565_vm0, %v5339_v36  ;;  %v5353_v55 = vpack.c.bf16 %v1197_v45, %v1197_v45  ;;  %v1006_v60 = vpop.f32.mrf.mxu0 }
 0x1aa   : > { %v1199_v61 = vpop.f32.mrf.mxu1  ;;  %3489 = vst.msk [vmem:[%s4873_s25 + $0x158] sm:$0xf] %vm1565_vm0, %v5348_v48  ;;  %v5358_v30 = vpack.c.bf16 %v1006_v60, %v1006_v60 }
 0x1ab   : > { %3681 = vst.msk [vmem:[%s4873_s25 + $0x358] sm:$0xf] %vm1565_vm0, %v5353_v55  ;;  %v5363_v37 = vpack.c.bf16 %v1199_v61, %v1199_v61  ;;  %v1008_v0 = vpop.f32.mrf.mxu0 }
 0x1ac   : > { %v1201_v7 = vpop.f32.mrf.mxu1  ;;  %2488 = vrot.lane.b32.xlu0 %v5065_v31, %s4336_s9  ;;  %1589 = vst.msk [vmem:[%s4873_s25 + $0x5c] sm:$0xf] %vm1565_vm0, %v5358_v30  ;;  %v5372_v18 = vpack.c.bf16 %v1008_v0, %v1008_v0 }
 0x1ad   : > { %1910 = vrot.lane.b32.xlu1 %v5084_v40, %s4336_s9  ;;  %3586 = vst.msk [vmem:[%s4873_s25 + $0x25c] sm:$0xf] %vm1565_vm0, %v5363_v37  ;;  %v5377_v20 = vpack.c.bf16 %v1201_v7, %v1201_v7  ;;  %v1012_v23 = vpop.f32.mrf.mxu0 }
 0x1ae   : > { %v1205_v34 = vpop.f32.mrf.mxu1  ;;  %3490 = vst.msk [vmem:[%s4873_s25 + $0x15c] sm:$0xf] %vm1565_vm0, %v5372_v18  ;;  %v5385_v31 = vpack.c.bf16 %v1012_v23, %v1012_v23 }
 0x1af   : > { %3682 = vst.msk [vmem:[%s4873_s25 + $0x35c] sm:$0xf] %vm1565_vm0, %v5377_v20  ;;  %v5387_v40 = vpack.c.bf16 %v1205_v34, %v1205_v34  ;;  %v1014_v41 = vpop.f32.mrf.mxu0 }
 0x1b0   : > { %v1207_v50 = vpop.f32.mrf.mxu1  ;;  %1622 = vrot.lane.b32.xlu0 %v5097_v46, %s4336_s9  ;;  %1590 = vst.msk [vmem:[%s4873_s25 + $0x60] sm:$0xf] %vm1565_vm0, %v5385_v31  ;;  %v5396_v11 = vpack.c.bf16 %v1014_v41, %v1014_v41 }
 0x1b1   : > { %2490 = vrot.lane.b32.xlu1 %v5089_v43, %s4336_s9  ;;  %3587 = vst.msk [vmem:[%s4873_s25 + $0x260] sm:$0xf] %vm1565_vm0, %v5387_v40  ;;  %v5401_v32 = vpack.c.bf16 %v1207_v50, %v1207_v50  ;;  %v1016_v39 = vpop.f32.mrf.mxu0 }
 0x1b2   : > { %v1209_v44 = vpop.f32.mrf.mxu1  ;;  %3491 = vst.msk [vmem:[%s4873_s25 + $0x160] sm:$0xf] %vm1565_vm0, %v5396_v11  ;;  %v5406_v43 = vpack.c.bf16 %v1016_v39, %v1016_v39 }
 0x1b3   : > { %3683 = vst.msk [vmem:[%s4873_s25 + $0x360] sm:$0xf] %vm1565_vm0, %v5401_v32  ;;  %v5411_v46 = vpack.c.bf16 %v1209_v44, %v1209_v44  ;;  %v1018_v45 = vpop.f32.mrf.mxu0 }
 0x1b4   : > { %v1211_v60 = vpop.f32.mrf.mxu1  ;;  %2202 = vrot.lane.b32.xlu0 %v5099_v47, %s4336_s9  ;;  %1591 = vst.msk [vmem:[%s4873_s25 + $0x64] sm:$0xf] %vm1565_vm0, %v5406_v43  ;;  %v5420_v61 = vpack.c.bf16 %v1018_v45, %v1018_v45 }
 0x1b5   : > { %1624 = vrot.lane.b32.xlu1 %v5118_v56, %s4336_s9  ;;  %3588 = vst.msk [vmem:[%s4873_s25 + $0x264] sm:$0xf] %vm1565_vm0, %v5411_v46  ;;  %v5425_v0 = vpack.c.bf16 %v1211_v60, %v1211_v60  ;;  %v1022_v7 = vpop.f32.mrf.mxu0 }
 0x1b6   : > { %v1215_v23 = vpop.f32.mrf.mxu1  ;;  %3492 = vst.msk [vmem:[%s4873_s25 + $0x164] sm:$0xf] %vm1565_vm0, %v5420_v61  ;;  %v5433_v47 = vpack.c.bf16 %v1022_v7, %v1022_v7 }
 0x1b7   : > { %3684 = vst.msk [vmem:[%s4873_s25 + $0x364] sm:$0xf] %vm1565_vm0, %v5425_v0  ;;  %v5435_v56 = vpack.c.bf16 %v1215_v23, %v1215_v23  ;;  %v1024_v34 = vpop.f32.mrf.mxu0 }
 0x1b8   : > { %v1217_v41 = vpop.f32.mrf.mxu1  ;;  %1912 = vrot.lane.b32.xlu0 %v5108_v52, %s4336_s9  ;;  %1592 = vst.msk [vmem:[%s4873_s25 + $0x68] sm:$0xf] %vm1565_vm0, %v5433_v47  ;;  %v5444_v50 = vpack.c.bf16 %v1024_v34, %v1024_v34 }
 0x1b9   : > { %2204 = vrot.lane.b32.xlu1 %v5123_v59, %s4336_s9  ;;  %3589 = vst.msk [vmem:[%s4873_s25 + $0x268] sm:$0xf] %vm1565_vm0, %v5435_v56  ;;  %v5449_v39 = vpack.c.bf16 %v1217_v41, %v1217_v41  ;;  %v1026_v44 = vpop.f32.mrf.mxu0 }
 0x1ba   : > { %v1219_v45 = vpop.f32.mrf.mxu1  ;;  %3493 = vst.msk [vmem:[%s4873_s25 + $0x168] sm:$0xf] %vm1565_vm0, %v5444_v50  ;;  %v5454_v52 = vpack.c.bf16 %v1026_v44, %v1026_v44 }
 0x1bb   : > { %3685 = vst.msk [vmem:[%s4873_s25 + $0x368] sm:$0xf] %vm1565_vm0, %v5449_v39  ;;  %v5459_v59 = vpack.c.bf16 %v1219_v45, %v1219_v45  ;;  %v1028_v60 = vpop.f32.mrf.mxu0 }
 0x1bc   : > { %v1221_v7 = vpop.f32.mrf.mxu1  ;;  %2492 = vrot.lane.b32.xlu0 %v5113_v53, %s4336_s9  ;;  %1593 = vst.msk [vmem:[%s4873_s25 + $0x6c] sm:$0xf] %vm1565_vm0, %v5454_v52  ;;  %v5468_v23 = vpack.c.bf16 %v1028_v60, %v1028_v60 }
 0x1bd   : > { %1914 = vrot.lane.b32.xlu1 %v5132_v62, %s4336_s9  ;;  %3590 = vst.msk [vmem:[%s4873_s25 + $0x26c] sm:$0xf] %vm1565_vm0, %v5459_v59  ;;  %v5473_v34 = vpack.c.bf16 %v1221_v7, %v1221_v7  ;;  %v1032_v41 = vpop.f32.mrf.mxu0 }
 0x1be   : > { %6570 = vst [vmem:[#allocation2_spill] sm:$0xff] %v5468_v23  ;;  %v1225_v44 = vpop.f32.mrf.mxu1  ;;  %3494 = vst.msk [vmem:[%s4873_s25 + $0x16c] sm:$0xf] %vm1565_vm0, %v5468_v23  ;;  %v5481_v53 = vpack.c.bf16 %v1032_v41, %v1032_v41 }
 0x1bf   : > { %6571 = vst [vmem:[#allocation3_spill] sm:$0xff] %v5473_v34  ;;  %3686 = vst.msk [vmem:[%s4873_s25 + $0x36c] sm:$0xf] %vm1565_vm0, %v5473_v34  ;;  %v5483_v62 = vpack.c.bf16 %v1225_v44, %v1225_v44  ;;  %v1034_v45 = vpop.f32.mrf.mxu0 }
 0x1c0   : > { %v1227_v60 = vpop.f32.mrf.mxu1  ;;  %1626 = vrot.lane.b32.xlu0 %v5145_v4, %s4336_s9  ;;  %1594 = vst.msk [vmem:[%s4873_s25 + $0x70] sm:$0xf] %vm1565_vm0, %v5481_v53  ;;  %v5492_v7 = vpack.c.bf16 %v1034_v45, %v1034_v45 }
 0x1c1   : > { %6572 = vst [vmem:[#allocation4_spill] sm:$0xff] %v5483_v62  ;;  %2494 = vrot.lane.b32.xlu1 %v5137_v63, %s4336_s9  ;;  %3591 = vst.msk [vmem:[%s4873_s25 + $0x270] sm:$0xf] %vm1565_vm0, %v5483_v62  ;;  %v5497_v41 = vpack.c.bf16 %v1227_v60, %v1227_v60  ;;  %v1036_v44 = vpop.f32.mrf.mxu0 }
 0x1c2   : > { %6573 = vst [vmem:[#allocation5_spill] sm:$0xff] %v5492_v7  ;;  %v1229_v34 = vpop.f32.mrf.mxu1  ;;  %v1599_v23 = vpop.permute.xlu0 %1598  ;;  %3495 = vst.msk [vmem:[%s4873_s25 + $0x170] sm:$0xf] %vm1565_vm0, %v5492_v7  ;;  %v5502_v63 = vpack.c.bf16 %v1036_v44, %v1036_v44 }
 0x1c3   : > { %6574 = vst [vmem:[#allocation6_spill] sm:$0xff] %v5497_v41  ;;  %3687 = vst.msk [vmem:[%s4873_s25 + $0x370] sm:$0xf] %vm1565_vm0, %v5497_v41  ;;  %v5507_v4 = vpack.c.bf16 %v1229_v34, %v1229_v34  ;;  %v1038_v45 = vpop.f32.mrf.mxu0 }
 0x1c4   : > { %3403 = vst.msk [vmem:[%s4873_s25 + $0x80] sm:$0xf] %vm1565_vm0, %v1599_v23  ;;  %v1231_v60 = vpop.f32.mrf.mxu1  ;;  %2206 = vrot.lane.b32.xlu0 %v5147_v5, %s4336_s9  ;;  %1595 = vst.msk [vmem:[%s4873_s25 + $0x74] sm:$0xf] %vm1565_vm0, %v5502_v63  ;;  %v5518_v44 = vpack.c.bf16 %v1038_v45, %v1038_v45 }
 0x1c5   : > { %1628 = vrot.lane.b32.xlu1 %v5166_v10, %s4336_s9  ;;  %3592 = vst.msk [vmem:[%s4873_s25 + $0x274] sm:$0xf] %vm1565_vm0, %v5507_v4  ;;  %v5523_v23 = vpack.c.bf16 %v1231_v60, %v1231_v60  ;;  %v1042_v34 = vpop.f32.mrf.mxu0 }
 0x1c6   : > { %6575 = vst [vmem:[#allocation7_spill] sm:$0xff] %v5518_v44  ;;  %v1235_v41 = vpop.f32.mrf.mxu1  ;;  %v2179_v62 = vpop.permute.xlu0 %2178  ;;  %3496 = vst.msk [vmem:[%s4873_s25 + $0x174] sm:$0xf] %vm1565_vm0, %v5518_v44  ;;  %v5531_v5 = vpack.c.bf16 %v1042_v34, %v1042_v34 }
 0x1c7   : > { %6576 = vst [vmem:[#allocation8_spill] sm:$0xff] %v5523_v23  ;;  %v2181_v7 = vpop.permute.xlu1 %2180  ;;  %3688 = vst.msk [vmem:[%s4873_s25 + $0x374] sm:$0xf] %vm1565_vm0, %v5523_v23  ;;  %v5533_v10 = vpack.c.bf16 %v1235_v41, %v1235_v41  ;;  %v1044_v45 = vpop.f32.mrf.mxu0 }
 0x1c8   : > { %3596 = vst.msk [vmem:[%s4873_s25 + $0x284] sm:$0xf] %vm1565_vm0, %v2181_v7  ;;  %3595 = vst.msk [vmem:[%s4873_s25 + $0x280] sm:$0xf] %vm1565_vm0, %v2179_v62  ;;  %v1237_v60 = vpop.f32.mrf.mxu1  ;;  %1916 = vrot.lane.b32.xlu0 %v5156_v14, %s4336_s9  ;;  %v5546_v41 = vpack.c.bf16 %v1044_v45, %v1044_v45 }
 0x1c9   : > { %2208 = vrot.lane.b32.xlu1 %v5171_v19, %s4336_s9  ;;  %1596 = vst.msk [vmem:[%s4873_s25 + $0x78] sm:$0xf] %vm1565_vm0, %v5531_v5  ;;  %3593 = vst.msk [vmem:[%s4873_s25 + $0x278] sm:$0xf] %vm1565_vm0, %v5533_v10  ;;  %v5551_v62 = vpack.c.bf16 %v1237_v60, %v1237_v60  ;;  %v1046_v7 = vpop.f32.mrf.mxu0 }
 0x1ca   : > { %v1239_v34 = vpop.f32.mrf.mxu1  ;;  %v1889_v23 = vpop.permute.xlu0 %1888  ;;  %3497 = vst.msk [vmem:[%s4873_s25 + $0x178] sm:$0xf] %vm1565_vm0, %v5546_v41  ;;  %v5556_v14 = vpack.c.bf16 %v1046_v7, %v1046_v7 }
 0x1cb   : > { %6577 = vst [vmem:[#allocation9_spill] sm:$0xff] %v5551_v62  ;;  %v1891_v44 = vpop.permute.xlu1 %1890  ;;  %3689 = vst.msk [vmem:[%s4873_s25 + $0x378] sm:$0xf] %vm1565_vm0, %v5551_v62  ;;  %v5561_v19 = vpack.c.bf16 %v1239_v34, %v1239_v34  ;;  %v1048_v45 = vpop.f32.mrf.mxu0 }
 0x1cc   : > { %3499 = vst.msk [vmem:[%s4873_s25 + $0x180] sm:$0xf] %vm1565_vm0, %v1889_v23  ;;  %3500 = vst.msk [vmem:[%s4873_s25 + $0x184] sm:$0xf] %vm1565_vm0, %v1891_v44  ;;  %v1241_v60 = vpop.f32.mrf.mxu1  ;;  %2496 = vrot.lane.b32.xlu0 %v5161_v15, %s4336_s9  ;;  %v5574_v7 = vpack.c.bf16 %v1048_v45, %v1048_v45 }
 0x1cd   : > { %1918 = vrot.lane.b32.xlu1 %v5180_v8, %s4336_s9  ;;  %1597 = vst.msk [vmem:[%s4873_s25 + $0x7c] sm:$0xf] %vm1565_vm0, %v5556_v14  ;;  %3594 = vst.msk [vmem:[%s4873_s25 + $0x27c] sm:$0xf] %vm1565_vm0, %v5561_v19  ;;  %v5579_v34 = vpack.c.bf16 %v1241_v60, %v1241_v60 }
 0x1ce   : > { %6578 = vst [vmem:[#allocation10_spill] sm:$0xff] %v5574_v7  ;;  %v2469_v23 = vpop.permute.xlu0 %2468  ;;  %3498 = vst.msk [vmem:[%s4873_s25 + $0x17c] sm:$0xf] %vm1565_vm0, %v5574_v7  ;;  %v1278_v15 = vpop.f32.mrf.mxu0 }
 0x1cf   : > { %6579 = vst [vmem:[#allocation11_spill] sm:$0xff] %v5579_v34  ;;  %v2471_v44 = vpop.permute.xlu1 %2470  ;;  %3690 = vst.msk [vmem:[%s4873_s25 + $0x37c] sm:$0xf] %vm1565_vm0, %v5579_v34  ;;  %v1358_v8 = vpop.f32.mrf.mxu1  ;;  %v5595_v45 = vpack.c.bf16 %v1278_v15, %v1278_v15 }
 0x1d0   : > { %3691 = vst.msk [vmem:[%s4873_s25 + $0x380] sm:$0xf] %vm1565_vm0, %v2469_v23  ;;  %3692 = vst.msk [vmem:[%s4873_s25 + $0x384] sm:$0xf] %vm1565_vm0, %v2471_v44  ;;  %1630 = vrot.lane.b32.xlu0 %v5193_v13, %s4336_s9  ;;  %v5597_v60 = vpack.c.bf16 %v1358_v8, %v1358_v8  ;;  %v1280_v34 = vpop.f32.mrf.mxu0 }
 0x1d1   : > { %2498 = vrot.lane.b32.xlu1 %v5185_v17, %s4336_s9  ;;  %v1360_v23 = vpop.f32.mrf.mxu1  ;;  %3755 = vst.msk [vmem:[%s4873_s25 + $0x400] sm:$0xf] %vm1565_vm0, %v5595_v45  ;;  %v5602_v44 = vpack.c.bf16 %v1280_v34, %v1280_v34 }
 0x1d2   : > { %6580 = vst [vmem:[#allocation12_spill] sm:$0xff] %v5597_v60  ;;  %v1601_v7 = vpop.permute.xlu0 %1600  ;;  %3771 = vst.msk [vmem:[%s4873_s25 + $0x440] sm:$0xf] %vm1565_vm0, %v5597_v60  ;;  %v5607_v17 = vpack.c.bf16 %v1360_v23, %v1360_v23  ;;  %v1282_v13 = vpop.f32.mrf.mxu0 }
 0x1d3   : > { %v1603_v62 = vpop.permute.xlu1 %1602  ;;  %3404 = vst.msk [vmem:[%s4873_s25 + $0x84] sm:$0xf] %vm1565_vm0, %v1601_v7  ;;  %v1362_v15 = vpop.f32.mrf.mxu1  ;;  %3851 = vst.msk [vmem:[%s4873_s25 + $0x500] sm:$0xf] %vm1565_vm0, %v5602_v44  ;;  %v5620_v34 = vpack.c.bf16 %v1282_v13, %v1282_v13 }
 0x1d4   : > { %3405 = vst.msk [vmem:[%s4873_s25 + $0x88] sm:$0xf] %vm1565_vm0, %v1603_v62  ;;  %2210 = vrot.lane.b32.xlu0 %v5195_v26, %s4336_s9  ;;  %3867 = vst.msk [vmem:[%s4873_s25 + $0x540] sm:$0xf] %vm1565_vm0, %v5607_v17  ;;  %v5625_v62 = vpack.c.bf16 %v1362_v15, %v1362_v15  ;;  %v1284_v7 = vpop.f32.mrf.mxu0 }
 0x1d5   : > { %1632 = vrot.lane.b32.xlu1 %v5214_v27, %s4336_s9  ;;  %v1364_v8 = vpop.f32.mrf.mxu1  ;;  %3756 = vst.msk [vmem:[%s4873_s25 + $0x404] sm:$0xf] %vm1565_vm0, %v5620_v34  ;;  %v5630_v26 = vpack.c.bf16 %v1284_v7, %v1284_v7 }
 0x1d6   : > { %v2183_v23 = vpop.permute.xlu0 %2182  ;;  %3772 = vst.msk [vmem:[%s4873_s25 + $0x444] sm:$0xf] %vm1565_vm0, %v5625_v62  ;;  %v5635_v27 = vpack.c.bf16 %v1364_v8, %v1364_v8  ;;  %v1288_v13 = vpop.f32.mrf.mxu0 }
 0x1d7   : > { %v1605_v60 = vpop.permute.xlu1 %1604  ;;  %3597 = vst.msk [vmem:[%s4873_s25 + $0x288] sm:$0xf] %vm1565_vm0, %v2183_v23  ;;  %3852 = vst.msk [vmem:[%s4873_s25 + $0x504] sm:$0xf] %vm1565_vm0, %v5630_v26  ;;  %v5651_v15 = vpack.c.bf16 %v1288_v13, %v1288_v13 }
 0x1d8   : > { %6581 = vst [vmem:[#allocation13_spill] sm:$0xff] %v5635_v27  ;;  %3406 = vst.msk [vmem:[%s4873_s25 + $0x8c] sm:$0xf] %vm1565_vm0, %v1605_v60  ;;  %1920 = vrot.lane.b32.xlu0 %v5204_v57, %s4336_s9  ;;  %v1290_v7 = vpop.f32.mrf.mxu0  ;;  %v1368_v60 = vpop.f32.mrf.mxu1 }
 0x1d9   : > { %2212 = vrot.lane.b32.xlu1 %v5219_v9, %s4336_s9  ;;  %3868 = vst.msk [vmem:[%s4873_s25 + $0x544] sm:$0xf] %vm1565_vm0, %v5635_v27  ;;  %6582 = vst [vmem:[#allocation14_spill] sm:$0xff] %v5651_v15  ;;  %v5656_v57 = vpack.c.bf16 %v1290_v7, %v1290_v7  ;;  %v5671_v7 = vpack.c.bf16 %v1368_v60, %v1368_v60 }
 0x1da   : > { %v1893_v8 = vpop.permute.xlu0 %1892  ;;  %3757 = vst.msk [vmem:[%s4873_s25 + $0x408] sm:$0xf] %vm1565_vm0, %v5651_v15  ;;  %v1292_v9 = vpop.f32.mrf.mxu0 }
 0x1db   : > { %v2185_v23 = vpop.permute.xlu1 %2184  ;;  %3501 = vst.msk [vmem:[%s4873_s25 + $0x188] sm:$0xf] %vm1565_vm0, %v1893_v8  ;;  %3853 = vst.msk [vmem:[%s4873_s25 + $0x508] sm:$0xf] %vm1565_vm0, %v5656_v57  ;;  %v5669_v13 = vpack.c.bf16 %v1292_v9, %v1292_v9 }
 0x1dc   : > { %3598 = vst.msk [vmem:[%s4873_s25 + $0x28c] sm:$0xf] %vm1565_vm0, %v2185_v23  ;;  %2500 = vrot.lane.b32.xlu0 %v5209_v2, %s4336_s9  ;;  %v1294_v8 = vpop.f32.mrf.mxu0  ;;  %v1370_v23 = vpop.f32.mrf.mxu1  ;;  %3773 = vst.msk [vmem:[%s4873_s25 + $0x448] sm:$0xf] %vm1565_vm0, %v5671_v7 }
 0x1dd   : > { %1922 = vrot.lane.b32.xlu1 %v5228_v35, %s4336_s9  ;;  %3758 = vst.msk [vmem:[%s4873_s25 + $0x40c] sm:$0xf] %vm1565_vm0, %v5669_v13  ;;  %v5679_v2 = vpack.c.bf16 %v1294_v8, %v1294_v8  ;;  %v5681_v35 = vpack.c.bf16 %v1370_v23, %v1370_v23 }
 0x1de   : > { %v2473_v15 = vpop.permute.xlu0 %2472  ;;  %v1372_v9 = vpop.f32.mrf.mxu1 }
 0x1df   : > { %v1895_v27 = vpop.permute.xlu1 %1894  ;;  %3693 = vst.msk [vmem:[%s4873_s25 + $0x388] sm:$0xf] %vm1565_vm0, %v2473_v15  ;;  %3854 = vst.msk [vmem:[%s4873_s25 + $0x50c] sm:$0xf] %vm1565_vm0, %v5679_v2  ;;  %v5697_v60 = vpack.c.bf16 %v1372_v9, %v1372_v9  ;;  %v1298_v9 = vpop.f32.mrf.mxu0 }
 0x1e0   : > { %3502 = vst.msk [vmem:[%s4873_s25 + $0x18c] sm:$0xf] %vm1565_vm0, %v1895_v27  ;;  %1634 = vrot.lane.b32.xlu0 %v5241_v16, %s4336_s9  ;;  %3869 = vst.msk [vmem:[%s4873_s25 + $0x548] sm:$0xf] %vm1565_vm0, %v5681_v35  ;;  %v1374_v15 = vpop.f32.mrf.mxu1 }
 0x1e1   : > { %2502 = vrot.lane.b32.xlu1 %v5233_v38, %s4336_s9  ;;  %3774 = vst.msk [vmem:[%s4873_s25 + $0x44c] sm:$0xf] %vm1565_vm0, %v5697_v60  ;;  %v5702_v38 = vpack.c.bf16 %v1374_v15, %v1374_v15 }
 0x1e2   : > { %v1607_v8 = vpop.permute.xlu0 %1606 }
 0x1e3   : > { %v2475_v27 = vpop.permute.xlu1 %2474  ;;  %3407 = vst.msk [vmem:[%s4873_s25 + $0x90] sm:$0xf] %vm1565_vm0, %v1607_v8  ;;  %3870 = vst.msk [vmem:[%s4873_s25 + $0x54c] sm:$0xf] %vm1565_vm0, %v5702_v38 }
 0x1e4   : > { %3694 = vst.msk [vmem:[%s4873_s25 + $0x38c] sm:$0xf] %vm1565_vm0, %v2475_v27  ;;  %2214 = vrot.lane.b32.xlu0 %v5243_v42, %s4336_s9  ;;  %v5723_v42 = vpack.c.bf16 %v1298_v9, %v1298_v9 }
 0x1e5   : > { %1636 = vrot.lane.b32.xlu1 %v5262_v25, %s4336_s9  ;;  %v1300_v25 = vpop.f32.mrf.mxu0 }
 0x1e6   : > { %v2187_v16 = vpop.permute.xlu0 %2186  ;;  %3759 = vst.msk [vmem:[%s4873_s25 + $0x410] sm:$0xf] %vm1565_vm0, %v5723_v42  ;;  %v5728_v8 = vpack.c.bf16 %v1300_v25, %v1300_v25 }
 0x1e7   : > { %v1609_v23 = vpop.permute.xlu1 %1608  ;;  %3599 = vst.msk [vmem:[%s4873_s25 + $0x290] sm:$0xf] %vm1565_vm0, %v2187_v16 }
 0x1e8   : > { %3408 = vst.msk [vmem:[%s4873_s25 + $0x94] sm:$0xf] %vm1565_vm0, %v1609_v23  ;;  %1924 = vrot.lane.b32.xlu0 %v5252_v51, %s4336_s9  ;;  %v1302_v51 = vpop.f32.mrf.mxu0  ;;  %3855 = vst.msk [vmem:[%s4873_s25 + $0x510] sm:$0xf] %vm1565_vm0, %v5728_v8 }
 0x1e9   : > { %2216 = vrot.lane.b32.xlu1 %v5267_v49, %s4336_s9  ;;  %v1378_v49 = vpop.f32.mrf.mxu1  ;;  %v5741_v16 = vpack.c.bf16 %v1302_v51, %v1302_v51 }
 0x1ea   : > { %v1897_v15 = vpop.permute.xlu0 %1896  ;;  %v5743_v23 = vpack.c.bf16 %v1378_v49, %v1378_v49  ;;  %v1304_v9 = vpop.f32.mrf.mxu0 }
 0x1eb   : > { %v2189_v27 = vpop.permute.xlu1 %2188  ;;  %3503 = vst.msk [vmem:[%s4873_s25 + $0x190] sm:$0xf] %vm1565_vm0, %v1897_v15  ;;  %v1380_v25 = vpop.f32.mrf.mxu1  ;;  %3760 = vst.msk [vmem:[%s4873_s25 + $0x414] sm:$0xf] %vm1565_vm0, %v5741_v16 }
 0x1ec   : > { %3600 = vst.msk [vmem:[%s4873_s25 + $0x294] sm:$0xf] %vm1565_vm0, %v2189_v27  ;;  %2504 = vrot.lane.b32.xlu0 %v5257_v54, %s4336_s9  ;;  %3775 = vst.msk [vmem:[%s4873_s25 + $0x450] sm:$0xf] %vm1565_vm0, %v5743_v23  ;;  %v5751_v54 = vpack.c.bf16 %v1304_v9, %v1304_v9 }
 0x1ed   : > { %1926 = vrot.lane.b32.xlu1 %v5276_v3, %s4336_s9  ;;  %v5753_v3 = vpack.c.bf16 %v1380_v25, %v1380_v25  ;;  %v1382_v51 = vpop.f32.mrf.mxu1 }
 0x1ee   : > { %v2477_v15 = vpop.permute.xlu0 %2476  ;;  %3856 = vst.msk [vmem:[%s4873_s25 + $0x514] sm:$0xf] %vm1565_vm0, %v5751_v54  ;;  %v5769_v49 = vpack.c.bf16 %v1382_v51, %v1382_v51  ;;  %v1308_v51 = vpop.f32.mrf.mxu0 }
 0x1ef   : > { %v1899_v27 = vpop.permute.xlu1 %1898  ;;  %3695 = vst.msk [vmem:[%s4873_s25 + $0x390] sm:$0xf] %vm1565_vm0, %v2477_v15  ;;  %3871 = vst.msk [vmem:[%s4873_s25 + $0x550] sm:$0xf] %vm1565_vm0, %v5753_v3  ;;  %v1384_v9 = vpop.f32.mrf.mxu1 }
 0x1f0   : > { %3504 = vst.msk [vmem:[%s4873_s25 + $0x194] sm:$0xf] %vm1565_vm0, %v1899_v27  ;;  %1638 = vrot.lane.b32.xlu0 %v5289_v33, %s4336_s9  ;;  %3776 = vst.msk [vmem:[%s4873_s25 + $0x454] sm:$0xf] %vm1565_vm0, %v5769_v49 }
 0x1f1   : > { %2506 = vrot.lane.b32.xlu1 %v5281_v6, %s4336_s9  ;;  %v5774_v6 = vpack.c.bf16 %v1384_v9, %v1384_v9 }
 0x1f2   : > { %v1611_v15 = vpop.permute.xlu0 %1610 }
 0x1f3   : > { %v2479_v25 = vpop.permute.xlu1 %2478  ;;  %3409 = vst.msk [vmem:[%s4873_s25 + $0x98] sm:$0xf] %vm1565_vm0, %v1611_v15  ;;  %3872 = vst.msk [vmem:[%s4873_s25 + $0x554] sm:$0xf] %vm1565_vm0, %v5774_v6 }
 0x1f4   : > { %3696 = vst.msk [vmem:[%s4873_s25 + $0x394] sm:$0xf] %vm1565_vm0, %v2479_v25  ;;  %2218 = vrot.lane.b32.xlu0 %v5291_v58, %s4336_s9  ;;  %v5795_v58 = vpack.c.bf16 %v1308_v51, %v1308_v51 }
 0x1f5   : > { %1640 = vrot.lane.b32.xlu1 %v5310_v1, %s4336_s9  ;;  %v1310_v1 = vpop.f32.mrf.mxu0 }
 0x1f6   : > { %v2191_v33 = vpop.permute.xlu0 %2190  ;;  %3761 = vst.msk [vmem:[%s4873_s25 + $0x418] sm:$0xf] %vm1565_vm0, %v5795_v58  ;;  %v5800_v15 = vpack.c.bf16 %v1310_v1, %v1310_v1 }
 0x1f7   : > { %v1613_v27 = vpop.permute.xlu1 %1612  ;;  %3601 = vst.msk [vmem:[%s4873_s25 + $0x298] sm:$0xf] %vm1565_vm0, %v2191_v33 }
 0x1f8   : > { %3410 = vst.msk [vmem:[%s4873_s25 + $0x9c] sm:$0xf] %vm1565_vm0, %v1613_v27  ;;  %1928 = vrot.lane.b32.xlu0 %v5300_v28, %s4336_s9  ;;  %v1312_v28 = vpop.f32.mrf.mxu0  ;;  %3857 = vst.msk [vmem:[%s4873_s25 + $0x518] sm:$0xf] %vm1565_vm0, %v5800_v15 }
 0x1f9   : > { %2220 = vrot.lane.b32.xlu1 %v5315_v12, %s4336_s9  ;;  %v1388_v12 = vpop.f32.mrf.mxu1  ;;  %v5813_v33 = vpack.c.bf16 %v1312_v28, %v1312_v28 }
 0x1fa   : > { %v1901_v9 = vpop.permute.xlu0 %1900  ;;  %v5815_v27 = vpack.c.bf16 %v1388_v12, %v1388_v12  ;;  %v1314_v51 = vpop.f32.mrf.mxu0 }
 0x1fb   : > { %v2193_v25 = vpop.permute.xlu1 %2192  ;;  %3505 = vst.msk [vmem:[%s4873_s25 + $0x198] sm:$0xf] %vm1565_vm0, %v1901_v9  ;;  %v1390_v1 = vpop.f32.mrf.mxu1  ;;  %3762 = vst.msk [vmem:[%s4873_s25 + $0x41c] sm:$0xf] %vm1565_vm0, %v5813_v33 }
 0x1fc   : > { %3602 = vst.msk [vmem:[%s4873_s25 + $0x29c] sm:$0xf] %vm1565_vm0, %v2193_v25  ;;  %2508 = vrot.lane.b32.xlu0 %v5305_v24, %s4336_s9  ;;  %3777 = vst.msk [vmem:[%s4873_s25 + $0x458] sm:$0xf] %vm1565_vm0, %v5815_v27  ;;  %v5823_v24 = vpack.c.bf16 %v1314_v51, %v1314_v51 }
 0x1fd   : > { %1930 = vrot.lane.b32.xlu1 %v5324_v22, %s4336_s9  ;;  %v5825_v22 = vpack.c.bf16 %v1390_v1, %v1390_v1  ;;  %v1392_v28 = vpop.f32.mrf.mxu1 }
 0x1fe   : > { %v2481_v9 = vpop.permute.xlu0 %2480  ;;  %3858 = vst.msk [vmem:[%s4873_s25 + $0x51c] sm:$0xf] %vm1565_vm0, %v5823_v24  ;;  %v5841_v12 = vpack.c.bf16 %v1392_v28, %v1392_v28  ;;  %v1318_v28 = vpop.f32.mrf.mxu0 }
 0x1ff   : > { %v1903_v25 = vpop.permute.xlu1 %1902  ;;  %3697 = vst.msk [vmem:[%s4873_s25 + $0x398] sm:$0xf] %vm1565_vm0, %v2481_v9  ;;  %3873 = vst.msk [vmem:[%s4873_s25 + $0x558] sm:$0xf] %vm1565_vm0, %v5825_v22  ;;  %v1394_v51 = vpop.f32.mrf.mxu1 }
 0x200   : > { %3506 = vst.msk [vmem:[%s4873_s25 + $0x19c] sm:$0xf] %vm1565_vm0, %v1903_v25  ;;  %1642 = vrot.lane.b32.xlu0 %v5337_v21, %s4336_s9  ;;  %3778 = vst.msk [vmem:[%s4873_s25 + $0x45c] sm:$0xf] %vm1565_vm0, %v5841_v12 }
 0x201   : > { %2510 = vrot.lane.b32.xlu1 %v5329_v29, %s4336_s9  ;;  %v5846_v29 = vpack.c.bf16 %v1394_v51, %v1394_v51 }
 0x202   : > { %v1615_v9 = vpop.permute.xlu0 %1614 }
 0x203   : > { %v2483_v1 = vpop.permute.xlu1 %2482  ;;  %3411 = vst.msk [vmem:[%s4873_s25 + $0xa0] sm:$0xf] %vm1565_vm0, %v1615_v9  ;;  %3874 = vst.msk [vmem:[%s4873_s25 + $0x55c] sm:$0xf] %vm1565_vm0, %v5846_v29 }
 0x204   : > { %3698 = vst.msk [vmem:[%s4873_s25 + $0x39c] sm:$0xf] %vm1565_vm0, %v2483_v1  ;;  %2222 = vrot.lane.b32.xlu0 %v5339_v36, %s4336_s9  ;;  %v5867_v36 = vpack.c.bf16 %v1318_v28, %v1318_v28 }
 0x205   : > { %1644 = vrot.lane.b32.xlu1 %v5358_v30, %s4336_s9  ;;  %v1320_v30 = vpop.f32.mrf.mxu0 }
 0x206   : > { %v2195_v21 = vpop.permute.xlu0 %2194  ;;  %3763 = vst.msk [vmem:[%s4873_s25 + $0x420] sm:$0xf] %vm1565_vm0, %v5867_v36  ;;  %v5872_v9 = vpack.c.bf16 %v1320_v30, %v1320_v30 }
 0x207   : > { %v1617_v25 = vpop.permute.xlu1 %1616  ;;  %3603 = vst.msk [vmem:[%s4873_s25 + $0x2a0] sm:$0xf] %vm1565_vm0, %v2195_v21 }
 0x208   : > { %3412 = vst.msk [vmem:[%s4873_s25 + $0xa4] sm:$0xf] %vm1565_vm0, %v1617_v25  ;;  %1932 = vrot.lane.b32.xlu0 %v5348_v48, %s4336_s9  ;;  %v1322_v48 = vpop.f32.mrf.mxu0  ;;  %3859 = vst.msk [vmem:[%s4873_s25 + $0x520] sm:$0xf] %vm1565_vm0, %v5872_v9 }
 0x209   : > { %2224 = vrot.lane.b32.xlu1 %v5363_v37, %s4336_s9  ;;  %v1398_v37 = vpop.f32.mrf.mxu1  ;;  %v5885_v21 = vpack.c.bf16 %v1322_v48, %v1322_v48 }
 0x20a   : > { %v1905_v51 = vpop.permute.xlu0 %1904  ;;  %v5887_v25 = vpack.c.bf16 %v1398_v37, %v1398_v37  ;;  %v1324_v28 = vpop.f32.mrf.mxu0 }
 0x20b   : > { %v2197_v1 = vpop.permute.xlu1 %2196  ;;  %3507 = vst.msk [vmem:[%s4873_s25 + $0x1a0] sm:$0xf] %vm1565_vm0, %v1905_v51  ;;  %v1400_v30 = vpop.f32.mrf.mxu1  ;;  %3764 = vst.msk [vmem:[%s4873_s25 + $0x424] sm:$0xf] %vm1565_vm0, %v5885_v21 }
 0x20c   : > { %3604 = vst.msk [vmem:[%s4873_s25 + $0x2a4] sm:$0xf] %vm1565_vm0, %v2197_v1  ;;  %2512 = vrot.lane.b32.xlu0 %v5353_v55, %s4336_s9  ;;  %3779 = vst.msk [vmem:[%s4873_s25 + $0x460] sm:$0xf] %vm1565_vm0, %v5887_v25  ;;  %v5895_v55 = vpack.c.bf16 %v1324_v28, %v1324_v28 }
 0x20d   : > { %1934 = vrot.lane.b32.xlu1 %v5372_v18, %s4336_s9  ;;  %v5897_v18 = vpack.c.bf16 %v1400_v30, %v1400_v30  ;;  %v1402_v48 = vpop.f32.mrf.mxu1 }
 0x20e   : > { %v2485_v51 = vpop.permute.xlu0 %2484  ;;  %3860 = vst.msk [vmem:[%s4873_s25 + $0x524] sm:$0xf] %vm1565_vm0, %v5895_v55  ;;  %v5913_v37 = vpack.c.bf16 %v1402_v48, %v1402_v48  ;;  %v1328_v48 = vpop.f32.mrf.mxu0 }
 0x20f   : > { %v1907_v1 = vpop.permute.xlu1 %1906  ;;  %3699 = vst.msk [vmem:[%s4873_s25 + $0x3a0] sm:$0xf] %vm1565_vm0, %v2485_v51  ;;  %3875 = vst.msk [vmem:[%s4873_s25 + $0x560] sm:$0xf] %vm1565_vm0, %v5897_v18  ;;  %v1404_v28 = vpop.f32.mrf.mxu1 }
 0x210   : > { %3508 = vst.msk [vmem:[%s4873_s25 + $0x1a4] sm:$0xf] %vm1565_vm0, %v1907_v1  ;;  %1646 = vrot.lane.b32.xlu0 %v5385_v31, %s4336_s9  ;;  %3780 = vst.msk [vmem:[%s4873_s25 + $0x464] sm:$0xf] %vm1565_vm0, %v5913_v37 }
 0x211   : > { %2514 = vrot.lane.b32.xlu1 %v5377_v20, %s4336_s9  ;;  %v5918_v20 = vpack.c.bf16 %v1404_v28, %v1404_v28 }
 0x212   : > { %v1619_v51 = vpop.permute.xlu0 %1618 }
 0x213   : > { %v2487_v30 = vpop.permute.xlu1 %2486  ;;  %3413 = vst.msk [vmem:[%s4873_s25 + $0xa8] sm:$0xf] %vm1565_vm0, %v1619_v51  ;;  %3876 = vst.msk [vmem:[%s4873_s25 + $0x564] sm:$0xf] %vm1565_vm0, %v5918_v20 }
 0x214   : > { %3700 = vst.msk [vmem:[%s4873_s25 + $0x3a4] sm:$0xf] %vm1565_vm0, %v2487_v30  ;;  %2226 = vrot.lane.b32.xlu0 %v5387_v40, %s4336_s9  ;;  %v5939_v40 = vpack.c.bf16 %v1328_v48, %v1328_v48 }
 0x215   : > { %1648 = vrot.lane.b32.xlu1 %v5406_v43, %s4336_s9  ;;  %v1330_v43 = vpop.f32.mrf.mxu0 }
 0x216   : > { %v2199_v31 = vpop.permute.xlu0 %2198  ;;  %3765 = vst.msk [vmem:[%s4873_s25 + $0x428] sm:$0xf] %vm1565_vm0, %v5939_v40  ;;  %v5944_v51 = vpack.c.bf16 %v1330_v43, %v1330_v43 }
 0x217   : > { %v1621_v1 = vpop.permute.xlu1 %1620  ;;  %3605 = vst.msk [vmem:[%s4873_s25 + $0x2a8] sm:$0xf] %vm1565_vm0, %v2199_v31 }
 0x218   : > { %3414 = vst.msk [vmem:[%s4873_s25 + $0xac] sm:$0xf] %vm1565_vm0, %v1621_v1  ;;  %1936 = vrot.lane.b32.xlu0 %v5396_v11, %s4336_s9  ;;  %v1332_v11 = vpop.f32.mrf.mxu0  ;;  %3861 = vst.msk [vmem:[%s4873_s25 + $0x528] sm:$0xf] %vm1565_vm0, %v5944_v51 }
 0x219   : > { %2228 = vrot.lane.b32.xlu1 %v5411_v46, %s4336_s9  ;;  %v1408_v46 = vpop.f32.mrf.mxu1  ;;  %v5957_v31 = vpack.c.bf16 %v1332_v11, %v1332_v11 }
 0x21a   : > { %v1909_v28 = vpop.permute.xlu0 %1908  ;;  %v5959_v1 = vpack.c.bf16 %v1408_v46, %v1408_v46  ;;  %v1334_v48 = vpop.f32.mrf.mxu0 }
 0x21b   : > { %v2201_v30 = vpop.permute.xlu1 %2200  ;;  %3509 = vst.msk [vmem:[%s4873_s25 + $0x1a8] sm:$0xf] %vm1565_vm0, %v1909_v28  ;;  %v1410_v43 = vpop.f32.mrf.mxu1  ;;  %3766 = vst.msk [vmem:[%s4873_s25 + $0x42c] sm:$0xf] %vm1565_vm0, %v5957_v31 }
 0x21c   : > { %3606 = vst.msk [vmem:[%s4873_s25 + $0x2ac] sm:$0xf] %vm1565_vm0, %v2201_v30  ;;  %2516 = vrot.lane.b32.xlu0 %v5401_v32, %s4336_s9  ;;  %3781 = vst.msk [vmem:[%s4873_s25 + $0x468] sm:$0xf] %vm1565_vm0, %v5959_v1  ;;  %v5967_v32 = vpack.c.bf16 %v1334_v48, %v1334_v48 }
 0x21d   : > { %1938 = vrot.lane.b32.xlu1 %v5420_v61, %s4336_s9  ;;  %v5969_v61 = vpack.c.bf16 %v1410_v43, %v1410_v43  ;;  %v1412_v11 = vpop.f32.mrf.mxu1 }
 0x21e   : > { %v2489_v28 = vpop.permute.xlu0 %2488  ;;  %3862 = vst.msk [vmem:[%s4873_s25 + $0x52c] sm:$0xf] %vm1565_vm0, %v5967_v32  ;;  %v5985_v46 = vpack.c.bf16 %v1412_v11, %v1412_v11  ;;  %v1338_v11 = vpop.f32.mrf.mxu0 }
 0x21f   : > { %v1911_v30 = vpop.permute.xlu1 %1910  ;;  %3701 = vst.msk [vmem:[%s4873_s25 + $0x3a8] sm:$0xf] %vm1565_vm0, %v2489_v28  ;;  %3877 = vst.msk [vmem:[%s4873_s25 + $0x568] sm:$0xf] %vm1565_vm0, %v5969_v61  ;;  %v1414_v48 = vpop.f32.mrf.mxu1 }
 0x220   : > { %3510 = vst.msk [vmem:[%s4873_s25 + $0x1ac] sm:$0xf] %vm1565_vm0, %v1911_v30  ;;  %1650 = vrot.lane.b32.xlu0 %v5433_v47, %s4336_s9  ;;  %3782 = vst.msk [vmem:[%s4873_s25 + $0x46c] sm:$0xf] %vm1565_vm0, %v5985_v46 }
 0x221   : > { %2518 = vrot.lane.b32.xlu1 %v5425_v0, %s4336_s9  ;;  %v5990_v0 = vpack.c.bf16 %v1414_v48, %v1414_v48 }
 0x222   : > { %v1623_v28 = vpop.permute.xlu0 %1622 }
 0x223   : > { %v2491_v43 = vpop.permute.xlu1 %2490  ;;  %3415 = vst.msk [vmem:[%s4873_s25 + $0xb0] sm:$0xf] %vm1565_vm0, %v1623_v28  ;;  %3878 = vst.msk [vmem:[%s4873_s25 + $0x56c] sm:$0xf] %vm1565_vm0, %v5990_v0 }
 0x224   : > { %3702 = vst.msk [vmem:[%s4873_s25 + $0x3ac] sm:$0xf] %vm1565_vm0, %v2491_v43  ;;  %2230 = vrot.lane.b32.xlu0 %v5435_v56, %s4336_s9  ;;  %v6011_v56 = vpack.c.bf16 %v1338_v11, %v1338_v11 }
 0x225   : > { %1652 = vrot.lane.b32.xlu1 %v5454_v52, %s4336_s9  ;;  %v1340_v52 = vpop.f32.mrf.mxu0 }
 0x226   : > { %v2203_v47 = vpop.permute.xlu0 %2202  ;;  %6583 = vst [vmem:[#allocation15_spill] sm:$0xff] %v6011_v56  ;;  %3767 = vst.msk [vmem:[%s4873_s25 + $0x430] sm:$0xf] %vm1565_vm0, %v6011_v56  ;;  %v6016_v28 = vpack.c.bf16 %v1340_v52, %v1340_v52 }
 0x227   : > { %v1625_v30 = vpop.permute.xlu1 %1624  ;;  %3607 = vst.msk [vmem:[%s4873_s25 + $0x2b0] sm:$0xf] %vm1565_vm0, %v2203_v47  ;;  %v6584_v47 = vld [vmem:[#allocation2_spill] sm:$0xff] }
 0x228   : > { %3416 = vst.msk [vmem:[%s4873_s25 + $0xb4] sm:$0xf] %vm1565_vm0, %v1625_v30  ;;  %1940 = vrot.lane.b32.xlu0 %v5444_v50, %s4336_s9  ;;  %v1342_v50 = vpop.f32.mrf.mxu0  ;;  %3863 = vst.msk [vmem:[%s4873_s25 + $0x530] sm:$0xf] %vm1565_vm0, %v6016_v28 }
 0x229   : > { %2232 = vrot.lane.b32.xlu1 %v5459_v59, %s4336_s9  ;;  %v1418_v59 = vpop.f32.mrf.mxu1  ;;  %v6029_v30 = vpack.c.bf16 %v1342_v50, %v1342_v50 }
 0x22a   : > { %v1913_v48 = vpop.permute.xlu0 %1912  ;;  %v6031_v11 = vpack.c.bf16 %v1418_v59, %v1418_v59  ;;  %v1344_v52 = vpop.f32.mrf.mxu0 }
 0x22b   : > { %v2205_v43 = vpop.permute.xlu1 %2204  ;;  %3511 = vst.msk [vmem:[%s4873_s25 + $0x1b0] sm:$0xf] %vm1565_vm0, %v1913_v48  ;;  %v1420_v48 = vpop.f32.mrf.mxu1  ;;  %3768 = vst.msk [vmem:[%s4873_s25 + $0x434] sm:$0xf] %vm1565_vm0, %v6029_v30 }
 0x22c   : > { %3608 = vst.msk [vmem:[%s4873_s25 + $0x2b4] sm:$0xf] %vm1565_vm0, %v2205_v43  ;;  %2520 = vrot.lane.b32.xlu0 %v5449_v39, %s4336_s9  ;;  %3783 = vst.msk [vmem:[%s4873_s25 + $0x470] sm:$0xf] %vm1565_vm0, %v6031_v11  ;;  %v6039_v39 = vpack.c.bf16 %v1344_v52, %v1344_v52  ;;  %v6041_v50 = vpack.c.bf16 %v1420_v48, %v1420_v48 }
 0x22d   : > { %1942 = vrot.lane.b32.xlu1 %v6584_v47, %s4336_s9  ;;  %v1422_v59 = vpop.f32.mrf.mxu1  ;;  %v6587_v47 = vld [vmem:[#allocation3_spill] sm:$0xff] }
 0x22e   : > { %v2493_v43 = vpop.permute.xlu0 %2492  ;;  %6585 = vst [vmem:[#allocation2_spill] sm:$0xff] %v6039_v39  ;;  %6586 = vst [vmem:[#allocation16_spill] sm:$0xff] %v6041_v50  ;;  %v6057_v52 = vpack.c.bf16 %v1422_v59, %v1422_v59 }
 0x22f   : > { %v1915_v56 = vpop.permute.xlu1 %1914  ;;  %3703 = vst.msk [vmem:[%s4873_s25 + $0x3b0] sm:$0xf] %vm1565_vm0, %v2493_v43  ;;  %3864 = vst.msk [vmem:[%s4873_s25 + $0x534] sm:$0xf] %vm1565_vm0, %v6039_v39  ;;  %v1424_v48 = vpop.f32.mrf.mxu1 }
 0x230   : > { %3512 = vst.msk [vmem:[%s4873_s25 + $0x1b4] sm:$0xf] %vm1565_vm0, %v1915_v56  ;;  %1654 = vrot.lane.b32.xlu0 %v5481_v53, %s4336_s9  ;;  %3879 = vst.msk [vmem:[%s4873_s25 + $0x570] sm:$0xf] %vm1565_vm0, %v6041_v50  ;;  %v6590_v53 = vld [vmem:[#allocation4_spill] sm:$0xff] }
 0x231   : > { %2522 = vrot.lane.b32.xlu1 %v6587_v47, %s4336_s9  ;;  %6588 = vst [vmem:[#allocation3_spill] sm:$0xff] %v6057_v52  ;;  %3784 = vst.msk [vmem:[%s4873_s25 + $0x474] sm:$0xf] %vm1565_vm0, %v6057_v52  ;;  %v6062_v47 = vpack.c.bf16 %v1424_v48, %v1424_v48  ;;  %v1348_v48 = vpop.f32.mrf.mxu0 }
 0x232   : > { %v1627_v43 = vpop.permute.xlu0 %1626 }
 0x233   : > { %v2495_v56 = vpop.permute.xlu1 %2494  ;;  %6589 = vst [vmem:[#allocation17_spill] sm:$0xff] %v6062_v47  ;;  %3417 = vst.msk [vmem:[%s4873_s25 + $0xb8] sm:$0xf] %vm1565_vm0, %v1627_v43  ;;  %v6083_v43 = vpack.c.bf16 %v1348_v48, %v1348_v48  ;;  %v6593_v48 = vld [vmem:[#allocation6_spill] sm:$0xff] }
 0x234   : > { %3704 = vst.msk [vmem:[%s4873_s25 + $0x3b4] sm:$0xf] %vm1565_vm0, %v2495_v56  ;;  %2234 = vrot.lane.b32.xlu0 %v6590_v53, %s4336_s9  ;;  %3880 = vst.msk [vmem:[%s4873_s25 + $0x574] sm:$0xf] %vm1565_vm0, %v6062_v47  ;;  %v6591_v56 = vld [vmem:[#allocation5_spill] sm:$0xff] }
 0x235   : > { %1656 = vrot.lane.b32.xlu1 %v5502_v63, %s4336_s9  ;;  %6592 = vst [vmem:[#allocation4_spill] sm:$0xff] %v6083_v43  ;;  %v1350_v63 = vpop.f32.mrf.mxu0  ;;  %3769 = vst.msk [vmem:[%s4873_s25 + $0x438] sm:$0xf] %vm1565_vm0, %v6083_v43 }
 0x236   : > { %v2207_v59 = vpop.permute.xlu0 %2206 }
 0x237   : > { %v1629_v39 = vpop.permute.xlu1 %1628  ;;  %3609 = vst.msk [vmem:[%s4873_s25 + $0x2b8] sm:$0xf] %vm1565_vm0, %v2207_v59  ;;  %v6088_v59 = vpack.c.bf16 %v1350_v63, %v1350_v63 }
 0x238   : > { %3418 = vst.msk [vmem:[%s4873_s25 + $0xbc] sm:$0xf] %vm1565_vm0, %v1629_v39  ;;  %1944 = vrot.lane.b32.xlu0 %v6591_v56, %s4336_s9  ;;  %v1352_v39 = vpop.f32.mrf.mxu0  ;;  %v6594_v56 = vld [vmem:[#allocation7_spill] sm:$0xff] }
 0x239   : > { %2236 = vrot.lane.b32.xlu1 %v5507_v4, %s4336_s9  ;;  %v1428_v4 = vpop.f32.mrf.mxu1  ;;  %3865 = vst.msk [vmem:[%s4873_s25 + $0x538] sm:$0xf] %vm1565_vm0, %v6088_v59  ;;  %v6101_v63 = vpack.c.bf16 %v1352_v39, %v1352_v39 }
 0x23a   : > { %v1917_v53 = vpop.permute.xlu0 %1916 }
 0x23b   : > { %v2209_v50 = vpop.permute.xlu1 %2208  ;;  %3513 = vst.msk [vmem:[%s4873_s25 + $0x1b8] sm:$0xf] %vm1565_vm0, %v1917_v53  ;;  %v6103_v53 = vpack.c.bf16 %v1428_v4, %v1428_v4  ;;  %v1430_v43 = vpop.f32.mrf.mxu1  ;;  %3770 = vst.msk [vmem:[%s4873_s25 + $0x43c] sm:$0xf] %vm1565_vm0, %v6101_v63 }
 0x23c   : > { %3610 = vst.msk [vmem:[%s4873_s25 + $0x2bc] sm:$0xf] %vm1565_vm0, %v2209_v50  ;;  %2524 = vrot.lane.b32.xlu0 %v6593_v48, %s4336_s9  ;;  %v1354_v50 = vpop.f32.mrf.mxu0  ;;  %v6113_v39 = vpack.c.bf16 %v1430_v43, %v1430_v43 }
 0x23d   : > { %1946 = vrot.lane.b32.xlu1 %v6594_v56, %s4336_s9  ;;  %3785 = vst.msk [vmem:[%s4873_s25 + $0x478] sm:$0xf] %vm1565_vm0, %v6103_v53  ;;  %v6111_v48 = vpack.c.bf16 %v1354_v50, %v1354_v50  ;;  %v1432_v4 = vpop.f32.mrf.mxu1  ;;  %v6595_v56 = vld [vmem:[#allocation8_spill] sm:$0xff] }
 0x23e   : > { %v2497_v47 = vpop.permute.xlu0 %2496  ;;  %3881 = vst.msk [vmem:[%s4873_s25 + $0x578] sm:$0xf] %vm1565_vm0, %v6113_v39  ;;  %v6129_v43 = vpack.c.bf16 %v1432_v4, %v1432_v4 }
 0x23f   : > { %v1919_v52 = vpop.permute.xlu1 %1918  ;;  %3705 = vst.msk [vmem:[%s4873_s25 + $0x3b8] sm:$0xf] %vm1565_vm0, %v2497_v47  ;;  %3866 = vst.msk [vmem:[%s4873_s25 + $0x53c] sm:$0xf] %vm1565_vm0, %v6111_v48  ;;  %v1434_v47 = vpop.f32.mrf.mxu1 }
 0x240   : > { %3514 = vst.msk [vmem:[%s4873_s25 + $0x1bc] sm:$0xf] %vm1565_vm0, %v1919_v52  ;;  %1658 = vrot.lane.b32.xlu0 %v5531_v5, %s4336_s9  ;;  %3786 = vst.msk [vmem:[%s4873_s25 + $0x47c] sm:$0xf] %vm1565_vm0, %v6129_v43 }
 0x241   : > { %2526 = vrot.lane.b32.xlu1 %v6595_v56, %s4336_s9  ;;  %v6134_v56 = vpack.c.bf16 %v1434_v47, %v1434_v47  ;;  %v6596_v47 = vld [vmem:[#allocation9_spill] sm:$0xff] }
 0x242   : > { %v1631_v50 = vpop.permute.xlu0 %1630 }
 0x243   : > { %v2499_v52 = vpop.permute.xlu1 %2498  ;;  %3419 = vst.msk [vmem:[%s4873_s25 + $0xc0] sm:$0xf] %vm1565_vm0, %v1631_v50  ;;  %3882 = vst.msk [vmem:[%s4873_s25 + $0x57c] sm:$0xf] %vm1565_vm0, %v6134_v56 }
 0x244   : > { %3706 = vst.msk [vmem:[%s4873_s25 + $0x3bc] sm:$0xf] %vm1565_vm0, %v2499_v52  ;;  %2238 = vrot.lane.b32.xlu0 %v5533_v10, %s4336_s9  ;;  %v6597_v52 = vld [vmem:[#allocation10_spill] sm:$0xff] }
 0x245   : > { %1660 = vrot.lane.b32.xlu1 %v5556_v14, %s4336_s9 }
 0x246   : > { %v2211_v5 = vpop.permute.xlu0 %2210 }
 0x247   : > { %v1633_v4 = vpop.permute.xlu1 %1632  ;;  %3611 = vst.msk [vmem:[%s4873_s25 + $0x2c0] sm:$0xf] %vm1565_vm0, %v2211_v5 }
 0x248   : > { %3420 = vst.msk [vmem:[%s4873_s25 + $0xc4] sm:$0xf] %vm1565_vm0, %v1633_v4  ;;  %1948 = vrot.lane.b32.xlu0 %v5546_v41, %s4336_s9 }
 0x249   : > { %2240 = vrot.lane.b32.xlu1 %v5561_v19, %s4336_s9  ;;  %v6598_v19 = vld [vmem:[#allocation11_spill] sm:$0xff] }
 0x24a   : > { %v1921_v10 = vpop.permute.xlu0 %1920 }
 0x24b   : > { %v2213_v14 = vpop.permute.xlu1 %2212  ;;  %3515 = vst.msk [vmem:[%s4873_s25 + $0x1c0] sm:$0xf] %vm1565_vm0, %v1921_v10  ;;  %v6599_v10 = vld [vmem:[#allocation12_spill] sm:$0xff] }
 0x24c   : > { %3612 = vst.msk [vmem:[%s4873_s25 + $0x2c4] sm:$0xf] %vm1565_vm0, %v2213_v14  ;;  %2528 = vrot.lane.b32.xlu0 %v6596_v47, %s4336_s9 }
 0x24d   : > { %1950 = vrot.lane.b32.xlu1 %v6597_v52, %s4336_s9 }
 0x24e   : > { %v2501_v41 = vpop.permute.xlu0 %2500 }
 0x24f   : > { %v1923_v50 = vpop.permute.xlu1 %1922  ;;  %3707 = vst.msk [vmem:[%s4873_s25 + $0x3c0] sm:$0xf] %vm1565_vm0, %v2501_v41  ;;  %v6601_v41 = vld [vmem:[#allocation14_spill] sm:$0xff] }
 0x250   : > { %3516 = vst.msk [vmem:[%s4873_s25 + $0x1c4] sm:$0xf] %vm1565_vm0, %v1923_v50  ;;  %2758 = vrot.lane.b32.xlu0 %v5595_v45, %s4336_s9 }
 0x251   : > { %2530 = vrot.lane.b32.xlu1 %v6598_v19, %s4336_s9 }
 0x252   : > { %v1635_v4 = vpop.permute.xlu0 %1634 }
 0x253   : > { %v2503_v5 = vpop.permute.xlu1 %2502  ;;  %3421 = vst.msk [vmem:[%s4873_s25 + $0xc8] sm:$0xf] %vm1565_vm0, %v1635_v4 }
 0x254   : > { %3708 = vst.msk [vmem:[%s4873_s25 + $0x3c4] sm:$0xf] %vm1565_vm0, %v2503_v5  ;;  %2790 = vrot.lane.b32.xlu0 %v6599_v10, %s4336_s9  ;;  %v6603_v10 = vld [vmem:[#allocation3_spill] sm:$0xff] }
 0x255   : > { %2760 = vrot.lane.b32.xlu1 %v5620_v34, %s4336_s9 }
 0x256   : > { %v2215_v14 = vpop.permute.xlu0 %2214 }
 0x257   : > { %v1637_v47 = vpop.permute.xlu1 %1636  ;;  %3613 = vst.msk [vmem:[%s4873_s25 + $0x2c8] sm:$0xf] %vm1565_vm0, %v2215_v14 }
 0x258   : > { %3422 = vst.msk [vmem:[%s4873_s25 + $0xcc] sm:$0xf] %vm1565_vm0, %v1637_v47  ;;  %3048 = vrot.lane.b32.xlu0 %v5602_v44, %s4336_s9  ;;  %v6605_v47 = vld [vmem:[#allocation2_spill] sm:$0xff] }
 0x259   : > { %2792 = vrot.lane.b32.xlu1 %v5625_v62, %s4336_s9  ;;  %v6600_v62 = vld [vmem:[#allocation13_spill] sm:$0xff] }
 0x25a   : > { %v1925_v45 = vpop.permute.xlu0 %1924 }
 0x25b   : > { %v2217_v52 = vpop.permute.xlu1 %2216  ;;  %3517 = vst.msk [vmem:[%s4873_s25 + $0x1c8] sm:$0xf] %vm1565_vm0, %v1925_v45 }
 0x25c   : > { %3614 = vst.msk [vmem:[%s4873_s25 + $0x2cc] sm:$0xf] %vm1565_vm0, %v2217_v52  ;;  %3080 = vrot.lane.b32.xlu0 %v5607_v17, %s4336_s9  ;;  %v6606_v52 = vld [vmem:[#allocation17_spill] sm:$0xff] }
 0x25d   : > { %3050 = vrot.lane.b32.xlu1 %v5630_v26, %s4336_s9 }
 0x25e   : > { %v2505_v44 = vpop.permute.xlu0 %2504 }
 0x25f   : > { %v1927_v34 = vpop.permute.xlu1 %1926  ;;  %3709 = vst.msk [vmem:[%s4873_s25 + $0x3c8] sm:$0xf] %vm1565_vm0, %v2505_v44  ;;  %v6607_v44 = vld [vmem:[#allocation4_spill] sm:$0xff] }
 0x260   : > { %3518 = vst.msk [vmem:[%s4873_s25 + $0x1cc] sm:$0xf] %vm1565_vm0, %v1927_v34  ;;  %2762 = vrot.lane.b32.xlu0 %v6601_v41, %s4336_s9 }
 0x261   : > { %3082 = vrot.lane.b32.xlu1 %v6600_v62, %s4336_s9 }
 0x262   : > { %v1639_v50 = vpop.permute.xlu0 %1638 }
 0x263   : > { %v2507_v17 = vpop.permute.xlu1 %2506  ;;  %3423 = vst.msk [vmem:[%s4873_s25 + $0xd0] sm:$0xf] %vm1565_vm0, %v1639_v50 }
 0x264   : > { %3710 = vst.msk [vmem:[%s4873_s25 + $0x3cc] sm:$0xf] %vm1565_vm0, %v2507_v17  ;;  %2794 = vrot.lane.b32.xlu0 %v5671_v7, %s4336_s9 }
 0x265   : > { %2764 = vrot.lane.b32.xlu1 %v5669_v13, %s4336_s9 }
 0x266   : > { %v2219_v26 = vpop.permute.xlu0 %2218 }
 0x267   : > { %v1641_v19 = vpop.permute.xlu1 %1640  ;;  %3615 = vst.msk [vmem:[%s4873_s25 + $0x2d0] sm:$0xf] %vm1565_vm0, %v2219_v26 }
 0x268   : > { %3424 = vst.msk [vmem:[%s4873_s25 + $0xd4] sm:$0xf] %vm1565_vm0, %v1641_v19  ;;  %3052 = vrot.lane.b32.xlu0 %v5656_v57, %s4336_s9 }
 0x269   : > { %2796 = vrot.lane.b32.xlu1 %v5697_v60, %s4336_s9 }
 0x26a   : > { %v1929_v7 = vpop.permute.xlu0 %1928 }
 0x26b   : > { %v2221_v5 = vpop.permute.xlu1 %2220  ;;  %3519 = vst.msk [vmem:[%s4873_s25 + $0x1d0] sm:$0xf] %vm1565_vm0, %v1929_v7 }
 0x26c   : > { %3616 = vst.msk [vmem:[%s4873_s25 + $0x2d4] sm:$0xf] %vm1565_vm0, %v2221_v5  ;;  %3084 = vrot.lane.b32.xlu0 %v5681_v35, %s4336_s9 }
 0x26d   : > { %3054 = vrot.lane.b32.xlu1 %v5679_v2, %s4336_s9 }
 0x26e   : > { %v2509_v57 = vpop.permute.xlu0 %2508 }
 0x26f   : > { %v1931_v13 = vpop.permute.xlu1 %1930  ;;  %3711 = vst.msk [vmem:[%s4873_s25 + $0x3d0] sm:$0xf] %vm1565_vm0, %v2509_v57 }
 0x270   : > { %3520 = vst.msk [vmem:[%s4873_s25 + $0x1d4] sm:$0xf] %vm1565_vm0, %v1931_v13  ;;  %2766 = vrot.lane.b32.xlu0 %v5723_v42, %s4336_s9 }
 0x271   : > { %3086 = vrot.lane.b32.xlu1 %v5702_v38, %s4336_s9 }
 0x272   : > { %v1643_v60 = vpop.permute.xlu0 %1642 }
 0x273   : > { %v2511_v35 = vpop.permute.xlu1 %2510  ;;  %3425 = vst.msk [vmem:[%s4873_s25 + $0xd8] sm:$0xf] %vm1565_vm0, %v1643_v60 }
 0x274   : > { %3712 = vst.msk [vmem:[%s4873_s25 + $0x3d4] sm:$0xf] %vm1565_vm0, %v2511_v35  ;;  %2798 = vrot.lane.b32.xlu0 %v5743_v23, %s4336_s9 }
 0x275   : > { %2768 = vrot.lane.b32.xlu1 %v5741_v16, %s4336_s9 }
 0x276   : > { %v2223_v2 = vpop.permute.xlu0 %2222 }
 0x277   : > { %v1645_v38 = vpop.permute.xlu1 %1644  ;;  %3617 = vst.msk [vmem:[%s4873_s25 + $0x2d8] sm:$0xf] %vm1565_vm0, %v2223_v2 }
 0x278   : > { %3426 = vst.msk [vmem:[%s4873_s25 + $0xdc] sm:$0xf] %vm1565_vm0, %v1645_v38  ;;  %3056 = vrot.lane.b32.xlu0 %v5728_v8, %s4336_s9 }
 0x279   : > { %2800 = vrot.lane.b32.xlu1 %v5769_v49, %s4336_s9 }
 0x27a   : > { %v1933_v42 = vpop.permute.xlu0 %1932 }
 0x27b   : > { %v2225_v23 = vpop.permute.xlu1 %2224  ;;  %3521 = vst.msk [vmem:[%s4873_s25 + $0x1d8] sm:$0xf] %vm1565_vm0, %v1933_v42 }
 0x27c   : > { %3618 = vst.msk [vmem:[%s4873_s25 + $0x2dc] sm:$0xf] %vm1565_vm0, %v2225_v23  ;;  %3088 = vrot.lane.b32.xlu0 %v5753_v3, %s4336_s9 }
 0x27d   : > { %3058 = vrot.lane.b32.xlu1 %v5751_v54, %s4336_s9 }
 0x27e   : > { %v2513_v8 = vpop.permute.xlu0 %2512 }
 0x27f   : > { %v1935_v16 = vpop.permute.xlu1 %1934  ;;  %3713 = vst.msk [vmem:[%s4873_s25 + $0x3d8] sm:$0xf] %vm1565_vm0, %v2513_v8 }
 0x280   : > { %3522 = vst.msk [vmem:[%s4873_s25 + $0x1dc] sm:$0xf] %vm1565_vm0, %v1935_v16  ;;  %2770 = vrot.lane.b32.xlu0 %v5795_v58, %s4336_s9 }
 0x281   : > { %3090 = vrot.lane.b32.xlu1 %v5774_v6, %s4336_s9 }
 0x282   : > { %v1647_v49 = vpop.permute.xlu0 %1646 }
 0x283   : > { %v2515_v3 = vpop.permute.xlu1 %2514  ;;  %3427 = vst.msk [vmem:[%s4873_s25 + $0xe0] sm:$0xf] %vm1565_vm0, %v1647_v49 }
 0x284   : > { %3714 = vst.msk [vmem:[%s4873_s25 + $0x3dc] sm:$0xf] %vm1565_vm0, %v2515_v3  ;;  %2802 = vrot.lane.b32.xlu0 %v5815_v27, %s4336_s9 }
 0x285   : > { %2772 = vrot.lane.b32.xlu1 %v5813_v33, %s4336_s9 }
 0x286   : > { %v2227_v54 = vpop.permute.xlu0 %2226 }
 0x287   : > { %v1649_v6 = vpop.permute.xlu1 %1648  ;;  %3619 = vst.msk [vmem:[%s4873_s25 + $0x2e0] sm:$0xf] %vm1565_vm0, %v2227_v54 }
 0x288   : > { %3428 = vst.msk [vmem:[%s4873_s25 + $0xe4] sm:$0xf] %vm1565_vm0, %v1649_v6  ;;  %3060 = vrot.lane.b32.xlu0 %v5800_v15, %s4336_s9 }
 0x289   : > { %2804 = vrot.lane.b32.xlu1 %v5841_v12, %s4336_s9 }
 0x28a   : > { %v1937_v58 = vpop.permute.xlu0 %1936 }
 0x28b   : > { %v2229_v27 = vpop.permute.xlu1 %2228  ;;  %3523 = vst.msk [vmem:[%s4873_s25 + $0x1e0] sm:$0xf] %vm1565_vm0, %v1937_v58 }
 0x28c   : > { %3620 = vst.msk [vmem:[%s4873_s25 + $0x2e4] sm:$0xf] %vm1565_vm0, %v2229_v27  ;;  %3092 = vrot.lane.b32.xlu0 %v5825_v22, %s4336_s9 }
 0x28d   : > { %3062 = vrot.lane.b32.xlu1 %v5823_v24, %s4336_s9 }
 0x28e   : > { %v2517_v15 = vpop.permute.xlu0 %2516 }
 0x28f   : > { %v1939_v33 = vpop.permute.xlu1 %1938  ;;  %3715 = vst.msk [vmem:[%s4873_s25 + $0x3e0] sm:$0xf] %vm1565_vm0, %v2517_v15 }
 0x290   : > { %3524 = vst.msk [vmem:[%s4873_s25 + $0x1e4] sm:$0xf] %vm1565_vm0, %v1939_v33  ;;  %2774 = vrot.lane.b32.xlu0 %v5867_v36, %s4336_s9 }
 0x291   : > { %3094 = vrot.lane.b32.xlu1 %v5846_v29, %s4336_s9 }
 0x292   : > { %v1651_v12 = vpop.permute.xlu0 %1650 }
 0x293   : > { %v2519_v22 = vpop.permute.xlu1 %2518  ;;  %3429 = vst.msk [vmem:[%s4873_s25 + $0xe8] sm:$0xf] %vm1565_vm0, %v1651_v12 }
 0x294   : > { %3716 = vst.msk [vmem:[%s4873_s25 + $0x3e4] sm:$0xf] %vm1565_vm0, %v2519_v22  ;;  %2806 = vrot.lane.b32.xlu0 %v5887_v25, %s4336_s9 }
 0x295   : > { %2776 = vrot.lane.b32.xlu1 %v5885_v21, %s4336_s9 }
 0x296   : > { %v2231_v24 = vpop.permute.xlu0 %2230 }
 0x297   : > { %v1653_v29 = vpop.permute.xlu1 %1652  ;;  %3621 = vst.msk [vmem:[%s4873_s25 + $0x2e8] sm:$0xf] %vm1565_vm0, %v2231_v24 }
 0x298   : > { %3430 = vst.msk [vmem:[%s4873_s25 + $0xec] sm:$0xf] %vm1565_vm0, %v1653_v29  ;;  %3064 = vrot.lane.b32.xlu0 %v5872_v9, %s4336_s9 }
 0x299   : > { %2808 = vrot.lane.b32.xlu1 %v5913_v37, %s4336_s9 }
 0x29a   : > { %v1941_v36 = vpop.permute.xlu0 %1940 }
 0x29b   : > { %v2233_v25 = vpop.permute.xlu1 %2232  ;;  %3525 = vst.msk [vmem:[%s4873_s25 + $0x1e8] sm:$0xf] %vm1565_vm0, %v1941_v36 }
 0x29c   : > { %3622 = vst.msk [vmem:[%s4873_s25 + $0x2ec] sm:$0xf] %vm1565_vm0, %v2233_v25  ;;  %3096 = vrot.lane.b32.xlu0 %v5897_v18, %s4336_s9 }
 0x29d   : > { %3066 = vrot.lane.b32.xlu1 %v5895_v55, %s4336_s9 }
 0x29e   : > { %v2521_v9 = vpop.permute.xlu0 %2520 }
 0x29f   : > { %v1943_v21 = vpop.permute.xlu1 %1942  ;;  %3717 = vst.msk [vmem:[%s4873_s25 + $0x3e8] sm:$0xf] %vm1565_vm0, %v2521_v9 }
 0x2a0   : > { %3526 = vst.msk [vmem:[%s4873_s25 + $0x1ec] sm:$0xf] %vm1565_vm0, %v1943_v21  ;;  %2778 = vrot.lane.b32.xlu0 %v5939_v40, %s4336_s9 }
 0x2a1   : > { %3098 = vrot.lane.b32.xlu1 %v5918_v20, %s4336_s9 }
 0x2a2   : > { %v1655_v37 = vpop.permute.xlu0 %1654 }
 0x2a3   : > { %v2523_v18 = vpop.permute.xlu1 %2522  ;;  %3431 = vst.msk [vmem:[%s4873_s25 + $0xf0] sm:$0xf] %vm1565_vm0, %v1655_v37 }
 0x2a4   : > { %3718 = vst.msk [vmem:[%s4873_s25 + $0x3ec] sm:$0xf] %vm1565_vm0, %v2523_v18  ;;  %2810 = vrot.lane.b32.xlu0 %v5959_v1, %s4336_s9 }
 0x2a5   : > { %2780 = vrot.lane.b32.xlu1 %v5957_v31, %s4336_s9 }
 0x2a6   : > { %v2235_v55 = vpop.permute.xlu0 %2234 }
 0x2a7   : > { %v1657_v20 = vpop.permute.xlu1 %1656  ;;  %3623 = vst.msk [vmem:[%s4873_s25 + $0x2f0] sm:$0xf] %vm1565_vm0, %v2235_v55 }
 0x2a8   : > { %3432 = vst.msk [vmem:[%s4873_s25 + $0xf4] sm:$0xf] %vm1565_vm0, %v1657_v20  ;;  %3068 = vrot.lane.b32.xlu0 %v5944_v51, %s4336_s9 }
 0x2a9   : > { %2812 = vrot.lane.b32.xlu1 %v5985_v46, %s4336_s9  ;;  %v6602_v46 = vld [vmem:[#allocation15_spill] sm:$0xff] }
 0x2aa   : > { %v1945_v40 = vpop.permute.xlu0 %1944 }
 0x2ab   : > { %v2237_v1 = vpop.permute.xlu1 %2236  ;;  %3527 = vst.msk [vmem:[%s4873_s25 + $0x1f0] sm:$0xf] %vm1565_vm0, %v1945_v40 }
 0x2ac   : > { %3624 = vst.msk [vmem:[%s4873_s25 + $0x2f4] sm:$0xf] %vm1565_vm0, %v2237_v1  ;;  %3100 = vrot.lane.b32.xlu0 %v5969_v61, %s4336_s9 }
 0x2ad   : > { %3070 = vrot.lane.b32.xlu1 %v5967_v32, %s4336_s9 }
 0x2ae   : > { %v2525_v51 = vpop.permute.xlu0 %2524 }
 0x2af   : > { %v1947_v31 = vpop.permute.xlu1 %1946  ;;  %3719 = vst.msk [vmem:[%s4873_s25 + $0x3f0] sm:$0xf] %vm1565_vm0, %v2525_v51 }
 0x2b0   : > { %3528 = vst.msk [vmem:[%s4873_s25 + $0x1f4] sm:$0xf] %vm1565_vm0, %v1947_v31  ;;  %2782 = vrot.lane.b32.xlu0 %v6602_v46, %s4336_s9 }
 0x2b1   : > { %3102 = vrot.lane.b32.xlu1 %v5990_v0, %s4336_s9 }
 0x2b2   : > { %v1659_v4 = vpop.permute.xlu0 %1658 }
 0x2b3   : > { %v2527_v61 = vpop.permute.xlu1 %2526  ;;  %3433 = vst.msk [vmem:[%s4873_s25 + $0xf8] sm:$0xf] %vm1565_vm0, %v1659_v4 }
 0x2b4   : > { %3720 = vst.msk [vmem:[%s4873_s25 + $0x3f4] sm:$0xf] %vm1565_vm0, %v2527_v61  ;;  %2814 = vrot.lane.b32.xlu0 %v6031_v11, %s4336_s9 }
 0x2b5   : > { %2784 = vrot.lane.b32.xlu1 %v6029_v30, %s4336_s9  ;;  %v6604_v30 = vld [vmem:[#allocation16_spill] sm:$0xff] }
 0x2b6   : > { %v2239_v32 = vpop.permute.xlu0 %2238 }
 0x2b7   : > { %v1661_v0 = vpop.permute.xlu1 %1660  ;;  %3625 = vst.msk [vmem:[%s4873_s25 + $0x2f8] sm:$0xf] %vm1565_vm0, %v2239_v32 }
 0x2b8   : > { %3434 = vst.msk [vmem:[%s4873_s25 + $0xfc] sm:$0xf] %vm1565_vm0, %v1661_v0  ;;  %3072 = vrot.lane.b32.xlu0 %v6016_v28, %s4336_s9 }
 0x2b9   : > { %2816 = vrot.lane.b32.xlu1 %v6603_v10, %s4336_s9 }
 0x2ba   : > { %v1949_v11 = vpop.permute.xlu0 %1948 }
 0x2bb   : > { %v2241_v14 = vpop.permute.xlu1 %2240  ;;  %3529 = vst.msk [vmem:[%s4873_s25 + $0x1f8] sm:$0xf] %vm1565_vm0, %v1949_v11 }
 0x2bc   : > { %3626 = vst.msk [vmem:[%s4873_s25 + $0x2fc] sm:$0xf] %vm1565_vm0, %v2241_v14  ;;  %3104 = vrot.lane.b32.xlu0 %v6604_v30, %s4336_s9 }
 0x2bd   : > { %3074 = vrot.lane.b32.xlu1 %v6605_v47, %s4336_s9 }
 0x2be   : > { %v2529_v28 = vpop.permute.xlu0 %2528 }
 0x2bf   : > { %v1951_v45 = vpop.permute.xlu1 %1950  ;;  %3721 = vst.msk [vmem:[%s4873_s25 + $0x3f8] sm:$0xf] %vm1565_vm0, %v2529_v28 }
 0x2c0   : > { %3530 = vst.msk [vmem:[%s4873_s25 + $0x1fc] sm:$0xf] %vm1565_vm0, %v1951_v45  ;;  %2786 = vrot.lane.b32.xlu0 %v6607_v44, %s4336_s9 }
 0x2c1   : > { %3106 = vrot.lane.b32.xlu1 %v6606_v52, %s4336_s9 }
 0x2c2   : > { %v2759_v62 = vpop.permute.xlu0 %2758 }
 0x2c3   : > { %v2531_v34 = vpop.permute.xlu1 %2530  ;;  %3787 = vst.msk [vmem:[%s4873_s25 + $0x480] sm:$0xf] %vm1565_vm0, %v2759_v62 }
 0x2c4   : > { %3722 = vst.msk [vmem:[%s4873_s25 + $0x3fc] sm:$0xf] %vm1565_vm0, %v2531_v34  ;;  %2818 = vrot.lane.b32.xlu0 %v6103_v53, %s4336_s9 }
 0x2c5   : > { %2788 = vrot.lane.b32.xlu1 %v6101_v63, %s4336_s9 }
 0x2c6   : > { %v2791_v41 = vpop.permute.xlu0 %2790 }
 0x2c7   : > { %v2761_v17 = vpop.permute.xlu1 %2760  ;;  %3803 = vst.msk [vmem:[%s4873_s25 + $0x4c0] sm:$0xf] %vm1565_vm0, %v2791_v41 }
 0x2c8   : > { %3788 = vst.msk [vmem:[%s4873_s25 + $0x484] sm:$0xf] %vm1565_vm0, %v2761_v17  ;;  %3076 = vrot.lane.b32.xlu0 %v6088_v59, %s4336_s9 }
 0x2c9   : > { %2820 = vrot.lane.b32.xlu1 %v6129_v43, %s4336_s9 }
 0x2ca   : > { %v3049_v53 = vpop.permute.xlu0 %3048 }
 0x2cb   : > { %v2793_v50 = vpop.permute.xlu1 %2792  ;;  %3883 = vst.msk [vmem:[%s4873_s25 + $0x580] sm:$0xf] %vm1565_vm0, %v3049_v53 }
 0x2cc   : > { %3804 = vst.msk [vmem:[%s4873_s25 + $0x4c4] sm:$0xf] %vm1565_vm0, %v2793_v50  ;;  %3108 = vrot.lane.b32.xlu0 %v6113_v39, %s4336_s9 }
 0x2cd   : > { %3078 = vrot.lane.b32.xlu1 %v6111_v48, %s4336_s9 }
 0x2ce   : > { %v3081_v59 = vpop.permute.xlu0 %3080 }
 0x2cf   : > { %v3051_v63 = vpop.permute.xlu1 %3050  ;;  %3899 = vst.msk [vmem:[%s4873_s25 + $0x5c0] sm:$0xf] %vm1565_vm0, %v3081_v59 }
 0x2d0   : > { %3884 = vst.msk [vmem:[%s4873_s25 + $0x584] sm:$0xf] %vm1565_vm0, %v3051_v63 }
 0x2d1   : > { %3110 = vrot.lane.b32.xlu1 %v6134_v56, %s4336_s9 }
 0x2d2   : > { %v2763_v26 = vpop.permute.xlu0 %2762 }
 0x2d3   : > { %v3083_v43 = vpop.permute.xlu1 %3082  ;;  %3789 = vst.msk [vmem:[%s4873_s25 + $0x488] sm:$0xf] %vm1565_vm0, %v2763_v26 }
 0x2d4   : > { %3900 = vst.msk [vmem:[%s4873_s25 + $0x5c4] sm:$0xf] %vm1565_vm0, %v3083_v43 }
 0x2d6   : > { %v2795_v48 = vpop.permute.xlu0 %2794 }
 0x2d7   : > { %v2765_v39 = vpop.permute.xlu1 %2764  ;;  %3805 = vst.msk [vmem:[%s4873_s25 + $0x4c8] sm:$0xf] %vm1565_vm0, %v2795_v48 }
 0x2d8   : > { %3790 = vst.msk [vmem:[%s4873_s25 + $0x48c] sm:$0xf] %vm1565_vm0, %v2765_v39 }
 0x2da   : > { %v3053_v19 = vpop.permute.xlu0 %3052 }
 0x2db   : > { %v2797_v7 = vpop.permute.xlu1 %2796  ;;  %3885 = vst.msk [vmem:[%s4873_s25 + $0x588] sm:$0xf] %vm1565_vm0, %v3053_v19 }
 0x2dc   : > { %3806 = vst.msk [vmem:[%s4873_s25 + $0x4cc] sm:$0xf] %vm1565_vm0, %v2797_v7 }
 0x2de   : > { %v3085_v56 = vpop.permute.xlu0 %3084 }
 0x2df   : > { %v3055_v5 = vpop.permute.xlu1 %3054  ;;  %3901 = vst.msk [vmem:[%s4873_s25 + $0x5c8] sm:$0xf] %vm1565_vm0, %v3085_v56 }
 0x2e0   : > { %3886 = vst.msk [vmem:[%s4873_s25 + $0x58c] sm:$0xf] %vm1565_vm0, %v3055_v5 }
 0x2e2   : > { %v2767_v13 = vpop.permute.xlu0 %2766 }
 0x2e3   : > { %v3087_v57 = vpop.permute.xlu1 %3086  ;;  %3791 = vst.msk [vmem:[%s4873_s25 + $0x490] sm:$0xf] %vm1565_vm0, %v2767_v13 }
 0x2e4   : > { %3902 = vst.msk [vmem:[%s4873_s25 + $0x5cc] sm:$0xf] %vm1565_vm0, %v3087_v57 }
 0x2e6   : > { %v2799_v35 = vpop.permute.xlu0 %2798 }
 0x2e7   : > { %v2769_v60 = vpop.permute.xlu1 %2768  ;;  %3807 = vst.msk [vmem:[%s4873_s25 + $0x4d0] sm:$0xf] %vm1565_vm0, %v2799_v35 }
 0x2e8   : > { %3792 = vst.msk [vmem:[%s4873_s25 + $0x494] sm:$0xf] %vm1565_vm0, %v2769_v60 }
 0x2ea   : > { %v3057_v2 = vpop.permute.xlu0 %3056 }
 0x2eb   : > { %v2801_v38 = vpop.permute.xlu1 %2800  ;;  %3887 = vst.msk [vmem:[%s4873_s25 + $0x590] sm:$0xf] %vm1565_vm0, %v3057_v2 }
 0x2ec   : > { %3808 = vst.msk [vmem:[%s4873_s25 + $0x4d4] sm:$0xf] %vm1565_vm0, %v2801_v38 }
 0x2ee   : > { %v3089_v42 = vpop.permute.xlu0 %3088 }
 0x2ef   : > { %v3059_v23 = vpop.permute.xlu1 %3058  ;;  %3903 = vst.msk [vmem:[%s4873_s25 + $0x5d0] sm:$0xf] %vm1565_vm0, %v3089_v42 }
 0x2f0   : > { %3888 = vst.msk [vmem:[%s4873_s25 + $0x594] sm:$0xf] %vm1565_vm0, %v3059_v23 }
 0x2f2   : > { %v2771_v16 = vpop.permute.xlu0 %2770 }
 0x2f3   : > { %v3091_v8 = vpop.permute.xlu1 %3090  ;;  %3793 = vst.msk [vmem:[%s4873_s25 + $0x498] sm:$0xf] %vm1565_vm0, %v2771_v16 }
 0x2f4   : > { %3904 = vst.msk [vmem:[%s4873_s25 + $0x5d4] sm:$0xf] %vm1565_vm0, %v3091_v8 }
 0x2f6   : > { %v2803_v3 = vpop.permute.xlu0 %2802 }
 0x2f7   : > { %v2773_v49 = vpop.permute.xlu1 %2772  ;;  %3809 = vst.msk [vmem:[%s4873_s25 + $0x4d8] sm:$0xf] %vm1565_vm0, %v2803_v3 }
 0x2f8   : > { %3794 = vst.msk [vmem:[%s4873_s25 + $0x49c] sm:$0xf] %vm1565_vm0, %v2773_v49 }
 0x2fa   : > { %v3061_v54 = vpop.permute.xlu0 %3060 }
 0x2fb   : > { %v2805_v6 = vpop.permute.xlu1 %2804  ;;  %3889 = vst.msk [vmem:[%s4873_s25 + $0x598] sm:$0xf] %vm1565_vm0, %v3061_v54 }
 0x2fc   : > { %3810 = vst.msk [vmem:[%s4873_s25 + $0x4dc] sm:$0xf] %vm1565_vm0, %v2805_v6 }
 0x2fe   : > { %v3093_v58 = vpop.permute.xlu0 %3092 }
 0x2ff   : > { %v3063_v27 = vpop.permute.xlu1 %3062  ;;  %3905 = vst.msk [vmem:[%s4873_s25 + $0x5d8] sm:$0xf] %vm1565_vm0, %v3093_v58 }
 0x300   : > { %3890 = vst.msk [vmem:[%s4873_s25 + $0x59c] sm:$0xf] %vm1565_vm0, %v3063_v27 }
 0x302   : > { %v2775_v33 = vpop.permute.xlu0 %2774 }
 0x303   : > { %v3095_v15 = vpop.permute.xlu1 %3094  ;;  %3795 = vst.msk [vmem:[%s4873_s25 + $0x4a0] sm:$0xf] %vm1565_vm0, %v2775_v33 }
 0x304   : > { %3906 = vst.msk [vmem:[%s4873_s25 + $0x5dc] sm:$0xf] %vm1565_vm0, %v3095_v15 }
 0x306   : > { %v2807_v22 = vpop.permute.xlu0 %2806 }
 0x307   : > { %v2777_v12 = vpop.permute.xlu1 %2776  ;;  %3811 = vst.msk [vmem:[%s4873_s25 + $0x4e0] sm:$0xf] %vm1565_vm0, %v2807_v22 }
 0x308   : > { %3796 = vst.msk [vmem:[%s4873_s25 + $0x4a4] sm:$0xf] %vm1565_vm0, %v2777_v12 }
 0x30a   : > { %v3065_v24 = vpop.permute.xlu0 %3064 }
 0x30b   : > { %v2809_v29 = vpop.permute.xlu1 %2808  ;;  %3891 = vst.msk [vmem:[%s4873_s25 + $0x5a0] sm:$0xf] %vm1565_vm0, %v3065_v24 }
 0x30c   : > { %3812 = vst.msk [vmem:[%s4873_s25 + $0x4e4] sm:$0xf] %vm1565_vm0, %v2809_v29 }
 0x30e   : > { %v3097_v36 = vpop.permute.xlu0 %3096 }
 0x30f   : > { %v3067_v25 = vpop.permute.xlu1 %3066  ;;  %3907 = vst.msk [vmem:[%s4873_s25 + $0x5e0] sm:$0xf] %vm1565_vm0, %v3097_v36 }
 0x310   : > { %3892 = vst.msk [vmem:[%s4873_s25 + $0x5a4] sm:$0xf] %vm1565_vm0, %v3067_v25 }
 0x312   : > { %v2779_v21 = vpop.permute.xlu0 %2778 }
 0x313   : > { %v3099_v9 = vpop.permute.xlu1 %3098  ;;  %3797 = vst.msk [vmem:[%s4873_s25 + $0x4a8] sm:$0xf] %vm1565_vm0, %v2779_v21 }
 0x314   : > { %3908 = vst.msk [vmem:[%s4873_s25 + $0x5e4] sm:$0xf] %vm1565_vm0, %v3099_v9 }
 0x316   : > { %v2811_v18 = vpop.permute.xlu0 %2810 }
 0x317   : > { %v2781_v37 = vpop.permute.xlu1 %2780  ;;  %3813 = vst.msk [vmem:[%s4873_s25 + $0x4e8] sm:$0xf] %vm1565_vm0, %v2811_v18 }
 0x318   : > { %3798 = vst.msk [vmem:[%s4873_s25 + $0x4ac] sm:$0xf] %vm1565_vm0, %v2781_v37 }
 0x31a   : > { %v3069_v55 = vpop.permute.xlu0 %3068 }
 0x31b   : > { %v2813_v20 = vpop.permute.xlu1 %2812  ;;  %3893 = vst.msk [vmem:[%s4873_s25 + $0x5a8] sm:$0xf] %vm1565_vm0, %v3069_v55 }
 0x31c   : > { %3814 = vst.msk [vmem:[%s4873_s25 + $0x4ec] sm:$0xf] %vm1565_vm0, %v2813_v20 }
 0x31e   : > { %v3101_v40 = vpop.permute.xlu0 %3100 }
 0x31f   : > { %v3071_v1 = vpop.permute.xlu1 %3070  ;;  %3909 = vst.msk [vmem:[%s4873_s25 + $0x5e8] sm:$0xf] %vm1565_vm0, %v3101_v40 }
 0x320   : > { %3894 = vst.msk [vmem:[%s4873_s25 + $0x5ac] sm:$0xf] %vm1565_vm0, %v3071_v1 }
 0x322   : > { %v2783_v31 = vpop.permute.xlu0 %2782 }
 0x323   : > { %v3103_v51 = vpop.permute.xlu1 %3102  ;;  %3799 = vst.msk [vmem:[%s4873_s25 + $0x4b0] sm:$0xf] %vm1565_vm0, %v2783_v31 }
 0x324   : > { %3910 = vst.msk [vmem:[%s4873_s25 + $0x5ec] sm:$0xf] %vm1565_vm0, %v3103_v51 }
 0x326   : > { %v2815_v46 = vpop.permute.xlu0 %2814 }
 0x327   : > { %v2785_v61 = vpop.permute.xlu1 %2784  ;;  %3815 = vst.msk [vmem:[%s4873_s25 + $0x4f0] sm:$0xf] %vm1565_vm0, %v2815_v46 }
 0x328   : > { %3800 = vst.msk [vmem:[%s4873_s25 + $0x4b4] sm:$0xf] %vm1565_vm0, %v2785_v61 }
 0x32a   : > { %v3073_v4 = vpop.permute.xlu0 %3072 }
 0x32b   : > { %v2817_v32 = vpop.permute.xlu1 %2816  ;;  %3895 = vst.msk [vmem:[%s4873_s25 + $0x5b0] sm:$0xf] %vm1565_vm0, %v3073_v4 }
 0x32c   : > { %3816 = vst.msk [vmem:[%s4873_s25 + $0x4f4] sm:$0xf] %vm1565_vm0, %v2817_v32 }
 0x32e   : > { %v3105_v0 = vpop.permute.xlu0 %3104 }
 0x32f   : > { %v3075_v10 = vpop.permute.xlu1 %3074  ;;  %3911 = vst.msk [vmem:[%s4873_s25 + $0x5f0] sm:$0xf] %vm1565_vm0, %v3105_v0 }
 0x330   : > { %3896 = vst.msk [vmem:[%s4873_s25 + $0x5b4] sm:$0xf] %vm1565_vm0, %v3075_v10 }
 0x332   : > { %v2787_v14 = vpop.permute.xlu0 %2786 }
 0x333   : > { %v3107_v11 = vpop.permute.xlu1 %3106  ;;  %3801 = vst.msk [vmem:[%s4873_s25 + $0x4b8] sm:$0xf] %vm1565_vm0, %v2787_v14 }
 0x334   : > { %3912 = vst.msk [vmem:[%s4873_s25 + $0x5f4] sm:$0xf] %vm1565_vm0, %v3107_v11 }
 0x336   : > { %v2819_v30 = vpop.permute.xlu0 %2818 }
 0x337   : > { %v2789_v47 = vpop.permute.xlu1 %2788  ;;  %3817 = vst.msk [vmem:[%s4873_s25 + $0x4f8] sm:$0xf] %vm1565_vm0, %v2819_v30 }
 0x338   : > { %3802 = vst.msk [vmem:[%s4873_s25 + $0x4bc] sm:$0xf] %vm1565_vm0, %v2789_v47 }
 0x33a   : > { %v3077_v28 = vpop.permute.xlu0 %3076 }
 0x33b   : > { %v2821_v45 = vpop.permute.xlu1 %2820  ;;  %3897 = vst.msk [vmem:[%s4873_s25 + $0x5b8] sm:$0xf] %vm1565_vm0, %v3077_v28 }
 0x33c   : > { %3818 = vst.msk [vmem:[%s4873_s25 + $0x4fc] sm:$0xf] %vm1565_vm0, %v2821_v45 }
 0x33e   : > { %v3109_v52 = vpop.permute.xlu0 %3108 }
 0x33f   : > { %v3079_v44 = vpop.permute.xlu1 %3078  ;;  %3913 = vst.msk [vmem:[%s4873_s25 + $0x5f8] sm:$0xf] %vm1565_vm0, %v3109_v52 }
 0x340   : > { %3898 = vst.msk [vmem:[%s4873_s25 + $0x5bc] sm:$0xf] %vm1565_vm0, %v3079_v44 }
 0x343   : > { %v3111_v34 = vpop.permute.xlu1 %3110 }
 0x344   : > { %3914 = vst.msk [vmem:[%s4873_s25 + $0x5fc] sm:$0xf] %vm1565_vm0, %v3111_v34 }
 0x345 PF: > { %s12_s11 = sadd.s32 1, %s4334_s11   ;;  %s6608_s9 = smov %s4330_s10 }
 0x346   : > { %p9_p5 = scmp.ge.s32.totalorder %s12_s11, 4   ;;  %s6609_s10 = smov %s6611_s12 }
 0x348   :  { %11 = sbr.rel (!%p9_p5) target bundleno = 2 (0x2), region = 69 }

</bundles_post_ra>
